<compile_context>
chip_gen: v7x
topology: tpu7x:2x2x1
jax: 0.10.0
libtpu: 0.0.40
codegen_flags: <defaults>
</compile_context>

<pallas_src>
import functools

import jax
import jax.numpy as jnp
from jax import lax
from jax.experimental import pallas as pl
from jax.experimental.pallas import tpu as pltpu


def _round_up(v, m):
    return (v + m - 1) // m * m


def _vmem_capacity_bytes():
    """Physical VMEM of the attached TPU generation; 128 MiB fallback."""
    try:
        return int(pltpu.get_tpu_info().vmem_capacity_bytes)
    except Exception:        # non-TPU backend / older jax: assume v5e/v6e-class
        return 128 * 1024 * 1024


def _deform_kernel(x_ref, px_ref, py_ref, w_ref, o_ref, scr_ref, *,
                   N, Cp, Hp, Wp, Hp8, fused, sub):
    """One (batch, output-pixel-tile) grid cell.

    x_ref  : (1, Cp*Hp8, Wp_pad)  zero-padded image, row = c*Hp8 + h (compute dtype)
    px_ref : (1, N, T)            sampling row coords (padded frame), f32
    py_ref : (1, N, T)            sampling col coords, f32
    w_ref  : fused:      (OCp, N*Cp)  projection weight, column = n*Cp + c
             accumulate: (N, OCp, Cp)
    o_ref  : (1, OCp, T)
    scr_ref: fused:      (N*Cp, T) compute-dtype sampled patches
             accumulate: (OCp, T)  f32 output accumulator
    """
    cdt = x_ref.dtype
    x2 = x_ref[0]                                    # (Cp*Hp8, Wp_pad)
    T = o_ref.shape[-1]
    Wp_pad = x2.shape[1]

    hmax = jnp.float32(Hp - 1)
    wmax = jnp.float32(Wp - 1)
    # Hoisted loop-invariant iotas (never materialize a (P, T) int32 iota).
    iota_h = lax.broadcasted_iota(jnp.int32, (Hp8, 1), 0)
    iota_w = lax.broadcasted_iota(jnp.int32, (Wp_pad, 1), 0)
    zero_c = jnp.zeros((), dtype=cdt)

    if not fused:
        scr_ref[...] = jnp.zeros_like(scr_ref)

    def body(n, carry):
        px = px_ref[0, pl.ds(n, 1), :]               # (1, T) row coordinate
        py = py_ref[0, pl.ds(n, 1), :]               # (1, T) col coordinate

        lt_x = jnp.floor(px); lt_y = jnp.floor(py)
        rb_x = lt_x + 1.0;    rb_y = lt_y + 1.0
        lt_x = jnp.clip(lt_x, 0.0, hmax); rb_x = jnp.clip(rb_x, 0.0, hmax)
        lt_y = jnp.clip(lt_y, 0.0, wmax); rb_y = jnp.clip(rb_y, 0.0, wmax)
        pcx = jnp.clip(px, 0.0, hmax);    pcy = jnp.clip(py, 0.0, wmax)

        # Separable bilinear weights (same formulas as the torch reference,
        # including its clamped-border double counting when corners coincide).
        gx_l = 1.0 + (lt_x - pcx); gx_r = 1.0 - (rb_x - pcx)
        gy_l = 1.0 + (lt_y - pcy); gy_r = 1.0 - (rb_y - pcy)

        ilt_x = lt_x.astype(jnp.int32); irb_x = rb_x.astype(jnp.int32)
        ilt_y = lt_y.astype(jnp.int32); irb_y = rb_y.astype(jnp.int32)

        # Row / column one-hot gather matrices: 2 selects each over (Hp8+Wp_pad)*T
        # instead of 4 selects over the full (P_pad, T) matrix.
        row_sel = (jnp.where(iota_h == ilt_x, gx_l, 0.0)
                   + jnp.where(iota_h == irb_x, gx_r, 0.0))          # (Hp8, T) f32
        col_sel = (jnp.where(iota_w == ilt_y, gy_l.astype(cdt), zero_c)
                   + jnp.where(iota_w == irb_y, gy_r.astype(cdt), zero_c))
        # col_sel: (Wp_pad, T) in compute dtype (matmul operand).

        # MXU: contract the image over columns with col_sel ...
        y2 = jnp.dot(x2, col_sel, preferred_element_type=jnp.float32)
        # ... VPU: multiply-reduce over rows with row_sel.
        y3 = y2.reshape(Cp, Hp8, T)                  # layout-free: Hp8 % 8 == 0
        samp = jnp.sum(y3 * row_sel[None, :, :], axis=1)             # (Cp, T) f32

        if fused:
            scr_ref[pl.ds(pl.multiple_of(n * Cp, sub), Cp), :] = (
                samp.astype(scr_ref.dtype))
        else:
            scr_ref[...] += jnp.dot(w_ref[n], samp.astype(cdt),
                                    preferred_element_type=jnp.float32)
        return carry

    lax.fori_loop(0, N, body, 0)

    if fused:
        # Single fused projection matmul: K = N*Cp.
        o_ref[0] = jnp.dot(w_ref[...], scr_ref[...],
                           preferred_element_type=jnp.float32).astype(o_ref.dtype)
    else:
        o_ref[0] = scr_ref[...].astype(o_ref.dtype)


def _prepare(x, p_w, p_b, *, kernel_size, padding, stride):
    """XLA glue: p_conv offsets -> sampling coordinates; zero-padded input."""
    B, C, H, W = x.shape
    ks = kernel_size
    N = ks * ks

    # p_conv (3x3, pad=1, stride=stride).  The module zero-initialises its
    # weight, so at init this reduces to a bias broadcast; computed generally.
    offset = lax.conv_general_dilated(
        x, p_w, window_strides=(stride, stride),
        padding=[(1, 1), (1, 1)],
        dimension_numbers=("NCHW", "OIHW", "NCHW"))
    offset = offset + p_b[None, :, None, None]               # (B, 2N, h_out, w_out)
    _, _, h_out, w_out = offset.shape
    HW = h_out * w_out

    # p = p_0 + p_n + offset   (coordinates in the zero-padded frame)
    r = jnp.arange(-(ks - 1) // 2, (ks - 1) // 2 + 1)
    pnx, pny = jnp.meshgrid(r, r, indexing="ij")
    pnx = pnx.reshape(-1).astype(jnp.float32)                # (N,)
    pny = pny.reshape(-1).astype(jnp.float32)
    i0 = jnp.arange(1, h_out * stride + 1, stride, dtype=jnp.float32)
    j0 = jnp.arange(1, w_out * stride + 1, stride, dtype=jnp.float32)
    p0x = jnp.broadcast_to(i0[:, None], (h_out, w_out))
    p0y = jnp.broadcast_to(j0[None, :], (h_out, w_out))
    p_x = p0x[None, None] + pnx[None, :, None, None] + offset[:, :N]
    p_y = p0y[None, None] + pny[None, :, None, None] + offset[:, N:]
    p_x = p_x.reshape(B, N, HW).astype(jnp.float32)
    p_y = p_y.reshape(B, N, HW).astype(jnp.float32)

    Hp, Wp = H + 2 * padding, W + 2 * padding
    x_pad = jnp.pad(x, ((0, 0), (0, 0), (padding, padding), (padding, padding)))
    return x_pad, p_x, p_y, (h_out, w_out, Hp, Wp)


def deform_conv2d_forward(x, p_w, p_b, conv_w, *, kernel_size=3, padding=1,
                          stride=1, tile_hw=None, compute_dtype=jnp.float32,
                          out_dtype=jnp.float32, accumulate_per_point=None):
    """Pallas implementation of DeformConv2d.forward (modulation=False)."""
    B, C, _, _ = x.shape
    ks = kernel_size
    N = ks * ks
    OC = conv_w.shape[0]

    x_pad, p_x, p_y, (h_out, w_out, Hp, Wp) = _prepare(
        x, p_w, p_b, kernel_size=ks, padding=padding, stride=stride)
    HW = h_out * w_out

    # Channel rounding: 8 sublanes for f32, 16 for bf16 so the n*Cp scratch row
    # offsets stay aligned to the packed (16, 128) tiles.
    sub = 32 // jnp.dtype(compute_dtype).itemsize
    Cp = _round_up(C, sub)
    OCp = _round_up(OC, sub)
    Hp8 = _round_up(Hp, 8)            # sublane-align rows (keeps reshapes layout-free)
    Wp_pad = _round_up(Wp, 128)       # lane-align columns (MXU contraction dim)

    # Generation-aware output tile / VMEM budget.
    vmem_cap = _vmem_capacity_bytes()
    small_vmem = vmem_cap <= 64 * 1024 * 1024          # v7x-class (64 MiB / TC)
    if tile_hw is None:
        tile_hw = min(256 if small_vmem else 1024, _round_up(HW, 128))
    T = tile_hw
    assert T % 128 == 0, "tile_hw must be a multiple of 128 (lane-dense stores)"
    HW_pad = _round_up(HW, T)
    vmem_limit = int(min(96 * 1024 * 1024, (vmem_cap * 3) // 4))

    # Image: zero-pad channels / rows / cols, fold (c, h) onto the sublane axis.
    x_in = jnp.pad(x_pad, ((0, 0), (0, Cp - C), (0, Hp8 - Hp), (0, Wp_pad - Wp)))
    x_in = x_in.reshape(B, Cp * Hp8, Wp_pad).astype(compute_dtype)

    # Sampling coordinates padded to the tile grid (tail columns sample (0,0)
    # and are sliced off afterwards).
    p_x = jnp.pad(p_x, ((0, 0), (0, 0), (0, HW_pad - HW)))
    p_y = jnp.pad(p_y, ((0, 0), (0, 0), (0, HW_pad - HW)))

    fused = not (Cp >= 64 if accumulate_per_point is None else accumulate_per_point)

    # Main conv weight (bias=None in the module): column n*Cp + c, n = kh*ks + kw.
    w_r = conv_w.reshape(OC, C, N).transpose(0, 2, 1)            # (OC, N, C)
    w_r = jnp.pad(w_r, ((0, OCp - OC), (0, 0), (0, Cp - C)))     # (OCp, N, Cp)
    if fused:
        w_in = w_r.reshape(OCp, N * Cp).astype(compute_dtype)
        w_shape = (OCp, N * Cp)
        w_imap = lambda b, t: (0, 0)
        scratch = pltpu.VMEM((N * Cp, T), compute_dtype)
    else:
        w_in = w_r.transpose(1, 0, 2).astype(compute_dtype)      # (N, OCp, Cp)
        w_shape = (N, OCp, Cp)
        w_imap = lambda b, t: (0, 0, 0)
        scratch = pltpu.VMEM((OCp, T), jnp.float32)

    kernel = functools.partial(_deform_kernel, N=N, Cp=Cp, Hp=Hp, Wp=Wp,
                               Hp8=Hp8, fused=fused, sub=sub)

    itemsize = jnp.dtype(compute_dtype).itemsize
    cost = pl.CostEstimate(
        flops=int(2 * B * N * Cp * Hp8 * Wp_pad * HW_pad
                  + 2 * B * OCp * N * Cp * HW_pad),
        transcendentals=0,
        bytes_accessed=int(x_in.size * itemsize
                           + (p_x.size + p_y.size) * 4
                           + w_in.size * itemsize
                           + B * OCp * HW_pad * jnp.dtype(out_dtype).itemsize))

    def run(single_buffer):
        def inv_spec(shape, imap):
            if single_buffer:
                # Grid-invariant inputs: skip double-buffering the whole image /
                # the weights (frees a full image copy of VMEM).
                return pl.BlockSpec(shape, imap, pipeline_mode=pl.Buffered(1))
            return pl.BlockSpec(shape, imap)

        return pl.pallas_call(
            kernel,
            out_shape=jax.ShapeDtypeStruct((B, OCp, HW_pad), out_dtype),
            grid_spec=pltpu.PrefetchScalarGridSpec(
                num_scalar_prefetch=0,
                grid=(B, HW_pad // T),
                in_specs=[
                    inv_spec((1, Cp * Hp8, Wp_pad), lambda b, t: (b, 0, 0)),
                    pl.BlockSpec((1, N, T), lambda b, t: (b, 0, t)),
                    pl.BlockSpec((1, N, T), lambda b, t: (b, 0, t)),
                    inv_spec(w_shape, w_imap),
                ],
                out_specs=pl.BlockSpec((1, OCp, T), lambda b, t: (b, 0, t)),
                scratch_shapes=[scratch],
            ),
            compiler_params=pltpu.CompilerParams(
                dimension_semantics=("parallel", "parallel"),
                vmem_limit_bytes=vmem_limit),
            cost_estimate=cost,
        )(x_in, p_x, p_y, w_in)

    try:
        out = run(True)
    except Exception:
        # Older jax without BlockSpec pipeline_mode / Buffered(1): default buffering.
        out = run(False)

    out = out[:, :OC, :HW]
    return out.reshape(B, OC, h_out, w_out)


def reference_forward(x, p_w, p_b, conv_w, *, kernel_size=3, padding=1, stride=1):
    """Pure-JAX reference (gather-based), mirroring the torch code."""
    B, C, _, _ = x.shape
    ks = kernel_size
    N = ks * ks
    OC = conv_w.shape[0]
    x_pad, p_x, p_y, (h_out, w_out, Hp, Wp) = _prepare(
        x, p_w, p_b, kernel_size=ks, padding=padding, stride=stride)
    x_flat = x_pad.reshape(B, C, Hp * Wp).astype(jnp.float32)

    lt_x = jnp.floor(p_x); lt_y = jnp.floor(p_y)
    rb_x = lt_x + 1.0;     rb_y = lt_y + 1.0
    lt_x = jnp.clip(lt_x, 0.0, Hp - 1); lt_y = jnp.clip(lt_y, 0.0, Wp - 1)
    rb_x = jnp.clip(rb_x, 0.0, Hp - 1); rb_y = jnp.clip(rb_y, 0.0, Wp - 1)
    pcx = jnp.clip(p_x, 0.0, Hp - 1);   pcy = jnp.clip(p_y, 0.0, Wp - 1)

    g_lt = (1.0 + (lt_x - pcx)) * (1.0 + (lt_y - pcy))
    g_rb = (1.0 - (rb_x - pcx)) * (1.0 - (rb_y - pcy))
    g_lb = (1.0 + (lt_x - pcx)) * (1.0 - (rb_y - pcy))
    g_rt = (1.0 - (rb_x - pcx)) * (1.0 + (lt_y - pcy))

    def gather(ix, iy):
        idx = ix.astype(jnp.int32) * Wp + iy.astype(jnp.int32)      # (B, N, HW)
        return jax.vmap(lambda xf, ii: xf[:, ii])(x_flat, idx)      # (B, C, N, HW)

    x_off = (g_lt[:, None] * gather(lt_x, lt_y)
             + g_rb[:, None] * gather(rb_x, rb_y)
             + g_lb[:, None] * gather(lt_x, rb_y)
             + g_rt[:, None] * gather(rb_x, lt_y))                  # (B, C, N, HW)

    w_r = conv_w.reshape(OC, C, N).astype(jnp.float32)
    out = jnp.einsum("ocn,bcnq->boq", w_r, x_off)
    return out.reshape(B, OC, h_out, w_out)


if __name__ == "__main__":
    B, C, H, W = 2, 4, 16, 16
    OC, ks, pad, stride = 8, 3, 1, 1
    N = ks * ks

    key = jax.random.PRNGKey(0)
    k1, k2, k3 = jax.random.split(key, 3)

    x = jax.random.normal(k1, (B, C, H, W), dtype=jnp.float32)

    # p_conv params: weight zero-initialised (as in the module __init__),
    # bias ~ default Conv2d init.
    p_w = jnp.zeros((2 * N, C, 3, 3), dtype=jnp.float32)
    bound_p = 1.0 / (C * 9) ** 0.5
    p_b = jax.random.uniform(k2, (2 * N,), minval=-bound_p, maxval=bound_p,
                             dtype=jnp.float32)

    # main conv: Conv2d(inc, outc, ks, stride=ks, bias=None) -> no bias
    bound_c = 1.0 / (C * ks * ks) ** 0.5
    conv_w = jax.random.uniform(k3, (OC, C, ks, ks), minval=-bound_c,
                                maxval=bound_c, dtype=jnp.float32)

    ref = reference_forward(x, p_w, p_b, conv_w, kernel_size=ks, padding=pad,
                            stride=stride)

    # 1) f32, fused projection, generation-default tile: strict check.
    out = deform_conv2d_forward(x, p_w, p_b, conv_w, kernel_size=ks, padding=pad,
                                stride=stride, compute_dtype=jnp.float32)
    out = jax.block_until_ready(out)
    assert out.shape == (B, OC, H, W), out.shape
    assert jnp.allclose(out, ref, atol=1e-4, rtol=1e-4), \
        float(jnp.abs(out - ref).max())

    # 2) f32, per-kernel-point accumulation path + multi-tile grid.
    out_acc = deform_conv2d_forward(x, p_w, p_b, conv_w, kernel_size=ks,
                                    padding=pad, stride=stride, tile_hw=128,
                                    compute_dtype=jnp.float32,
                                    accumulate_per_point=True)
    out_acc = jax.block_until_ready(out_acc)
    assert jnp.allclose(out_acc, ref, atol=1e-4, rtol=1e-4), \
        float(jnp.abs(out_acc - ref).max())

    # 3) bf16 matmul-operand path (f32 accumulation) for the v6e/v7x MXU.
    #    (Bilinear column weights are also bf16 -> looser tolerance; see notes.)
    out_bf16 = deform_conv2d_forward(x, p_w, p_b, conv_w, kernel_size=ks,
                                     padding=pad, stride=stride, tile_hw=128,
                                     compute_dtype=jnp.bfloat16)
    out_bf16 = jax.block_until_ready(out_bf16)
    assert jnp.allclose(out_bf16, ref, atol=3e-2, rtol=3e-2), \
        float(jnp.abs(out_bf16 - ref).max())

    print("KERNEL_OK")
</pallas_src>

<mosaic_0001>
module attributes {stable_mosaic.version = 11 : i64} {
  func.func @_deform_kernel(%arg0: i32, %arg1: i32, %arg2: memref<1x192x128xf32, #tpu.memory_space<vmem>>, %arg3: memref<1x9x256xf32, #tpu.memory_space<vmem>>, %arg4: memref<1x9x256xf32, #tpu.memory_space<vmem>>, %arg5: memref<8x72xf32, #tpu.memory_space<vmem>>, %arg6: memref<1x8x256xf32, #tpu.memory_space<vmem>>, %arg7: memref<72x256xf32, #tpu.memory_space<vmem>>) attributes {dimension_semantics = [#tpu.dimension_semantics<parallel>, #tpu.dimension_semantics<parallel>], iteration_bounds = array<i64: 2, 1>, scalar_prefetch = 0 : i64, scratch_operands = 1 : i64, tpu.core_type = #tpu.core_type<tc>, window_params = [{pipeline_mode = #tpu.pipeline_mode<synchronous>, transform_indices = @transform_0, window_bounds = array<i64: 1, 192, 128>}, {transform_indices = @transform_1, window_bounds = array<i64: 1, 9, 256>}, {transform_indices = @transform_2, window_bounds = array<i64: 1, 9, 256>}, {pipeline_mode = #tpu.pipeline_mode<synchronous>, transform_indices = @transform_3, window_bounds = array<i64: 8, 72>}, {transform_indices = @transform_4, window_bounds = array<i64: 1, 8, 256>}]} {
    %c0 = arith.constant 0 : index
    %c0_0 = arith.constant 0 : index
    %c0_1 = arith.constant 0 : index
    %0 = vector.load %arg2[%c0, %c0_0, %c0_1] : memref<1x192x128xf32, #tpu.memory_space<vmem>>, vector<1x192x128xf32>
    %1 = vector.shape_cast %0 : vector<1x192x128xf32> to vector<192x128xf32>
    %2 = tpu.iota {dimensions = array<i32: 0>} : vector<24x1xi32>
    %3 = tpu.iota {dimensions = array<i32: 0>} : vector<128x1xi32>
    %cst = arith.constant 1.700000e+01 : f32
    %cst_2 = arith.constant 1.700000e+01 : f32
    %cst_3 = arith.constant 0.000000e+00 : f32
    %c0_i32 = arith.constant 0 : i32
    %c9_i32 = arith.constant 9 : i32
    %4 = arith.addi %c0_i32, %c9_i32 : i32
    %c1_i32 = arith.constant 1 : i32
    scf.for %arg8 = %c0_i32 to %4 step %c1_i32  : i32 {
      %c0_13 = arith.constant 0 : index
      %11 = arith.index_cast %arg8 : i32 to index
      %c0_14 = arith.constant 0 : index
      %12 = vector.load %arg3[%c0_13, %11, %c0_14] : memref<1x9x256xf32, #tpu.memory_space<vmem>>, vector<1x1x256xf32>
      %13 = vector.shape_cast %12 : vector<1x1x256xf32> to vector<1x256xf32>
      %c0_15 = arith.constant 0 : index
      %14 = arith.index_cast %arg8 : i32 to index
      %c0_16 = arith.constant 0 : index
      %15 = vector.load %arg4[%c0_15, %14, %c0_16] : memref<1x9x256xf32, #tpu.memory_space<vmem>>, vector<1x1x256xf32>
      %16 = vector.shape_cast %15 : vector<1x1x256xf32> to vector<1x256xf32>
      %17 = math.floor %13 : vector<1x256xf32>
      %18 = math.floor %16 : vector<1x256xf32>
      %cst_17 = arith.constant 1.000000e+00 : f32
      %19 = vector.broadcast %cst_17 : f32 to vector<1x256xf32>
      %20 = arith.addf %17, %19 : vector<1x256xf32>
      %cst_18 = arith.constant 1.000000e+00 : f32
      %21 = vector.broadcast %cst_18 : f32 to vector<1x256xf32>
      %22 = arith.addf %18, %21 : vector<1x256xf32>
      %cst_19 = arith.constant 0.000000e+00 : f32
      %23 = vector.broadcast %cst_19 : f32 to vector<1x256xf32>
      %24 = arith.maximumf %23, %17 : vector<1x256xf32>
      %25 = vector.broadcast %cst : f32 to vector<1x256xf32>
      %26 = arith.minimumf %25, %24 : vector<1x256xf32>
      %cst_20 = arith.constant 0.000000e+00 : f32
      %27 = vector.broadcast %cst_20 : f32 to vector<1x256xf32>
      %28 = arith.maximumf %27, %20 : vector<1x256xf32>
      %29 = vector.broadcast %cst : f32 to vector<1x256xf32>
      %30 = arith.minimumf %29, %28 : vector<1x256xf32>
      %cst_21 = arith.constant 0.000000e+00 : f32
      %31 = vector.broadcast %cst_21 : f32 to vector<1x256xf32>
      %32 = arith.maximumf %31, %18 : vector<1x256xf32>
      %33 = vector.broadcast %cst_2 : f32 to vector<1x256xf32>
      %34 = arith.minimumf %33, %32 : vector<1x256xf32>
      %cst_22 = arith.constant 0.000000e+00 : f32
      %35 = vector.broadcast %cst_22 : f32 to vector<1x256xf32>
      %36 = arith.maximumf %35, %22 : vector<1x256xf32>
      %37 = vector.broadcast %cst_2 : f32 to vector<1x256xf32>
      %38 = arith.minimumf %37, %36 : vector<1x256xf32>
      %cst_23 = arith.constant 0.000000e+00 : f32
      %39 = vector.broadcast %cst_23 : f32 to vector<1x256xf32>
      %40 = arith.maximumf %39, %13 : vector<1x256xf32>
      %41 = vector.broadcast %cst : f32 to vector<1x256xf32>
      %42 = arith.minimumf %41, %40 : vector<1x256xf32>
      %cst_24 = arith.constant 0.000000e+00 : f32
      %43 = vector.broadcast %cst_24 : f32 to vector<1x256xf32>
      %44 = arith.maximumf %43, %16 : vector<1x256xf32>
      %45 = vector.broadcast %cst_2 : f32 to vector<1x256xf32>
      %46 = arith.minimumf %45, %44 : vector<1x256xf32>
      %47 = arith.subf %26, %42 : vector<1x256xf32>
      %cst_25 = arith.constant 1.000000e+00 : f32
      %48 = vector.broadcast %cst_25 : f32 to vector<1x256xf32>
      %49 = arith.addf %48, %47 : vector<1x256xf32>
      %50 = arith.subf %30, %42 : vector<1x256xf32>
      %cst_26 = arith.constant 1.000000e+00 : f32
      %51 = vector.broadcast %cst_26 : f32 to vector<1x256xf32>
      %52 = arith.subf %51, %50 : vector<1x256xf32>
      %53 = arith.subf %34, %46 : vector<1x256xf32>
      %cst_27 = arith.constant 1.000000e+00 : f32
      %54 = vector.broadcast %cst_27 : f32 to vector<1x256xf32>
      %55 = arith.addf %54, %53 : vector<1x256xf32>
      %56 = arith.subf %38, %46 : vector<1x256xf32>
      %cst_28 = arith.constant 1.000000e+00 : f32
      %57 = vector.broadcast %cst_28 : f32 to vector<1x256xf32>
      %58 = arith.subf %57, %56 : vector<1x256xf32>
      %59 = arith.fptosi %26 : vector<1x256xf32> to vector<1x256xi32>
      %60 = arith.fptosi %30 : vector<1x256xf32> to vector<1x256xi32>
      %61 = arith.fptosi %34 : vector<1x256xf32> to vector<1x256xi32>
      %62 = arith.fptosi %38 : vector<1x256xf32> to vector<1x256xi32>
      %63 = vector.broadcast %2 : vector<24x1xi32> to vector<24x256xi32>
      %64 = vector.broadcast %59 : vector<1x256xi32> to vector<24x256xi32>
      %65 = arith.cmpi eq, %63, %64 : vector<24x256xi32>
      %cst_29 = arith.constant 0.000000e+00 : f32
      %66 = vector.shape_cast %49 : vector<1x256xf32> to vector<1x256xf32>
      %67 = vector.broadcast %66 : vector<1x256xf32> to vector<24x256xf32>
      %68 = vector.broadcast %cst_29 : f32 to vector<24x256xf32>
      %69 = arith.select %65, %67, %68 : vector<24x256xi1>, vector<24x256xf32>
      %70 = vector.broadcast %2 : vector<24x1xi32> to vector<24x256xi32>
      %71 = vector.broadcast %60 : vector<1x256xi32> to vector<24x256xi32>
      %72 = arith.cmpi eq, %70, %71 : vector<24x256xi32>
      %cst_30 = arith.constant 0.000000e+00 : f32
      %73 = vector.shape_cast %52 : vector<1x256xf32> to vector<1x256xf32>
      %74 = vector.broadcast %73 : vector<1x256xf32> to vector<24x256xf32>
      %75 = vector.broadcast %cst_30 : f32 to vector<24x256xf32>
      %76 = arith.select %72, %74, %75 : vector<24x256xi1>, vector<24x256xf32>
      %77 = arith.addf %69, %76 : vector<24x256xf32>
      %78 = vector.broadcast %3 : vector<128x1xi32> to vector<128x256xi32>
      %79 = vector.broadcast %61 : vector<1x256xi32> to vector<128x256xi32>
      %80 = arith.cmpi eq, %78, %79 : vector<128x256xi32>
      %81 = vector.shape_cast %55 : vector<1x256xf32> to vector<1x256xf32>
      %82 = vector.broadcast %81 : vector<1x256xf32> to vector<128x256xf32>
      %83 = vector.broadcast %cst_3 : f32 to vector<128x256xf32>
      %84 = arith.select %80, %82, %83 : vector<128x256xi1>, vector<128x256xf32>
      %85 = vector.broadcast %3 : vector<128x1xi32> to vector<128x256xi32>
      %86 = vector.broadcast %62 : vector<1x256xi32> to vector<128x256xi32>
      %87 = arith.cmpi eq, %85, %86 : vector<128x256xi32>
      %88 = vector.shape_cast %58 : vector<1x256xf32> to vector<1x256xf32>
      %89 = vector.broadcast %88 : vector<1x256xf32> to vector<128x256xf32>
      %90 = vector.broadcast %cst_3 : f32 to vector<128x256xf32>
      %91 = arith.select %87, %89, %90 : vector<128x256xi1>, vector<128x256xf32>
      %92 = arith.addf %84, %91 : vector<128x256xf32>
      %cst_31 = arith.constant dense<0.000000e+00> : vector<192x256xf32>
      %93 = tpu.matmul %1, %92, %cst_31 {dimension_numbers = #tpu.dot_dimension_numbers<[1], [0], [0], [1], [0, 0, 1, 1], [], []>} : vector<192x128xf32>, vector<128x256xf32>, vector<192x256xf32> -> vector<192x256xf32>
      %94 = vector.shape_cast %93 : vector<192x256xf32> to vector<8x24x256xf32>
      %95 = vector.shape_cast %77 : vector<24x256xf32> to vector<1x24x256xf32>
      %96 = vector.broadcast %95 : vector<1x24x256xf32> to vector<8x24x256xf32>
      %97 = arith.mulf %94, %96 : vector<8x24x256xf32>
      %cst_32 = arith.constant dense<0.000000e+00> : vector<8x256xf32>
      %98 = vector.multi_reduction <add>, %97, %cst_32 [1] : vector<8x24x256xf32> to vector<8x256xf32>
      %c8_i32 = arith.constant 8 : i32
      %99 = arith.muli %arg8, %c8_i32 : i32
      %100 = tpu.assume_multiple %99, 8 : i32
      %101 = arith.index_cast %100 : i32 to index
      %c0_33 = arith.constant 0 : index
      %102 = vector.load %arg7[%101, %c0_33] : memref<72x256xf32, #tpu.memory_space<vmem>>, vector<8x256xf32>
      tpu.vector_store %arg7[%101, %c0_33], %98 {strides = array<i32>} : memref<72x256xf32, #tpu.memory_space<vmem>>, vector<8x256xf32>,
    }
    %c9_i32_4 = arith.constant 9 : i32
    %c0_5 = arith.constant 0 : index
    %c0_6 = arith.constant 0 : index
    %5 = vector.load %arg5[%c0_5, %c0_6] : memref<8x72xf32, #tpu.memory_space<vmem>>, vector<8x72xf32>
    %c0_7 = arith.constant 0 : index
    %c0_8 = arith.constant 0 : index
    %6 = vector.load %arg7[%c0_7, %c0_8] : memref<72x256xf32, #tpu.memory_space<vmem>>, vector<72x256xf32>
    %cst_9 = arith.constant dense<0.000000e+00> : vector<8x256xf32>
    %7 = tpu.matmul %5, %6, %cst_9 {dimension_numbers = #tpu.dot_dimension_numbers<[1], [0], [0], [1], [0, 0, 1, 1], [], []>} : vector<8x72xf32>, vector<72x256xf32>, vector<8x256xf32> -> vector<8x256xf32>
    %c0_10 = arith.constant 0 : index
    %c0_11 = arith.constant 0 : index
    %c0_12 = arith.constant 0 : index
    %8 = vector.load %arg6[%c0_10, %c0_11, %c0_12] : memref<1x8x256xf32, #tpu.memory_space<vmem>>, vector<1x8x256xf32>
    %9 = vector.shape_cast %8 : vector<1x8x256xf32> to vector<8x256xf32>
    %10 = vector.shape_cast %7 : vector<8x256xf32> to vector<1x8x256xf32>
    tpu.vector_store %arg6[%c0_10, %c0_11, %c0_12], %10 {strides = array<i32>} : memref<1x8x256xf32, #tpu.memory_space<vmem>>, vector<1x8x256xf32>,
    return
  }
  func.func @transform_0(%arg0: i32, %arg1: i32) -> (i32, i32, i32) {
    %c0_i32 = arith.constant 0 : i32
    %c0_i32_0 = arith.constant 0 : i32
    %c0_i32_1 = arith.constant 0 : i32
    return %arg0, %c0_i32, %c0_i32_0 : i32, i32, i32
  }
  func.func @transform_1(%arg0: i32, %arg1: i32) -> (i32, i32, i32) {
    %c0_i32 = arith.constant 0 : i32
    %c0_i32_0 = arith.constant 0 : i32
    return %arg0, %c0_i32, %arg1 : i32, i32, i32
  }
  func.func @transform_2(%arg0: i32, %arg1: i32) -> (i32, i32, i32) {
    %c0_i32 = arith.constant 0 : i32
    %c0_i32_0 = arith.constant 0 : i32
    return %arg0, %c0_i32, %arg1 : i32, i32, i32
  }
  func.func @transform_3(%arg0: i32, %arg1: i32) -> (i32, i32) {
    %c0_i32 = arith.constant 0 : i32
    %c0_i32_0 = arith.constant 0 : i32
    %c0_i32_1 = arith.constant 0 : i32
    return %c0_i32, %c0_i32_0 : i32, i32
  }
  func.func @transform_4(%arg0: i32, %arg1: i32) -> (i32, i32, i32) {
    %c0_i32 = arith.constant 0 : i32
    %c0_i32_0 = arith.constant 0 : i32
    return %arg0, %c0_i32, %arg1 : i32, i32, i32
  }
}

module attributes {stable_mosaic.version = 11 : i64} {
  func.func @_deform_kernel(%arg0: i32, %arg1: i32, %arg2: memref<1x192x128xf32, #tpu.memory_space<vmem>>, %arg3: memref<1x9x256xf32, #tpu.memory_space<vmem>>, %arg4: memref<1x9x256xf32, #tpu.memory_space<vmem>>, %arg5: memref<8x72xf32, #tpu.memory_space<vmem>>, %arg6: memref<1x8x256xf32, #tpu.memory_space<vmem>>, %arg7: memref<72x256xf32, #tpu.memory_space<vmem>>) attributes {dimension_semantics = [#tpu.dimension_semantics<parallel>, #tpu.dimension_semantics<parallel>], iteration_bounds = array<i64: 2, 1>, scalar_prefetch = 0 : i64, scratch_operands = 1 : i64, tpu.core_type = #tpu.core_type<tc>, window_params = [{transform_indices = @transform_0, window_bounds = array<i64: 1, 192, 128>}, {transform_indices = @transform_1, window_bounds = array<i64: 1, 9, 256>}, {transform_indices = @transform_2, window_bounds = array<i64: 1, 9, 256>}, {pipeline_mode = #tpu.pipeline_mode<synchronous>, transform_indices = @transform_3, window_bounds = array<i64: 8, 72>}, {transform_indices = @transform_4, window_bounds = array<i64: 1, 8, 256>}]} {
    %c0 = arith.constant 0 : index
    %c0_0 = arith.constant 0 : index
    %c0_1 = arith.constant 0 : index
    %0 = vector.load %arg2[%c0, %c0_0, %c0_1] : memref<1x192x128xf32, #tpu.memory_space<vmem>>, vector<1x192x128xf32>
    %1 = vector.shape_cast %0 : vector<1x192x128xf32> to vector<192x128xf32>
    %2 = tpu.iota {dimensions = array<i32: 0>} : vector<24x1xi32>
    %3 = tpu.iota {dimensions = array<i32: 0>} : vector<128x1xi32>
    %cst = arith.constant 1.700000e+01 : f32
    %cst_2 = arith.constant 1.700000e+01 : f32
    %cst_3 = arith.constant 0.000000e+00 : f32
    %c0_i32 = arith.constant 0 : i32
    %c9_i32 = arith.constant 9 : i32
    %4 = arith.addi %c0_i32, %c9_i32 : i32
    %c1_i32 = arith.constant 1 : i32
    scf.for %arg8 = %c0_i32 to %4 step %c1_i32  : i32 {
      %c0_13 = arith.constant 0 : index
      %11 = arith.index_cast %arg8 : i32 to index
      %c0_14 = arith.constant 0 : index
      %12 = vector.load %arg3[%c0_13, %11, %c0_14] : memref<1x9x256xf32, #tpu.memory_space<vmem>>, vector<1x1x256xf32>
      %13 = vector.shape_cast %12 : vector<1x1x256xf32> to vector<1x256xf32>
      %c0_15 = arith.constant 0 : index
      %14 = arith.index_cast %arg8 : i32 to index
      %c0_16 = arith.constant 0 : index
      %15 = vector.load %arg4[%c0_15, %14, %c0_16] : memref<1x9x256xf32, #tpu.memory_space<vmem>>, vector<1x1x256xf32>
      %16 = vector.shape_cast %15 : vector<1x1x256xf32> to vector<1x256xf32>
      %17 = math.floor %13 : vector<1x256xf32>
      %18 = math.floor %16 : vector<1x256xf32>
      %cst_17 = arith.constant 1.000000e+00 : f32
      %19 = vector.broadcast %cst_17 : f32 to vector<1x256xf32>
      %20 = arith.addf %17, %19 : vector<1x256xf32>
      %cst_18 = arith.constant 1.000000e+00 : f32
      %21 = vector.broadcast %cst_18 : f32 to vector<1x256xf32>
      %22 = arith.addf %18, %21 : vector<1x256xf32>
      %cst_19 = arith.constant 0.000000e+00 : f32
      %23 = vector.broadcast %cst_19 : f32 to vector<1x256xf32>
      %24 = arith.maximumf %23, %17 : vector<1x256xf32>
      %25 = vector.broadcast %cst : f32 to vector<1x256xf32>
      %26 = arith.minimumf %25, %24 : vector<1x256xf32>
      %cst_20 = arith.constant 0.000000e+00 : f32
      %27 = vector.broadcast %cst_20 : f32 to vector<1x256xf32>
      %28 = arith.maximumf %27, %20 : vector<1x256xf32>
      %29 = vector.broadcast %cst : f32 to vector<1x256xf32>
      %30 = arith.minimumf %29, %28 : vector<1x256xf32>
      %cst_21 = arith.constant 0.000000e+00 : f32
      %31 = vector.broadcast %cst_21 : f32 to vector<1x256xf32>
      %32 = arith.maximumf %31, %18 : vector<1x256xf32>
      %33 = vector.broadcast %cst_2 : f32 to vector<1x256xf32>
      %34 = arith.minimumf %33, %32 : vector<1x256xf32>
      %cst_22 = arith.constant 0.000000e+00 : f32
      %35 = vector.broadcast %cst_22 : f32 to vector<1x256xf32>
      %36 = arith.maximumf %35, %22 : vector<1x256xf32>
      %37 = vector.broadcast %cst_2 : f32 to vector<1x256xf32>
      %38 = arith.minimumf %37, %36 : vector<1x256xf32>
      %cst_23 = arith.constant 0.000000e+00 : f32
      %39 = vector.broadcast %cst_23 : f32 to vector<1x256xf32>
      %40 = arith.maximumf %39, %13 : vector<1x256xf32>
      %41 = vector.broadcast %cst : f32 to vector<1x256xf32>
      %42 = arith.minimumf %41, %40 : vector<1x256xf32>
      %cst_24 = arith.constant 0.000000e+00 : f32
      %43 = vector.broadcast %cst_24 : f32 to vector<1x256xf32>
      %44 = arith.maximumf %43, %16 : vector<1x256xf32>
      %45 = vector.broadcast %cst_2 : f32 to vector<1x256xf32>
      %46 = arith.minimumf %45, %44 : vector<1x256xf32>
      %47 = arith.subf %26, %42 : vector<1x256xf32>
      %cst_25 = arith.constant 1.000000e+00 : f32
      %48 = vector.broadcast %cst_25 : f32 to vector<1x256xf32>
      %49 = arith.addf %48, %47 : vector<1x256xf32>
      %50 = arith.subf %30, %42 : vector<1x256xf32>
      %cst_26 = arith.constant 1.000000e+00 : f32
      %51 = vector.broadcast %cst_26 : f32 to vector<1x256xf32>
      %52 = arith.subf %51, %50 : vector<1x256xf32>
      %53 = arith.subf %34, %46 : vector<1x256xf32>
      %cst_27 = arith.constant 1.000000e+00 : f32
      %54 = vector.broadcast %cst_27 : f32 to vector<1x256xf32>
      %55 = arith.addf %54, %53 : vector<1x256xf32>
      %56 = arith.subf %38, %46 : vector<1x256xf32>
      %cst_28 = arith.constant 1.000000e+00 : f32
      %57 = vector.broadcast %cst_28 : f32 to vector<1x256xf32>
      %58 = arith.subf %57, %56 : vector<1x256xf32>
      %59 = arith.fptosi %26 : vector<1x256xf32> to vector<1x256xi32>
      %60 = arith.fptosi %30 : vector<1x256xf32> to vector<1x256xi32>
      %61 = arith.fptosi %34 : vector<1x256xf32> to vector<1x256xi32>
      %62 = arith.fptosi %38 : vector<1x256xf32> to vector<1x256xi32>
      %63 = vector.broadcast %2 : vector<24x1xi32> to vector<24x256xi32>
      %64 = vector.broadcast %59 : vector<1x256xi32> to vector<24x256xi32>
      %65 = arith.cmpi eq, %63, %64 : vector<24x256xi32>
      %cst_29 = arith.constant 0.000000e+00 : f32
      %66 = vector.shape_cast %49 : vector<1x256xf32> to vector<1x256xf32>
      %67 = vector.broadcast %66 : vector<1x256xf32> to vector<24x256xf32>
      %68 = vector.broadcast %cst_29 : f32 to vector<24x256xf32>
      %69 = arith.select %65, %67, %68 : vector<24x256xi1>, vector<24x256xf32>
      %70 = vector.broadcast %2 : vector<24x1xi32> to vector<24x256xi32>
      %71 = vector.broadcast %60 : vector<1x256xi32> to vector<24x256xi32>
      %72 = arith.cmpi eq, %70, %71 : vector<24x256xi32>
      %cst_30 = arith.constant 0.000000e+00 : f32
      %73 = vector.shape_cast %52 : vector<1x256xf32> to vector<1x256xf32>
      %74 = vector.broadcast %73 : vector<1x256xf32> to vector<24x256xf32>
      %75 = vector.broadcast %cst_30 : f32 to vector<24x256xf32>
      %76 = arith.select %72, %74, %75 : vector<24x256xi1>, vector<24x256xf32>
      %77 = arith.addf %69, %76 : vector<24x256xf32>
      %78 = vector.broadcast %3 : vector<128x1xi32> to vector<128x256xi32>
      %79 = vector.broadcast %61 : vector<1x256xi32> to vector<128x256xi32>
      %80 = arith.cmpi eq, %78, %79 : vector<128x256xi32>
      %81 = vector.shape_cast %55 : vector<1x256xf32> to vector<1x256xf32>
      %82 = vector.broadcast %81 : vector<1x256xf32> to vector<128x256xf32>
      %83 = vector.broadcast %cst_3 : f32 to vector<128x256xf32>
      %84 = arith.select %80, %82, %83 : vector<128x256xi1>, vector<128x256xf32>
      %85 = vector.broadcast %3 : vector<128x1xi32> to vector<128x256xi32>
      %86 = vector.broadcast %62 : vector<1x256xi32> to vector<128x256xi32>
      %87 = arith.cmpi eq, %85, %86 : vector<128x256xi32>
      %88 = vector.shape_cast %58 : vector<1x256xf32> to vector<1x256xf32>
      %89 = vector.broadcast %88 : vector<1x256xf32> to vector<128x256xf32>
      %90 = vector.broadcast %cst_3 : f32 to vector<128x256xf32>
      %91 = arith.select %87, %89, %90 : vector<128x256xi1>, vector<128x256xf32>
      %92 = arith.addf %84, %91 : vector<128x256xf32>
      %cst_31 = arith.constant dense<0.000000e+00> : vector<192x256xf32>
      %93 = tpu.matmul %1, %92, %cst_31 {dimension_numbers = #tpu.dot_dimension_numbers<[1], [0], [0], [1], [0, 0, 1, 1], [], []>} : vector<192x128xf32>, vector<128x256xf32>, vector<192x256xf32> -> vector<192x256xf32>
      %94 = vector.shape_cast %93 : vector<192x256xf32> to vector<8x24x256xf32>
      %95 = vector.shape_cast %77 : vector<24x256xf32> to vector<1x24x256xf32>
      %96 = vector.broadcast %95 : vector<1x24x256xf32> to vector<8x24x256xf32>
      %97 = arith.mulf %94, %96 : vector<8x24x256xf32>
      %cst_32 = arith.constant dense<0.000000e+00> : vector<8x256xf32>
      %98 = vector.multi_reduction <add>, %97, %cst_32 [1] : vector<8x24x256xf32> to vector<8x256xf32>
      %c8_i32 = arith.constant 8 : i32
      %99 = arith.muli %arg8, %c8_i32 : i32
      %100 = tpu.assume_multiple %99, 8 : i32
      %101 = arith.index_cast %100 : i32 to index
      %c0_33 = arith.constant 0 : index
      %102 = vector.load %arg7[%101, %c0_33] : memref<72x256xf32, #tpu.memory_space<vmem>>, vector<8x256xf32>
      tpu.vector_store %arg7[%101, %c0_33], %98 {strides = array<i32>} : memref<72x256xf32, #tpu.memory_space<vmem>>, vector<8x256xf32>,
    }
    %c9_i32_4 = arith.constant 9 : i32
    %c0_5 = arith.constant 0 : index
    %c0_6 = arith.constant 0 : index
    %5 = vector.load %arg5[%c0_5, %c0_6] : memref<8x72xf32, #tpu.memory_space<vmem>>, vector<8x72xf32>
    %c0_7 = arith.constant 0 : index
    %c0_8 = arith.constant 0 : index
    %6 = vector.load %arg7[%c0_7, %c0_8] : memref<72x256xf32, #tpu.memory_space<vmem>>, vector<72x256xf32>
    %cst_9 = arith.constant dense<0.000000e+00> : vector<8x256xf32>
    %7 = tpu.matmul %5, %6, %cst_9 {dimension_numbers = #tpu.dot_dimension_numbers<[1], [0], [0], [1], [0, 0, 1, 1], [], []>} : vector<8x72xf32>, vector<72x256xf32>, vector<8x256xf32> -> vector<8x256xf32>
    %c0_10 = arith.constant 0 : index
    %c0_11 = arith.constant 0 : index
    %c0_12 = arith.constant 0 : index
    %8 = vector.load %arg6[%c0_10, %c0_11, %c0_12] : memref<1x8x256xf32, #tpu.memory_space<vmem>>, vector<1x8x256xf32>
    %9 = vector.shape_cast %8 : vector<1x8x256xf32> to vector<8x256xf32>
    %10 = vector.shape_cast %7 : vector<8x256xf32> to vector<1x8x256xf32>
    tpu.vector_store %arg6[%c0_10, %c0_11, %c0_12], %10 {strides = array<i32>} : memref<1x8x256xf32, #tpu.memory_space<vmem>>, vector<1x8x256xf32>,
    return
  }
  func.func @transform_0(%arg0: i32, %arg1: i32) -> (i32, i32, i32) {
    %c0_i32 = arith.constant 0 : i32
    %c0_i32_0 = arith.constant 0 : i32
    %c0_i32_1 = arith.constant 0 : i32
    return %arg0, %c0_i32, %c0_i32_0 : i32, i32, i32
  }
  func.func @transform_1(%arg0: i32, %arg1: i32) -> (i32, i32, i32) {
    %c0_i32 = arith.constant 0 : i32
    %c0_i32_0 = arith.constant 0 : i32
    return %arg0, %c0_i32, %arg1 : i32, i32, i32
  }
  func.func @transform_2(%arg0: i32, %arg1: i32) -> (i32, i32, i32) {
    %c0_i32 = arith.constant 0 : i32
    %c0_i32_0 = arith.constant 0 : i32
    return %arg0, %c0_i32, %arg1 : i32, i32, i32
  }
  func.func @transform_3(%arg0: i32, %arg1: i32) -> (i32, i32) {
    %c0_i32 = arith.constant 0 : i32
    %c0_i32_0 = arith.constant 0 : i32
    %c0_i32_1 = arith.constant 0 : i32
    return %c0_i32, %c0_i32_0 : i32, i32
  }
  func.func @transform_4(%arg0: i32, %arg1: i32) -> (i32, i32, i32) {
    %c0_i32 = arith.constant 0 : i32
    %c0_i32_0 = arith.constant 0 : i32
    return %arg0, %c0_i32, %arg1 : i32, i32, i32
  }
}

</mosaic_0001>

<bundles_post_ra>
// kernel: tpu_custom_call.1
= control target key start
LH: loop header
LB: loop body
LE: loop exit
PB: predicated region body
PF: predicated region fallthrough
CT: control target
= control target key end

     0   :  { %s2687_s0 = inlined_call_operand.hbm [shape: f32[2,192,128], index: 0, kind: input, shape index: {}]   ;;  %s2688_s1 = inlined_call_operand.hbm [shape: f32[2,9,256], index: 1, kind: input, shape index: {}]   ;;  %s2689_s2 = inlined_call_operand.hbm [shape: f32[2,9,256], index: 2, kind: input, shape index: {}]   ;;  %s2690_s3 = inlined_call_operand.hbm [shape: f32[8,72], index: 3, kind: input, shape index: {}]   ;;  %s2691_s4 = inlined_call_operand.hbm [shape: f32[2,8,256], index: 4, kind: output, shape index: {}]  }
   0x1   :  { %2727 = sst [smem:[#allocation40_spill]] %s2687_s0 }
   0x2   :  { %2728 = sst [smem:[#allocation41_spill]] %s2688_s1 }
   0x3   :  { %9 = vsyncpa [#allocation4], 0 }
   0x4   :  { %10 = vsyncpa [#allocation7], 0 }
   0x5   :  { %12 = vsyncpa [#allocation7 + $0x1], 0 }
   0x6   :  { %13 = vsyncpa [#allocation10], 0 }
   0x7   :  { %14 = vsyncpa [#allocation5], 0 }
   0x8   :  { %16 = vsyncpa [#allocation5 + $0x1], 0  ;;  %s1813_s15 = smov 0   ;;  %s1815_s16 = smov 0  }
   0x9   :  { %s1817_s17 = smov 0   ;;  %s1819_s18 = smov 0  }
   0xa   :  { %s1821_s19 = smov 0   ;;  %s1823_s20 = smov 0  }
   0xb LB: > { %2729 = sst [smem:[#allocation16_spill]] %s1767_s19  ;;  %s34_s21 = sadd.s32 1, %s1767_s19  ;;  %s1771_s20 = sphi %s1823_s20, %s22_s20   ;;  %s1767_s19 = sphi %s1821_s19, %s2804_s19   ;;  %s1763_s18 = sphi %s1819_s18, %s2803_s18   ;;  %s1759_s17 = sphi %s1817_s17, %s2807_s17   ;;  %s1755_s16 = sphi %s1815_s16, %s2806_s16   ;;  %s1751_s15 = sphi %s1813_s15, %s2805_s15  }
   0xc   : > { %s41_s22 = sadd.s32 1, %s1759_s17  ;;  %p36_p0 = scmp.ge.s32.totalorder %s34_s21, 2 }
   0xd   : > { %p76_p1 = scmp.ne.s32.totalorder %s1759_s17, %s1755_s16  ;;  %p77_p2 = scmp.eq.s32.totalorder %s1771_s20, 0 }
   0xe   : > { %s2809_s21 = smov (%p36_p0, %s34_s21), 0  ;;  %p1492_p5 = scmp.lt.s32.totalorder %s1771_s20, 2 }
   0xf   : > { %2730 = sst [smem:[#allocation17_spill]] %s2809_s21  ;;  %p78_p4 = por %p77_p2, %p76_p1 }
  0x10   : > { %s38_s23 = ssub.s32 %s1767_s19, %s2809_s21  ;;  %s210_s24 = sand.u32 1, %s1771_s20  }
  0x11   : > { %p39_p6 = scmp.eq.s32.totalorder %s38_s23, 0  ;;  %s212_s25 = sand.u32 1, %s1759_s17  }
  0x12   : > { %s1383_s26 = sshll.u32 %s1767_s19, 9  ;;  %s1863_s28 = sshll.u32 %s212_s25, 5 }
  0x13   : > { %s1861_s27 = scalar_select %p39_p6, %s1759_s17, %s41_s22  }
  0x14   : > { %s2732_s1 = sld [smem:[#allocation41_spill]]  ;;  %p1872_p7 = pnand %p1492_p5, %p78_p4 }
  0x15   : > { %2731 = sst [smem:[#allocation18_spill]] %s1861_s27  ;;  %s214_s7 = scalar_lea.vmem [#allocation6], %s1863_s28 }
  0x16   : > { %s2733_s6 = scalar_select %p1872_p7, 1, 0 }
  0x17   : > { %s223_s8 = sshll.u32 %s214_s7, 4  ;;  %s1879_s9 = scalar_lea.sflag [#allocation7], %s210_s24  ;;  %s1877_s8 = int_to_ptr.vmem [resolvable:$true] %s223_s8 }
  0x18   : > { %p2696_p9 = pneg %p1872_p7 }
  0x1a   : > { %s1870_s5 = scalar_lea.hbm %s2732_s1, %s1383_s26  ;;  %s1564_s13 = scalar_lea.hbm %s2732_s1, 1024 }
  0x1b   : > { %s1559_s10 = scalar_lea.hbm %s1870_s5, 512  ;;  %p1565_p12 = scmp.lt.u32.totalorder %s1870_s5, %s2732_s1 }
  0x1c   : > { %p1560_p8 = scmp.ne.s32.totalorder %s1870_s5, %s1559_s10  ;;  %p1566_p13 = scmp.lt.u32.totalorder %s1564_s13, %s1559_s10 }
  0x1d   : > { %p1568_p2 = scmp.lt.u32.totalorder %s1559_s10, %s1870_s5 }
  0x1e   : > { %p1562_p10 = pnand %p2696_p9, %p1560_p8  ;;  %p1567_p0 = por %p1566_p13, %p1565_p12 }
  0x20   : > { %p1563_p11 = pneg %p1562_p10  ;;  %p1569_p4 = por %p1568_p2, %p1567_p0 }
  0x22   : > { %p1570_p5 = pnand %p1569_p4, %p1563_p11 }
  0x24   : > { %1573 = shalt.err (!%p1570_p5)
}
  0x25   : > { %s1574_s23 = scalar_lea.vmem %s1877_s8, 512  ;;  %s1777_s24 = smov [#allocation6]  }
  0x26   : > { %p1575_p6 = scmp.ne.s32.totalorder %s1877_s8, %s1574_s23  ;;  %s1579_s25 = sshll.u32 %s1777_s24, 4  ;;  %s1580_s25 = int_to_ptr.vmem [resolvable:$false] %s1579_s25 }
  0x27   : > { %s1581_s29 = scalar_lea.vmem %s1580_s25, 1024  ;;  %p1582_p3 = scmp.lt.s32.totalorder %s1877_s8, %s1580_s25 }
  0x28   : > { %p1577_p8 = pnand %p1575_p6, %p2696_p9  ;;  %p1583_p12 = scmp.lt.s32.totalorder %s1581_s29, %s1574_s23 }
  0x2a   : > { %p1578_p10 = pneg %p1577_p8  ;;  %p1584_p13 = por %p1583_p12, %p1582_p3 }
  0x2c   : > { %p1585_p0 = pnand %p1584_p13, %p1578_p10 }
  0x2e   : > { %1588 = shalt.err (!%p1585_p0)
}
  0x2f   : > { %s2692_s30 = smov 256   ;;  %s2693_s7 = smov 16  }
  0x30   : > { %1483 = dma.hbm_to_vmem [thread:$0]  (!%p1872_p7), %s1870_s5, 512, %s1877_s8, %s1879_s9, %s2692_s30, %s2692_s30, %s2693_s7  }
  0x31   : > { %s1915_s12 = scalar_lea.hbm %s2689_s2, %s1383_s26  ;;  %s237_s13 = scalar_lea.vmem [#allocation8], %s1863_s28 }
  0x32   : > { %s246_s14 = sshll.u32 %s237_s13, 4  ;;  %s1921_s22 = sadd.s32 4294967295, %s1771_s20   ;;  %s1918_s14 = int_to_ptr.vmem [resolvable:$true] %s246_s14 }
  0x33   : > { %s1356_s23 = sadd.s32 4294967294, %s1771_s20   ;;  %p54_p3 = scmp.ne.s32.totalorder %s1755_s16, %s1751_s15 }
  0x34   : > { %p2695_p11 = scmp.eq.s32.totalorder %s1921_s22, 0  ;;  %p157_p2 = scmp.eq.s32.totalorder %s1921_s22, 1 }
  0x35   : > { %p163_p4 = scmp.eq.s32.totalorder %s1356_s23, 1  ;;  %p1357_p5 = scmp.ge.s32.totalorder %s1771_s20, 1 }
  0x36   : > { %p1931_p6 = por %p2695_p11, %p54_p3  ;;  %p1938_p8 = por %p157_p2, %p76_p1 }
  0x37   : > { %p1942_p10 = por %p163_p4, %p54_p3  ;;  %p170_p12 = scmp.lt.s32.totalorder %s1771_s20, 3 }
  0x38   : > { %s2734_s26 = scalar_select %p1931_p6, 1, 0 }
  0x39   : > { %s2735_s28 = scalar_select %p1938_p8, 1, 0 }
  0x3a   : > { %s2736_s5 = scalar_select %p1942_p10, 1, 0 }
  0x3b   : > { %s1452_s8 = smul.u32 3072, %s1763_s18  ;;  %p1948_p13 = pnand %p1357_p5, %p170_p12 }
  0x3c   : > { %s1780_s25 = smov [#allocation3]   ;;  %s2738_s0 = sld [smem:[#allocation40_spill]] }
  0x3d   : > { %s2737_s24 = scalar_select %p1948_p13, 1, 0 }
  0x3e   : > { %s185_s29 = sshll.u32 %s1780_s25, 4  ;;  %p1473_p1 = pneg %p1948_p13  ;;  %s1957_s29 = int_to_ptr.vmem [resolvable:$true] %s185_s29 }
  0x3f   : > { %s1781_s25 = smov [#allocation9]  }
  0x40   : > { %p1963_p0 = pnand %p1473_p1, %p1931_p6  ;;  %s199_s30 = sshll.u32 %s1781_s25, 4  ;;  %s1973_s30 = int_to_ptr.vmem [resolvable:$true] %s199_s30 }
  0x41   : > { %p1969_p3 = pnand %p1473_p1, %p2695_p11 }
  0x42   : > { %s1955_s13 = scalar_lea.hbm %s2738_s0, %s1452_s8  ;;  %p1591_p4 = pneg %p1963_p0 }
  0x43   : > { %s2740_s8 = scalar_select %p1969_p3, 1, 0 }
  0x44   : > { %s1589_s10 = scalar_lea.hbm %s1955_s13, 3072  ;;  %s1594_s1 = scalar_lea.hbm %s2738_s0, 6144 }
  0x45   : > { %p1590_p2 = scmp.ne.s32.totalorder %s1955_s13, %s1589_s10  ;;  %p1595_p1 = scmp.lt.u32.totalorder %s1955_s13, %s2738_s0 }
  0x46   : > { %p1596_p11 = scmp.lt.u32.totalorder %s1594_s1, %s1589_s10  ;;  %p1598_p10 = scmp.lt.u32.totalorder %s1589_s10, %s1955_s13 }
  0x47   : > { %p1592_p5 = pnand %p1591_p4, %p1590_p2 }
  0x48   : > { %p1597_p9 = por %p1596_p11, %p1595_p1 }
  0x49   : > { %p1593_p12 = pneg %p1592_p5 }
  0x4a   : > { %p1599_p8 = por %p1598_p10, %p1597_p9 }
  0x4c   : > { %p1600_p6 = pnand %p1599_p8, %p1593_p12 }
  0x4e   : > { %1603 = shalt.err (!%p1600_p6)
}
  0x4f   : > { %s1604_s19 = scalar_lea.vmem %s1957_s29, 3072  ;;  %p1612_p7 = scmp.lt.s32.totalorder %s1957_s29, %s1957_s29 }
  0x50   : > { %p1605_p2 = scmp.ne.s32.totalorder %s1957_s29, %s1604_s19  ;;  %p1613_p3 = scmp.lt.s32.totalorder %s1604_s19, %s1604_s19 }
  0x52   : > { %p1607_p5 = pnand %p1605_p2, %p1591_p4  ;;  %p1614_p1 = por %p1613_p3, %p1612_p7 }
  0x54   : > { %p1608_p13 = pneg %p1607_p5 }
  0x56   : > { %p1615_p11 = pnand %p1614_p1, %p1608_p13 }
  0x58   : > { %1618 = shalt.err (!%p1615_p11)
}
  0x59   : > { %s1782_s1 = smov 128   ;;  %s1783_s21 = smov 8  }
  0x5a   : > { %1476 = dma.hbm_to_vmem [thread:$0]  (!%p1963_p0), %s1955_s13, 3072, %s1957_s29, [#allocation4], %s1782_s1, %s1782_s1, %s1783_s21  }
  0x5b   : > { %s1619_s11 = scalar_lea.hbm %s2690_s3, 128  ;;  %p2741_p6 = scmp.ne.s32.totalorder %s2740_s8, 0 }
  0x5c   : > { %p1620_p9 = scmp.ne.s32.totalorder %s2690_s3, %s1619_s11  ;;  %p1626_p13 = scmp.lt.u32.totalorder %s1619_s11, %s2690_s3 }
  0x5d   : > { %p1621_p7 = pneg %p2741_p6 }
  0x5f   : > { %p1622_p8 = pnand %p1621_p7, %p1620_p9 }
  0x61   : > { %p1623_p10 = pneg %p1622_p8 }
  0x63   : > { %p1628_p3 = pnand %p1626_p13, %p1623_p10 }
  0x65   : > { %1631 = shalt.err (!%p1628_p3)
}
  0x66   : > { %s1632_s29 = scalar_lea.vmem %s1973_s30, 128  ;;  %p1640_p2 = scmp.lt.s32.totalorder %s1973_s30, %s1973_s30 }
  0x67   : > { %p1633_p0 = scmp.ne.s32.totalorder %s1973_s30, %s1632_s29  ;;  %p1641_p5 = scmp.lt.s32.totalorder %s1632_s29, %s1632_s29 }
  0x69   : > { %p1635_p4 = pnand %p1633_p0, %p1621_p7  ;;  %p1642_p1 = por %p1641_p5, %p1640_p2 }
  0x6b   : > { %p1636_p12 = pneg %p1635_p4 }
  0x6d   : > { %p1643_p11 = pnand %p1642_p1, %p1636_p12 }
  0x6f   : > { %1646 = shalt.err (!%p1643_p11)
}
  0x70   : > { %1479 = dma.hbm_to_vmem [thread:$0]  (!%p2741_p6), %s2690_s3, 128, %s1973_s30, [#allocation10]  }
  0x71   : > { %s1647_s13 = scalar_lea.hbm %s1915_s12, 512  ;;  %p2742_p7 = scmp.ne.s32.totalorder %s2733_s6, 0 }
  0x72   : > { %p1648_p9 = scmp.ne.s32.totalorder %s1915_s12, %s1647_s13  ;;  %s1652_s8 = scalar_lea.hbm %s2689_s2, 1024 }
  0x73   : > { %p2743_p8 = pneg %p2742_p7  ;;  %p1653_p3 = scmp.lt.u32.totalorder %s1915_s12, %s2689_s2 }
  0x74   : > { %p1654_p0 = scmp.lt.u32.totalorder %s1652_s8, %s1647_s13  ;;  %p1656_p12 = scmp.lt.u32.totalorder %s1647_s13, %s1915_s12 }
  0x75   : > { %p1650_p10 = pnand %p1648_p9, %p2743_p8 }
  0x76   : > { %p1655_p4 = por %p1654_p0, %p1653_p3 }
  0x77   : > { %p1651_p13 = pneg %p1650_p10 }
  0x78   : > { %p1657_p2 = por %p1656_p12, %p1655_p4 }
  0x7a   : > { %p1658_p5 = pnand %p1657_p2, %p1651_p13 }
  0x7c   : > { %1661 = shalt.err (!%p1658_p5)
}
  0x7d   : > { %s1662_s30 = scalar_lea.vmem %s1918_s14, 512  ;;  %p2744_p1 = pmov %p2743_p8 }
  0x7e   : > { %p1663_p6 = scmp.ne.s32.totalorder %s1918_s14, %s1662_s30  ;;  %s1784_s10 = smov [#allocation8]  }
  0x7f   : > { %s1667_s11 = sshll.u32 %s1784_s10, 4  ;;  %s1668_s11 = int_to_ptr.vmem [resolvable:$false] %s1667_s11 }
  0x80   : > { %p1665_p11 = pnand %p1663_p6, %p2744_p1  ;;  %s1669_s25 = scalar_lea.vmem %s1668_s11, 1024 }
  0x81   : > { %p1670_p8 = scmp.lt.s32.totalorder %s1918_s14, %s1668_s11  ;;  %p1671_p10 = scmp.lt.s32.totalorder %s1669_s25, %s1662_s30 }
  0x82   : > { %p1666_p9 = pneg %p1665_p11 }
  0x83   : > { %p1672_p3 = por %p1671_p10, %p1670_p8 }
  0x85   : > { %p1673_p0 = pnand %p1672_p3, %p1666_p9 }
  0x87   : > { %1676 = shalt.err (!%p1673_p0)
}
  0x88   : > { %s2745_s19 = smov 16   ;;  %s2746_s29 = smov 256  }
  0x89   : > { %1486 = dma.hbm_to_vmem [thread:$0]  (!%p2742_p7), %s1915_s12, 512, %s1918_s14, %s1879_s9, %s2746_s29, %s2746_s29, %s2745_s19  }
  0x8a   : > { %p2747_p13 = scmp.ne.s32.totalorder %s2737_s24, 0 }
  0x8c   : > { %258 = sbr.rel (%p2747_p13) target bundleno = 775 (0x307), region = 36 }
  0x93   : > { %p2748_p4 = scmp.ne.s32.totalorder %s2734_s26, 0 }
  0x95   : > { %1734 = dma.done.wait (%p2748_p4), [#allocation4], 3072  }
  0x96   : > { %1736 = vsyncadd (%p2748_p4), [#allocation4], 4294964224  ;;  %s264_s6 = sand.u32 1, %s1921_s22   ;;  %s2057_s0 = sand.u32 1, %s1755_s16  }
  0x97   : > { %s1368_s27 = sshll.u32 %s2057_s0, 5  ;;  %s265_s13 = scalar_lea.sflag [#allocation7], %s264_s6 }
  0x98   : > { %s2060_s23 = scalar_lea.vmem [#allocation6], %s1368_s27 }
  0x99   : > { %1738 = dma.done.wait (%p2748_p4), %s265_s13, 1024  }
  0x9a   : > { %1740 = vsyncadd (%p2748_p4), %s265_s13, 4294966272  ;;  %s2066_s9 = scalar_lea.vmem [#allocation8], %s1368_s27  ;;  %p2749_p7 = scmp.eq.s32.totalorder %s1921_s22, 0 }
  0x9c   : > { %1742 = dma.done.wait (%p2749_p7), [#allocation10], 128   ;;  %p2750_p12 = pmov %p2749_p7 }
  0x9d   : > { %s1371_s12 = sshll.u32 %s2057_s0, 4  ;;  %v338_v0 = vlaneseq  ;;  %v2111_v14 = vld [vmem:[#allocation3] sm:$0xff]  ;;  %v2113_v15 = vld [vmem:[#allocation3 + $0x8] sm:$0xff]  ;;  %v2115_v16 = vld [vmem:[#allocation3 + $0x10] sm:$0xff]  ;;  %s2172_s22 = smov 0  }
  0x9e   : > { %1744 = vsyncadd (%p2750_p12), [#allocation10], 4294967168  ;;  %2764 = vst [vmem:[#allocation32_spill] sm:$0xff] %v2111_v14  ;;  %v2126_v20 = vld [vmem:[#allocation3 + $0x18] sm:$0xff]  ;;  %v2128_v21 = vld [vmem:[#allocation3 + $0x20] sm:$0xff]  ;;  %s2170_s14 = scalar_lea.vmem [#allocation11], %s1371_s12 }
  0x9f   : > { %v2073_v1 = vshrl.u32 %v338_v0, 7  ;;  %2765 = vst [vmem:[#allocation33_spill] sm:$0xff] %v2113_v15  ;;  %2766 = vst [vmem:[#allocation34_spill] sm:$0xff] %v2115_v16  ;;  %v2130_v22 = vld [vmem:[#allocation3 + $0x28] sm:$0xff]  ;;  %v2132_v23 = vld [vmem:[#allocation3 + $0x30] sm:$0xff] }
  0xa0   : > { %v2134_v24 = vld [vmem:[#allocation3 + $0x38] sm:$0xff]  ;;  %v2136_v25 = vld [vmem:[#allocation3 + $0x40] sm:$0xff]  ;;  %v2138_v26 = vld [vmem:[#allocation3 + $0x48] sm:$0xff] }
  0xa1   : > { %2751 = vst [vmem:[#allocation19_spill] sm:$0xff] %v2073_v1  ;;  %v2076_v2 = vadd.s32 8, %v2073_v1  ;;  %v2079_v3 = vadd.s32 16, %v2073_v1  ;;  %v2082_v4 = vadd.s32 24, %v2073_v1  ;;  %v2085_v5 = vadd.s32 32, %v2073_v1  ;;  %v2140_v27 = vld [vmem:[#allocation3 + $0x50] sm:$0xff] }
  0xa2   : > { %v2088_v6 = vadd.s32 40, %v2073_v1  ;;  %v2091_v7 = vadd.s32 48, %v2073_v1  ;;  %v2094_v8 = vadd.s32 56, %v2073_v1  ;;  %v2097_v9 = vadd.s32 64, %v2073_v1  ;;  %v2142_v28 = vld [vmem:[#allocation3 + $0x58] sm:$0xff]  ;;  %v2144_v29 = vld [vmem:[#allocation3 + $0x60] sm:$0xff] }
  0xa3   : > { %2752 = vst [vmem:[#allocation20_spill] sm:$0xff] %v2076_v2  ;;  %2753 = vst [vmem:[#allocation21_spill] sm:$0xff] %v2079_v3  ;;  %v2100_v10 = vadd.s32 72, %v2073_v1  ;;  %v2103_v11 = vadd.s32 80, %v2073_v1  ;;  %v2106_v12 = vadd.s32 88, %v2073_v1  ;;  %v2109_v13 = vadd.s32 96, %v2073_v1 }
  0xa4   : > { %2754 = vst [vmem:[#allocation22_spill] sm:$0xff] %v2082_v4  ;;  %2755 = vst [vmem:[#allocation23_spill] sm:$0xff] %v2085_v5  ;;  %v2118_v17 = vadd.s32 104, %v2073_v1  ;;  %v2121_v18 = vadd.s32 112, %v2073_v1  ;;  %v2124_v19 = vadd.s32 120, %v2073_v1  ;;  %v2146_v30 = vld [vmem:[#allocation3 + $0x68] sm:$0xff] }
  0xa5   : > { %2756 = vst [vmem:[#allocation24_spill] sm:$0xff] %v2088_v6  ;;  %2757 = vst [vmem:[#allocation25_spill] sm:$0xff] %v2091_v7  ;;  %v2148_v31 = vld [vmem:[#allocation3 + $0x70] sm:$0xff]  ;;  %v2150_v32 = vld [vmem:[#allocation3 + $0x78] sm:$0xff] }
  0xa6   : > { %2758 = vst [vmem:[#allocation26_spill] sm:$0xff] %v2094_v8  ;;  %2759 = vst [vmem:[#allocation27_spill] sm:$0xff] %v2097_v9  ;;  %v2152_v33 = vld [vmem:[#allocation3 + $0x80] sm:$0xff]  ;;  %v2154_v34 = vld [vmem:[#allocation3 + $0x88] sm:$0xff] }
  0xa7   : > { %2760 = vst [vmem:[#allocation28_spill] sm:$0xff] %v2100_v10  ;;  %2761 = vst [vmem:[#allocation29_spill] sm:$0xff] %v2103_v11  ;;  %v2156_v35 = vld [vmem:[#allocation3 + $0x90] sm:$0xff]  ;;  %v2158_v36 = vld [vmem:[#allocation3 + $0x98] sm:$0xff] }
  0xa8   : > { %2762 = vst [vmem:[#allocation30_spill] sm:$0xff] %v2106_v12  ;;  %2763 = vst [vmem:[#allocation31_spill] sm:$0xff] %v2109_v13  ;;  %v2160_v37 = vld [vmem:[#allocation3 + $0xa0] sm:$0xff]  ;;  %v2162_v38 = vld [vmem:[#allocation3 + $0xa8] sm:$0xff] }
  0xa9   : > { %2767 = vst [vmem:[#allocation35_spill] sm:$0xff] %v2118_v17  ;;  %2768 = vst [vmem:[#allocation36_spill] sm:$0xff] %v2121_v18  ;;  %v2164_v39 = vld [vmem:[#allocation3 + $0xb0] sm:$0xff]  ;;  %v2166_v40 = vld [vmem:[#allocation3 + $0xb8] sm:$0xff] }
  0xaa   : > { %2769 = vst [vmem:[#allocation37_spill] sm:$0xff] %v2142_v28  ;;  %2770 = vst [vmem:[#allocation38_spill] sm:$0xff] %v2166_v40 }
  0xab LB: >> { %v2781_v5 = vld [vmem:[#allocation23_spill] sm:$0xff]  ;;  %v2782_v4 = vld [vmem:[#allocation22_spill] sm:$0xff]  ;;  %v2783_v3 = vld [vmem:[#allocation21_spill] sm:$0xff]  ;;  %v2705_v41 = vmov 0.0   ;;  %s361_s26 = sshra.s32 %s1775_s22, 3  ;;  %s364_s24 = sand.u32 7, %s1775_s22  ;;  %s1775_s22 = sphi %s2172_s22, %s360_s22  }
  0xac   : >> { %v2779_v7 = vld [vmem:[#allocation25_spill] sm:$0xff]  ;;  %v2780_v6 = vld [vmem:[#allocation24_spill] sm:$0xff]  ;;  %v2784_v1 = vld [vmem:[#allocation19_spill] sm:$0xff]  ;;  %730 = vmatprep.mubr.f32.mxu0 %v2705_v41  ;;  %802 = vmatprep.mubr.f32.mxu1 %v2705_v41  ;;  %s1385_s1 = sshll.u32 %s361_s26, 4  ;;  %s1374_s30 = sshll.u32 %s1775_s22, 3 }
  0xad   : >> { %v2777_v9 = vld [vmem:[#allocation27_spill] sm:$0xff]  ;;  %v2778_v8 = vld [vmem:[#allocation26_spill] sm:$0xff]  ;;  %v2785_v2 = vld [vmem:[#allocation20_spill] sm:$0xff]  ;;  %s367_s8 = sadd.s32 %s1385_s1, %s364_s24  ;;  %v2186_v59 = vsub.s32 1, %v2784_v1  ;;  %v2189_v60 = vsub.s32 0, %v2784_v1  ;;  %s2615_s10 = sshra.s32 %s1374_s30, 3 }
  0xae   : >> { %v2775_v11 = vld [vmem:[#allocation29_spill] sm:$0xff]  ;;  %v2776_v10 = vld [vmem:[#allocation28_spill] sm:$0xff]  ;;  %s370_s21 = scalar_lea.vmem %s2066_s9, %s367_s8 [#allocation8]  ;;  %s368_s7 = scalar_lea.vmem %s2060_s23, %s367_s8 [#allocation6]  ;;  %v2793_v16 = vld [vmem:[#allocation34_spill] sm:$0xff] }
  0xaf   : >> { %v2773_v13 = vld [vmem:[#allocation31_spill] sm:$0xff]  ;;  %v2774_v12 = vld [vmem:[#allocation30_spill] sm:$0xff]  ;;  %v371_v42 = vld [vmem:[%s370_s21] ss:$8 sm:$0x3]  ;;  %2786 = vst [vmem:[#allocation39_spill] sm:$0xff] %v2186_v59 }
  0xb0   : >> { %v2771_v18 = vld [vmem:[#allocation36_spill] sm:$0xff]  ;;  %v2772_v17 = vld [vmem:[#allocation35_spill] sm:$0xff]  ;;  %v373_v44 = vfloor.f32 %v371_v42  ;;  %v386_v45 = vmax.f32 %v371_v42, 0.0  ;;  %v2792_v15 = vld [vmem:[#allocation33_spill] sm:$0xff]  ;;  %s1386_s11 = sshll.u32 %s2615_s10, 4  ;;  %s360_s22 = sadd.s32 1, %s1775_s22  }
  0xb1   : >> { %v369_v43 = vld [vmem:[%s368_s7] ss:$8 sm:$0x3]  ;;  %s1095_s25 = scalar_lea.vmem [#allocation2], %s1386_s11  ;;  %p357_p2 = scmp.ge.s32.totalorder %s360_s22, 9  }
  0xb2   : >> { %v372_v46 = vfloor.f32 %v369_v43  ;;  %v375_v47 = vadd.f32 1.0, %v373_v44  ;;  %v380_v48 = vmax.f32 %v373_v44, 0.0  ;;  %v387_v49 = vmin.f32 %v386_v45, 17.0  ;;  %v2790_v14 = vld [vmem:[#allocation32_spill] sm:$0xff]  ;;  %s1387_s19 = sshll.u32 (%p357_p2), %s1763_s18, 8  ;;  %s1211_s29 = sshll.u32 (%p357_p2), %s2170_s14, 4  ;;  %s2638_s29 = int_to_ptr.vmem [resolvable:$true] %s1211_s29 }
  0xb3   : >> { %v384_v52 = vmax.f32 %v369_v43, 0.0  ;;  %s2636_s13 = scalar_lea.hbm (%p357_p2), %s2691_s4, %s1387_s19  ;;  %s1195_s23 = scalar_lea.sflag (%p357_p2), [#allocation5], %s2057_s0 }
  0xb4   : >> { %v374_v50 = vadd.f32 1.0, %v372_v46  ;;  %v2183_v51 = vmax.f32 %v372_v46, 0.0  ;;  %v381_v53 = vmin.f32 %v380_v48, 17.0  ;;  %v382_v54 = vmax.f32 %v375_v47, 0.0  ;;  %s1677_s9 = scalar_lea.vmem (%p357_p2), %s2638_s29, 256  ;;  %p2799_p6 = scmp.ne.s32.totalorder (%p357_p2), %s2735_s28, 0 }
  0xb5   : >> { %v2194_v63 = vmin.f32 %v384_v52, 17.0  ;;  %p1678_p5 = scmp.ne.s32.totalorder (%p357_p2), %s2638_s29, %s1677_s9  ;;  %s1787_s18 = smov (%p357_p2), [#allocation11]  }
  0xb6   : >> { %v378_v55 = vmax.f32 %v374_v50, 0.0  ;;  %v383_v56 = vmin.f32 %v382_v54, 17.0  ;;  %v392_v57 = vsub.f32 %v381_v53, %v387_v49  ;;  %v1457_v58 = vtrunc.f32 %v381_v53  ;;  %s1681_s12 = sshll.u32 (%p357_p2), %s1787_s18, 4  ;;  %s1682_s12 = int_to_ptr.vmem [resolvable:$false] %s1681_s12 }
  0xb7   : >> { %v2707_v61 = vmin.f32 %v2183_v51, 17.0  ;;  %p1679_p1 = pnand (%p357_p2), %p1678_p5, %p2799_p6  ;;  %s1683_s22 = scalar_lea.vmem (%p357_p2), %s1682_s12, 512 }
  0xb8   : >> { %v2192_v62 = vmin.f32 %v378_v55, 17.0  ;;  %v393_v0 = vadd.f32 1.0, %v392_v57  ;;  %v394_v42 = vsub.f32 %v383_v56, %v387_v49  ;;  %v1458_v43 = vcvt.f32.s32 %v1457_v58  ;;  %p1684_p9 = scmp.lt.s32.totalorder (%p357_p2), %s2638_s29, %s1682_s12  ;;  %p1685_p8 = scmp.lt.s32.totalorder (%p357_p2), %s1683_s22, %s1677_s9 }
  0xb9   : >> { %v1459_v44 = vtrunc.f32 %v383_v56  ;;  %v2211_v49 = vsub.f32 %v2707_v61, %v2194_v63  ;;  %p1680_p11 = pneg (%p357_p2), %p1679_p1 }
  0xba   : >> { %v395_v45 = vsub.f32 1.0, %v394_v42  ;;  %v2197_v47 = vrot.slane %v1458_v43, %v2186_v59  ;;  %v2200_v48 = vrot.slane %v393_v0, %v2186_v59  ;;  %v2203_v50 = vrot.slane %v1458_v43, %v2189_v60  ;;  %p1686_p10 = por (%p357_p2), %p1685_p8, %p1684_p9 }
  0xbb   : >> { %v1460_v46 = vcvt.f32.s32 %v1459_v44  ;;  %v2206_v53 = vrot.slane %v393_v0, %v2189_v60 }
  0xbc   : >> { %vm477_vm0 = vcmp.eq.s32.totalorder %v2784_v1, %v2197_v47  ;;  %vm479_vm1 = vcmp.eq.s32.totalorder %v2785_v2, %v2197_v47  ;;  %v2223_v55 = vrot.slane %v395_v45, %v2186_v59  ;;  %vm476_vm2 = vcmp.eq.s32.totalorder %v2784_v1, %v2203_v50  ;;  %p1687_p3 = pnand (%p357_p2), %p1686_p10, %p1680_p11 }
  0xbd   : >> { %v2220_v54 = vrot.slane %v1460_v46, %v2186_v59  ;;  %v520_v56 = vsel %vm477_vm0, %v2200_v48, 0.0  ;;  %v522_v57 = vsel %vm479_vm1, %v2200_v48, 0.0  ;;  %vm478_vm3 = vcmp.eq.s32.totalorder %v2785_v2, %v2203_v50 }
  0xbe   : >> { %v519_v58 = vsel %vm476_vm2, %v2206_v53, 0.0  ;;  %v521_v0 = vsel %vm478_vm3, %v2206_v53, 0.0  ;;  %v2240_v44 = vrot.slane %v1460_v46, %v2189_v60  ;;  %v2243_v41 = vrot.slane %v395_v45, %v2189_v60 }
  0xbf   : >> { %vm560_vm4 = vcmp.eq.s32.totalorder %v2784_v1, %v2220_v54  ;;  %vm562_vm5 = vcmp.eq.s32.totalorder %v2785_v2, %v2220_v54  ;;  %vm481_vm6 = vcmp.eq.s32.totalorder %v2783_v3, %v2197_v47  ;;  %vm483_vm7 = vcmp.eq.s32.totalorder %v2782_v4, %v2197_v47 }
  0xc0   : >> { %v603_v42 = vsel %vm560_vm4, %v2223_v55, 0.0  ;;  %v605_v43 = vsel %vm562_vm5, %v2223_v55, 0.0  ;;  %vm559_vm8 = vcmp.eq.s32.totalorder %v2784_v1, %v2240_v44  ;;  %vm561_vm9 = vcmp.eq.s32.totalorder %v2785_v2, %v2240_v44 }
  0xc1   : >> { %v635_v52 = vadd.f32 %v603_v42, %v520_v56  ;;  %v637_v61 = vadd.f32 %v605_v43, %v522_v57  ;;  %v524_v46 = vsel %vm481_vm6, %v2200_v48, 0.0  ;;  %v526_v59 = vsel %vm483_vm7, %v2200_v48, 0.0 }
  0xc2   : >> { %v602_v56 = vsel %vm559_vm8, %v2243_v41, 0.0  ;;  %v604_v57 = vsel %vm561_vm9, %v2243_v41, 0.0  ;;  %vm564_vm10 = vcmp.eq.s32.totalorder %v2783_v3, %v2220_v54  ;;  %vm566_vm11 = vcmp.eq.s32.totalorder %v2782_v4, %v2220_v54 }
  0xc3   : >> { %v1388_v45 = vpack.c.bf16 %v637_v61, %v635_v52  ;;  %v634_v42 = vadd.f32 %v602_v56, %v519_v58  ;;  %v636_v43 = vadd.f32 %v604_v57, %v521_v0  ;;  %v607_v40 = vsel %vm564_vm10, %v2223_v55, 0.0 }
  0xc4   : >> { %v609_v2 = vsel %vm566_vm11, %v2223_v55, 0.0  ;;  %v639_v28 = vadd.f32 %v607_v40, %v524_v46  ;;  %vm480_vm12 = vcmp.eq.s32.totalorder %v2783_v3, %v2203_v50  ;;  %vm482_vm13 = vcmp.eq.s32.totalorder %v2782_v4, %v2203_v50 }
  0xc5   : >> { %1389 = vmatprep.subr.bf16.mxu0 %v1388_v45  ;;  %1436 = vmatprep.subr.bf16.mxu1 %v1388_v45  ;;  %v1390_v61 = vpack.c.bf16 %v636_v43, %v634_v42  ;;  %v641_v52 = vadd.f32 %v609_v2, %v526_v59  ;;  %v523_v58 = vsel %vm480_vm12, %v2206_v53, 0.0  ;;  %v525_v0 = vsel %vm482_vm13, %v2206_v53, 0.0 }
  0xc6   : >> { %vm563_vm14 = vcmp.eq.s32.totalorder %v2783_v3, %v2240_v44  ;;  %vm565_vm15 = vcmp.eq.s32.totalorder %v2782_v4, %v2240_v44  ;;  %vm485_vm0 = vcmp.eq.s32.totalorder %v2781_v5, %v2197_v47  ;;  %vm487_vm1 = vcmp.eq.s32.totalorder %v2780_v6, %v2197_v47 }
  0xc7   : >> { %1391 = vmatpush1.bf16.msra.mxu0 %v1390_v61  ;;  %1444 = vmatpush1.bf16.msra.mxu1 %v1390_v61  ;;  %v1392_v40 = vpack.c.bf16 %v641_v52, %v639_v28  ;;  %v606_v2 = vsel %vm563_vm14, %v2243_v41, 0.0  ;;  %v608_v59 = vsel %vm565_vm15, %v2243_v41, 0.0  ;;  %v528_v46 = vsel %vm485_vm0, %v2200_v48, 0.0 }
  0xc8   : >> { %v638_v45 = vadd.f32 %v606_v2, %v523_v58  ;;  %v640_v56 = vadd.f32 %v608_v59, %v525_v0  ;;  %v530_v57 = vsel %vm487_vm1, %v2200_v48, 0.0  ;;  %vm568_vm2 = vcmp.eq.s32.totalorder %v2781_v5, %v2220_v54 }
  0xc9   : >> { %1393 = vmatprep.subr.bf16.mxu0 %v1392_v40  ;;  %1437 = vmatprep.subr.bf16.mxu1 %v1392_v40  ;;  %vm570_vm3 = vcmp.eq.s32.totalorder %v2780_v6, %v2220_v54  ;;  %v611_v28 = vsel %vm568_vm2, %v2223_v55, 0.0  ;;  %vm484_vm4 = vcmp.eq.s32.totalorder %v2781_v5, %v2203_v50  ;;  %vm486_vm5 = vcmp.eq.s32.totalorder %v2780_v6, %v2203_v50 }
  0xca   : >> { %v1394_v42 = vpack.c.bf16 %v640_v56, %v638_v45  ;;  %v613_v43 = vsel %vm570_vm3, %v2223_v55, 0.0  ;;  %v643_v61 = vadd.f32 %v611_v28, %v528_v46  ;;  %v527_v52 = vsel %vm484_vm4, %v2206_v53, 0.0 }
  0xcb   : >> { %v645_v58 = vadd.f32 %v613_v43, %v530_v57  ;;  %v529_v0 = vsel %vm486_vm5, %v2206_v53, 0.0  ;;  %vm567_vm6 = vcmp.eq.s32.totalorder %v2781_v5, %v2240_v44  ;;  %vm569_vm7 = vcmp.eq.s32.totalorder %v2780_v6, %v2240_v44 }
  0xcc   : >> { %1395 = vmatpush1.bf16.msra.mxu0 %v1394_v42  ;;  %1445 = vmatpush1.bf16.msra.mxu1 %v1394_v42  ;;  %v610_v40 = vsel %vm567_vm6, %v2243_v41, 0.0  ;;  %v612_v2 = vsel %vm569_vm7, %v2243_v41, 0.0  ;;  %vm489_vm8 = vcmp.eq.s32.totalorder %v2779_v7, %v2197_v47  ;;  %vm491_vm9 = vcmp.eq.s32.totalorder %v2778_v8, %v2197_v47 }
  0xcd   : >> { %v1396_v59 = vpack.c.bf16 %v645_v58, %v643_v61  ;;  %v642_v46 = vadd.f32 %v610_v40, %v527_v52  ;;  %v644_v45 = vadd.f32 %v612_v2, %v529_v0  ;;  %v532_v56 = vsel %vm489_vm8, %v2200_v48, 0.0 }
  0xce   : >> { %v534_v57 = vsel %vm491_vm9, %v2200_v48, 0.0  ;;  %vm572_vm10 = vcmp.eq.s32.totalorder %v2779_v7, %v2220_v54  ;;  %vm574_vm11 = vcmp.eq.s32.totalorder %v2778_v8, %v2220_v54  ;;  %vm488_vm12 = vcmp.eq.s32.totalorder %v2779_v7, %v2203_v50 }
  0xcf   : >> { %1397 = vmatprep.subr.bf16.mxu0 %v1396_v59  ;;  %1438 = vmatprep.subr.bf16.mxu1 %v1396_v59  ;;  %v1398_v28 = vpack.c.bf16 %v644_v45, %v642_v46  ;;  %v615_v42 = vsel %vm572_vm10, %v2223_v55, 0.0  ;;  %v617_v43 = vsel %vm574_vm11, %v2223_v55, 0.0  ;;  %vm490_vm13 = vcmp.eq.s32.totalorder %v2778_v8, %v2203_v50 }
  0xd0   : >> { %v647_v61 = vadd.f32 %v615_v42, %v532_v56  ;;  %v649_v52 = vadd.f32 %v617_v43, %v534_v57  ;;  %v531_v58 = vsel %vm488_vm12, %v2206_v53, 0.0  ;;  %v533_v0 = vsel %vm490_vm13, %v2206_v53, 0.0 }
  0xd1   : >> { %1399 = vmatpush1.bf16.msra.mxu0 %v1398_v28  ;;  %1446 = vmatpush1.bf16.msra.mxu1 %v1398_v28  ;;  %vm571_vm14 = vcmp.eq.s32.totalorder %v2779_v7, %v2240_v44  ;;  %vm573_vm15 = vcmp.eq.s32.totalorder %v2778_v8, %v2240_v44  ;;  %vm493_vm0 = vcmp.eq.s32.totalorder %v2777_v9, %v2197_v47 }
  0xd2   : >> { %v1400_v40 = vpack.c.bf16 %v649_v52, %v647_v61  ;;  %v614_v2 = vsel %vm571_vm14, %v2243_v41, 0.0  ;;  %v616_v59 = vsel %vm573_vm15, %v2243_v41, 0.0  ;;  %vm495_vm1 = vcmp.eq.s32.totalorder %v2776_v10, %v2197_v47 }
  0xd3   : >> { %v646_v46 = vadd.f32 %v614_v2, %v531_v58  ;;  %v648_v45 = vadd.f32 %v616_v59, %v533_v0  ;;  %v536_v56 = vsel %vm493_vm0, %v2200_v48, 0.0  ;;  %v538_v57 = vsel %vm495_vm1, %v2200_v48, 0.0 }
  0xd4   : >> { %1401 = vmatprep.subr.bf16.mxu0 %v1400_v40  ;;  %1439 = vmatprep.subr.bf16.mxu1 %v1400_v40  ;;  %vm576_vm2 = vcmp.eq.s32.totalorder %v2777_v9, %v2220_v54  ;;  %vm578_vm3 = vcmp.eq.s32.totalorder %v2776_v10, %v2220_v54  ;;  %vm492_vm4 = vcmp.eq.s32.totalorder %v2777_v9, %v2203_v50  ;;  %v2787_v40 = vmin.f32 %v2183_v51, 17.0 }
  0xd5   : >> { %v1402_v28 = vpack.c.bf16 %v648_v45, %v646_v46  ;;  %v619_v42 = vsel %vm576_vm2, %v2223_v55, 0.0  ;;  %v621_v43 = vsel %vm578_vm3, %v2223_v55, 0.0  ;;  %vm494_vm5 = vcmp.eq.s32.totalorder %v2776_v10, %v2203_v50 }
  0xd6   : >> { %v651_v61 = vadd.f32 %v619_v42, %v536_v56  ;;  %v653_v52 = vadd.f32 %v621_v43, %v538_v57  ;;  %v535_v58 = vsel %vm492_vm4, %v2206_v53, 0.0  ;;  %v537_v0 = vsel %vm494_vm5, %v2206_v53, 0.0 }
  0xd7   : >> { %1403 = vmatpush1.bf16.msra.mxu0 %v1402_v28  ;;  %1447 = vmatpush1.bf16.msra.mxu1 %v1402_v28  ;;  %vm575_vm6 = vcmp.eq.s32.totalorder %v2777_v9, %v2240_v44  ;;  %vm577_vm7 = vcmp.eq.s32.totalorder %v2776_v10, %v2240_v44  ;;  %vm497_vm8 = vcmp.eq.s32.totalorder %v2775_v11, %v2197_v47  ;;  %v2349_v2 = vtrunc.f32 %v2787_v40 }
  0xd8   : >> { %v1404_v59 = vpack.c.bf16 %v653_v52, %v651_v61  ;;  %v618_v46 = vsel %vm575_vm6, %v2243_v41, 0.0  ;;  %v620_v45 = vsel %vm577_vm7, %v2243_v41, 0.0  ;;  %vm499_vm9 = vcmp.eq.s32.totalorder %v2774_v12, %v2197_v47 }
  0xd9   : >> { %v650_v56 = vadd.f32 %v618_v46, %v535_v58  ;;  %v652_v57 = vadd.f32 %v620_v45, %v537_v0  ;;  %v540_v28 = vsel %vm497_vm8, %v2200_v48, 0.0  ;;  %v542_v42 = vsel %vm499_vm9, %v2200_v48, 0.0 }
  0xda   : >> { %1405 = vmatprep.subr.bf16.mxu0 %v1404_v59  ;;  %1440 = vmatprep.subr.bf16.mxu1 %v1404_v59  ;;  %vm580_vm10 = vcmp.eq.s32.totalorder %v2775_v11, %v2220_v54  ;;  %vm582_vm11 = vcmp.eq.s32.totalorder %v2774_v12, %v2220_v54  ;;  %vm496_vm12 = vcmp.eq.s32.totalorder %v2775_v11, %v2203_v50  ;;  %v2364_v51 = vadd.f32 1.0, %v2211_v49 }
  0xdb   : >> { %v1406_v43 = vpack.c.bf16 %v652_v57, %v650_v56  ;;  %v623_v61 = vsel %vm580_vm10, %v2223_v55, 0.0  ;;  %v625_v52 = vsel %vm582_vm11, %v2223_v55, 0.0  ;;  %vm498_vm13 = vcmp.eq.s32.totalorder %v2774_v12, %v2203_v50 }
  0xdc   : >> { %v655_v58 = vadd.f32 %v623_v61, %v540_v28  ;;  %v657_v0 = vadd.f32 %v625_v52, %v542_v42  ;;  %v539_v40 = vsel %vm496_vm12, %v2206_v53, 0.0  ;;  %v541_v59 = vsel %vm498_vm13, %v2206_v53, 0.0 }
  0xdd   : >> { %1407 = vmatpush1.bf16.msra.mxu0 %v1406_v43  ;;  %1448 = vmatpush1.bf16.msra.mxu1 %v1406_v43  ;;  %vm579_vm14 = vcmp.eq.s32.totalorder %v2775_v11, %v2240_v44  ;;  %vm581_vm15 = vcmp.eq.s32.totalorder %v2774_v12, %v2240_v44  ;;  %vm501_vm0 = vcmp.eq.s32.totalorder %v2773_v13, %v2197_v47  ;;  %v1455_v61 = vtrunc.f32 %v2192_v62 }
  0xde   : >> { %v1408_v46 = vpack.c.bf16 %v657_v0, %v655_v58  ;;  %v622_v45 = vsel %vm579_vm14, %v2243_v41, 0.0  ;;  %v624_v56 = vsel %vm581_vm15, %v2243_v41, 0.0  ;;  %vm503_vm1 = vcmp.eq.s32.totalorder %v2772_v17, %v2197_v47 }
  0xdf   : >> { %v654_v57 = vadd.f32 %v622_v45, %v539_v40  ;;  %v656_v28 = vadd.f32 %v624_v56, %v541_v59  ;;  %v544_v42 = vsel %vm501_vm0, %v2200_v48, 0.0  ;;  %v546_v43 = vsel %vm503_vm1, %v2200_v48, 0.0 }
  0xe0   : >> { %1409 = vmatprep.subr.bf16.mxu0 %v1408_v46  ;;  %1441 = vmatprep.subr.bf16.mxu1 %v1408_v46  ;;  %vm584_vm2 = vcmp.eq.s32.totalorder %v2773_v13, %v2220_v54  ;;  %vm586_vm3 = vcmp.eq.s32.totalorder %v2772_v17, %v2220_v54  ;;  %vm500_vm4 = vcmp.eq.s32.totalorder %v2773_v13, %v2203_v50 }
  0xe1   : >> { %v1410_v52 = vpack.c.bf16 %v656_v28, %v654_v57  ;;  %v627_v58 = vsel %vm584_vm2, %v2223_v55, 0.0  ;;  %v629_v0 = vsel %vm586_vm3, %v2223_v55, 0.0  ;;  %vm502_vm5 = vcmp.eq.s32.totalorder %v2772_v17, %v2203_v50 }
  0xe2   : >> { %v659_v40 = vadd.f32 %v627_v58, %v544_v42  ;;  %v661_v59 = vadd.f32 %v629_v0, %v546_v43  ;;  %v543_v46 = vsel %vm500_vm4, %v2206_v53, 0.0  ;;  %v545_v45 = vsel %vm502_vm5, %v2206_v53, 0.0 }
  0xe3   : >> { %1411 = vmatpush1.bf16.msra.mxu0 %v1410_v52  ;;  %1449 = vmatpush1.bf16.msra.mxu1 %v1410_v52  ;;  %vm583_vm6 = vcmp.eq.s32.totalorder %v2773_v13, %v2240_v44  ;;  %vm585_vm7 = vcmp.eq.s32.totalorder %v2772_v17, %v2240_v44  ;;  %vm505_vm8 = vcmp.eq.s32.totalorder %v2771_v18, %v2197_v47 }
  0xe4   : >> { %v2788_v56 = vsub.f32 %v2192_v62, %v2194_v63  ;;  %v1412_v28 = vpack.c.bf16 %v661_v59, %v659_v40  ;;  %v626_v42 = vsel %vm583_vm6, %v2243_v41, 0.0  ;;  %v628_v43 = vsel %vm585_vm7, %v2243_v41, 0.0 }
  0xe5   : >> { %vm507_vm9 = vcmp.eq.s32.totalorder %v2124_v19, %v2197_v47  ;;  %v658_v52 = vadd.f32 %v626_v42, %v543_v46  ;;  %v660_v58 = vadd.f32 %v628_v43, %v545_v45  ;;  %v548_v0 = vsel %vm505_vm8, %v2200_v48, 0.0 }
  0xe6   : >> { %v2407_v57 = vsub.f32 1.0, %v2788_v56  ;;  %v550_v49 = vsel %vm507_vm9, %v2200_v48, 0.0  ;;  %1413 = vmatprep.subr.bf16.mxu0 %v1412_v28  ;;  %1442 = vmatprep.subr.bf16.mxu1 %v1412_v28  ;;  %vm588_vm10 = vcmp.eq.s32.totalorder %v2771_v18, %v2220_v54  ;;  %vm590_vm11 = vcmp.eq.s32.totalorder %v2124_v19, %v2220_v54 }
  0xe7   : >> { %vm504_vm12 = vcmp.eq.s32.totalorder %v2771_v18, %v2203_v50  ;;  %v2421_v62 = vcvt.f32.s32 %v1455_v61  ;;  %v1414_v63 = vpack.c.bf16 %v660_v58, %v658_v52  ;;  %v631_v47 = vsel %vm588_vm10, %v2223_v55, 0.0 }
  0xe8   : >> { %v633_v40 = vsel %vm590_vm11, %v2223_v55, 0.0  ;;  %vm506_vm13 = vcmp.eq.s32.totalorder %v2124_v19, %v2203_v50  ;;  %v663_v48 = vadd.f32 %v631_v47, %v548_v0  ;;  %v547_v46 = vsel %vm504_vm12, %v2206_v53, 0.0  ;;  %v2796_v47 = vld [vmem:[#allocation20_spill] sm:$0xff] }
  0xe9   : >> { %v665_v59 = vadd.f32 %v633_v40, %v550_v49  ;;  %v549_v45 = vsel %vm506_vm13, %v2206_v53, 0.0  ;;  %1415 = vmatpush1.bf16.msra.mxu0 %v1414_v63  ;;  %1450 = vmatpush1.bf16.msra.mxu1 %v1414_v63  ;;  %vm587_vm14 = vcmp.eq.s32.totalorder %v2771_v18, %v2240_v44  ;;  %vm589_vm15 = vcmp.eq.s32.totalorder %v2124_v19, %v2240_v44  ;;  %v2795_v63 = vld [vmem:[#allocation38_spill] sm:$0xff] }
  0xea   : >> { %v2789_v54 = vcvt.f32.s32 %v2349_v2  ;;  %v630_v49 = vsel %vm587_vm14, %v2243_v41, 0.0  ;;  %v632_v61 = vsel %vm589_vm15, %v2243_v41, 0.0  ;;  %v2442_v53 = vrot.slane %v2364_v51, %v2189_v60 }
  0xeb   : >> { %v1416_v50 = vpack.c.bf16 %v665_v59, %v663_v48  ;;  %v662_v56 = vadd.f32 %v630_v49, %v547_v46  ;;  %v664_v28 = vadd.f32 %v632_v61, %v549_v45  ;;  %v2448_v44 = vrot.slane %v2421_v62, %v2189_v60 }
  0xec   : >> { %v2436_v55 = vrot.slane %v2789_v54, %v2189_v60  ;;  %v449_v41 = vrot.slane %v2407_v57, %v2189_v60  ;;  %v2791_v0 = vmov 0.0   ;;  %v2794_v60 = vld [vmem:[#allocation37_spill] sm:$0xff]  ;;  %v2798_v49 = vcvt.f32.s32 %v2349_v2 }
  0xed   : >> { %1417 = vmatprep.subr.bf16.mxu0 %v1416_v50  ;;  %1443 = vmatprep.subr.bf16.mxu1 %v1416_v50  ;;  %v1418_v43 = vpack.c.bf16 %v664_v28, %v662_v56  ;;  %vm439_vm1 = vcmp.eq.s32.totalorder %v2784_v1, %v2448_v44  ;;  %vm441_vm3 = vcmp.eq.s32.totalorder %v2796_v47, %v2448_v44  ;;  %v2797_v50 = vld [vmem:[#allocation39_spill] sm:$0xff]  ;;  %vm1068_vm12 = vcmask 1041409  }
  0xee   : >> { %vm408_vm0 = vcmp.eq.s32.totalorder %v2784_v1, %v2436_v55  ;;  %v456_v52 = vsel %vm439_vm1, %v449_v41, 0.0  ;;  %vm410_vm2 = vcmp.eq.s32.totalorder %v2796_v47, %v2436_v55  ;;  %v458_v48 = vsel %vm441_vm3, %v449_v41, 0.0 }
  0xef   : >> { %v425_v42 = vsel %vm408_vm0, %v2442_v53, 0.0  ;;  %1419 = vmatpush1.bf16.msra.mxu0 %v1418_v43  ;;  %1451 = vmatpush1.bf16.msra.mxu1 %v1418_v43  ;;  %v427_v40 = vsel %vm410_vm2, %v2442_v53, 0.0  ;;  %vm412_vm4 = vcmp.eq.s32.totalorder %v2783_v3, %v2436_v55  ;;  %vm443_vm5 = vcmp.eq.s32.totalorder %v2783_v3, %v2448_v44 }
  0xf0   : >> { %v2455_v58 = vadd.f32 %v456_v52, %v425_v42  ;;  %v2508_v59 = vadd.f32 %v458_v48, %v427_v40  ;;  %v429_v46 = vsel %vm412_vm4, %v2442_v53, 0.0  ;;  %v460_v45 = vsel %vm443_vm5, %v449_v41, 0.0 }
  0xf1   : >> { %v2515_v54 = vadd.f32 %v460_v45, %v429_v46  ;;  %v407_v61 = vrot.slane %v2798_v49, %v2797_v50  ;;  %v438_v56 = vrot.slane %v2421_v62, %v2797_v50  ;;  %v422_v28 = vrot.slane %v2364_v51, %v2797_v50 }
  0xf2   : >> { %731 = vmatmul.mubr.f32.vlgmr.msra.gmra.mrb[0].mxu0 %v2790_v14  ;;  %803 = vmatmul.mubr.f32.vlgmr.msra.gmra.mrb[0].mxu1 %v2144_v29  ;;  %v453_v55 = vrot.slane %v2407_v57, %v2797_v50  ;;  %vm1070_vm13 = vcmask 1042434   ;;  %vm1072_vm14 = vcmask 1043459   ;;  %vm1074_vm15 = vcmask 1044484  }
  0xf3   : >> { %736 = vmatprep.mubr.f32.mxu0 %v2791_v0  ;;  %808 = vmatprep.mubr.f32.mxu1 %v2791_v0  ;;  %vm409_vm6 = vcmp.eq.s32.totalorder %v2784_v1, %v407_v61  ;;  %vm440_vm7 = vcmp.eq.s32.totalorder %v2784_v1, %v438_v56  ;;  %vm411_vm8 = vcmp.eq.s32.totalorder %v2796_v47, %v407_v61  ;;  %vm1076_vm0 = vcmask 1045509  }
  0xf4   : >> { %v426_v53 = vsel %vm409_vm6, %v422_v28, 0.0  ;;  %v457_v44 = vsel %vm440_vm7, %v453_v55, 0.0  ;;  %vm442_vm9 = vcmp.eq.s32.totalorder %v2796_v47, %v438_v56  ;;  %v428_v42 = vsel %vm411_vm8, %v422_v28, 0.0 }
  0xf5   : >> { %v2530_v2 = vadd.f32 %v457_v44, %v426_v53  ;;  %v459_v62 = vsel %vm442_vm9, %v453_v55, 0.0  ;;  %vm413_vm10 = vcmp.eq.s32.totalorder %v2783_v3, %v407_v61  ;;  %vm444_vm11 = vcmp.eq.s32.totalorder %v2783_v3, %v438_v56 }
  0xf6   : >> { %737 = vmatmul.mubr.f32.gmra.mrb[2].mxu0 %v2792_v15  ;;  %809 = vmatmul.mubr.f32.gmra.mrb[2].mxu1 %v2146_v30  ;;  %v2538_v47 = vadd.f32 %v459_v62, %v428_v42  ;;  %v430_v40 = vsel %vm413_vm10, %v422_v28, 0.0  ;;  %v461_v48 = vsel %vm444_vm11, %v453_v55, 0.0  ;;  %vm1078_vm1 = vcmask 1046534  }
  0xf7   : >> { %742 = vmatprep.mubr.f32.mxu0 %v2791_v0  ;;  %814 = vmatprep.mubr.f32.mxu1 %v2791_v0  ;;  %vm1080_vm2 = vcmask 1047559   ;;  %vm1117_vm3 = vcmask (%p357_p2), 588800  }
  0xfa   : >> { %743 = vmatmul.mubr.f32.gmra.mrb[4].mxu0 %v2793_v16  ;;  %815 = vmatmul.mubr.f32.gmra.mrb[4].mxu1 %v2148_v31  ;;  %v1098_v31 = vld [vmem:[#allocation9] sm:$0xff] (%p357_p2) }
  0xfb   : >> { %748 = vmatprep.mubr.f32.mxu0 %v2791_v0  ;;  %820 = vmatprep.mubr.f32.mxu1 %v2791_v0 }
  0xfe   : >> { %749 = vmatmul.mubr.f32.gmra.mrb[6].mxu0 %v2126_v20  ;;  %821 = vmatmul.mubr.f32.gmra.mrb[6].mxu1 %v2150_v32 }
  0xff   : >> { %754 = vmatprep.mubr.f32.mxu0 %v2791_v0  ;;  %826 = vmatprep.mubr.f32.mxu1 %v2791_v0 }
 0x102   : >> { %755 = vmatmul.mubr.f32.gmra.mrb[8].mxu0 %v2128_v21  ;;  %827 = vmatmul.mubr.f32.gmra.mrb[8].mxu1 %v2152_v33 }
 0x103   : >> { %760 = vmatprep.mubr.f32.mxu0 %v2791_v0  ;;  %832 = vmatprep.mubr.f32.mxu1 %v2791_v0 }
 0x106   : >> { %761 = vmatmul.mubr.f32.gmra.mrb[10].mxu0 %v2130_v22  ;;  %833 = vmatmul.mubr.f32.gmra.mrb[10].mxu1 %v2154_v34 }
 0x107   : >> { %766 = vmatprep.mubr.f32.mxu0 %v2791_v0  ;;  %838 = vmatprep.mubr.f32.mxu1 %v2791_v0 }
 0x10a   : >> { %767 = vmatmul.mubr.f32.gmra.mrb[12].mxu0 %v2132_v23  ;;  %839 = vmatmul.mubr.f32.gmra.mrb[12].mxu1 %v2156_v35 }
 0x10b   : >> { %772 = vmatprep.mubr.f32.mxu0 %v2791_v0  ;;  %844 = vmatprep.mubr.f32.mxu1 %v2791_v0 }
 0x10e   : >> { %773 = vmatmul.mubr.f32.gmra.mrb[14].mxu0 %v2134_v24  ;;  %845 = vmatmul.mubr.f32.gmra.mrb[14].mxu1 %v2158_v36 }
 0x10f   : >> { %778 = vmatprep.mubr.f32.mxu0 %v2791_v0  ;;  %850 = vmatprep.mubr.f32.mxu1 %v2791_v0 }
 0x112   : >> { %779 = vmatmul.mubr.f32.gmra.mrb[16].mxu0 %v2136_v25  ;;  %851 = vmatmul.mubr.f32.gmra.mrb[16].mxu1 %v2160_v37 }
 0x113   : >> { %784 = vmatprep.mubr.f32.mxu0 %v2791_v0  ;;  %856 = vmatprep.mubr.f32.mxu1 %v2791_v0 }
 0x116   : >> { %785 = vmatmul.mubr.f32.gmra.mrb[18].mxu0 %v2138_v26  ;;  %857 = vmatmul.mubr.f32.gmra.mrb[18].mxu1 %v2162_v38 }
 0x117   : >> { %790 = vmatprep.mubr.f32.mxu0 %v2791_v0  ;;  %862 = vmatprep.mubr.f32.mxu1 %v2791_v0 }
 0x11a   : >> { %791 = vmatmul.mubr.f32.gmra.mrb[20].mxu0 %v2140_v27  ;;  %863 = vmatmul.mubr.f32.gmra.mrb[20].mxu1 %v2164_v39 }
 0x11b   : >> { %796 = vmatprep.mubr.f32.mxu0 %v2791_v0  ;;  %868 = vmatprep.mubr.f32.mxu1 %v2791_v0 }
 0x11e   : >> { %797 = vmatmul.mubr.f32.gmra.mrb[22].mxu0 %v2794_v60  ;;  %869 = vmatmul.mubr.f32.gmra.mrb[22].mxu1 %v2795_v63 }
 0x1c5   : >> { %v732_v41 = vpop.f32.mrb[0].mxu0  ;;  %v804_v43 = vpop.f32.mrb[0].mxu1 }
 0x1c6   : >> { %v875_v51 = vmul.f32 %v732_v41, %v2455_v58  ;;  %v734_v57 = vpop.f32.mrb[1].mxu0  ;;  %v899_v52 = vmul.f32 %v804_v43, %v2455_v58  ;;  %v806_v0 = vpop.f32.mrb[1].mxu1  ;;  %v2544_v41 = vadd.f32 %v461_v48, %v430_v40 }
 0x1c7   : >> { %v876_v60 = vmul.f32 %v734_v57, %v2530_v2  ;;  %v900_v63 = vmul.f32 %v806_v0, %v2530_v2 }
 0x1c9   : >> { %v738_v46 = vpop.f32.mrb[2].mxu0  ;;  %v810_v45 = vpop.f32.mrb[2].mxu1 }
 0x1ca   : >> { %v877_v50 = vmul.f32 %v738_v46, %v2508_v59  ;;  %v901_v49 = vmul.f32 %v810_v45, %v2508_v59  ;;  %v740_v61 = vpop.f32.mrb[3].mxu0  ;;  %v812_v56 = vpop.f32.mrb[3].mxu1 }
 0x1cb   : >> { %v878_v53 = vmul.f32 %v740_v61, %v2538_v47  ;;  %v902_v44 = vmul.f32 %v812_v56, %v2538_v47 }
 0x1cc   : >> { %v923_v43 = vadd.f32 %v877_v50, %v875_v51  ;;  %v987_v57 = vadd.f32 %v901_v49, %v899_v52 }
 0x1cd   : >> { %v931_v42 = vadd.f32 %v878_v53, %v876_v60  ;;  %v995_v62 = vadd.f32 %v902_v44, %v900_v63  ;;  %v744_v28 = vpop.f32.mrb[4].mxu0  ;;  %v816_v55 = vpop.f32.mrb[4].mxu1 }
 0x1ce   : >> { %v879_v0 = vmul.f32 %v744_v28, %v2515_v54  ;;  %v903_v46 = vmul.f32 %v816_v55, %v2515_v54  ;;  %v746_v1 = vpop.f32.mrb[5].mxu0  ;;  %v818_v45 = vpop.f32.mrb[5].mxu1 }
 0x1cf   : >> { %v880_v3 = vmul.f32 %v746_v1, %v2544_v41  ;;  %v904_v61 = vmul.f32 %v818_v45, %v2544_v41 }
 0x1d0   : >> { %v924_v4 = vadd.f32 %v923_v43, %v879_v0  ;;  %v2550_v56 = vadd.f32 %v987_v57, %v903_v46 }
 0x1d1   : >> { %v932_v40 = vadd.f32 %v931_v42, %v880_v3  ;;  %v2552_v51 = vadd.f32 %v995_v62, %v904_v61  ;;  %v750_v52 = vpop.f32.mrb[6].mxu0  ;;  %v822_v60 = vpop.f32.mrb[6].mxu1 }
 0x1d2   : >> { %v881_v63 = vmul.f32 %v750_v52, %v2455_v58  ;;  %v752_v48 = vpop.f32.mrb[7].mxu0  ;;  %v905_v50 = vmul.f32 %v822_v60, %v2455_v58  ;;  %v824_v49 = vpop.f32.mrb[7].mxu1  ;;  %v925_v44 = vrot.slane %v924_v4, 4 }
 0x1d3   : >> { %v882_v53 = vmul.f32 %v752_v48, %v2530_v2  ;;  %v906_v1 = vmul.f32 %v824_v49, %v2530_v2  ;;  %v933_v28 = vrot.slane %v932_v40, 4 }
 0x1d4   : >> { %v926_v45 = vadd.f32 %v925_v44, %v924_v4 }
 0x1d5   : >> { %v756_v43 = vpop.f32.mrb[8].mxu0  ;;  %v828_v57 = vpop.f32.mrb[8].mxu1  ;;  %v934_v60 = vadd.f32 %v933_v28, %v932_v40 }
 0x1d6   : >> { %v883_v3 = vmul.f32 %v756_v43, %v2508_v59  ;;  %v907_v42 = vmul.f32 %v828_v57, %v2508_v59  ;;  %v758_v62 = vpop.f32.mrb[9].mxu0  ;;  %v830_v55 = vpop.f32.mrb[9].mxu1  ;;  %v927_v10 = vrot.slane %v926_v45, 2 }
 0x1d7   : >> { %v884_v0 = vmul.f32 %v758_v62, %v2538_v47  ;;  %v908_v46 = vmul.f32 %v830_v55, %v2538_v47 }
 0x1d8   : >> { %v939_v61 = vadd.f32 %v883_v3, %v881_v63  ;;  %v1003_v52 = vadd.f32 %v907_v42, %v905_v50  ;;  %v935_v63 = vrot.slane %v934_v60, 2 }
 0x1d9   : >> { %v947_v48 = vadd.f32 %v884_v0, %v882_v53  ;;  %v1011_v49 = vadd.f32 %v908_v46, %v906_v1  ;;  %v762_v5 = vpop.f32.mrb[10].mxu0  ;;  %v834_v6 = vpop.f32.mrb[10].mxu1  ;;  %v928_v0 = vadd.f32 %v927_v10, %v926_v45 }
 0x1da   : >> { %v885_v7 = vmul.f32 %v762_v5, %v2515_v54  ;;  %v909_v43 = vmul.f32 %v834_v6, %v2515_v54  ;;  %v764_v8 = vpop.f32.mrb[11].mxu0  ;;  %v836_v57 = vpop.f32.mrb[11].mxu1 }
 0x1db   : >> { %v886_v9 = vmul.f32 %v764_v8, %v2544_v41  ;;  %v910_v62 = vmul.f32 %v836_v57, %v2544_v41 }
 0x1dc   : >> { %v940_v55 = vadd.f32 %v939_v61, %v885_v7  ;;  %v2566_v4 = vadd.f32 %v1003_v52, %v909_v43  ;;  %v936_v61 = vadd.f32 %v935_v63, %v934_v60  ;;  %v929_v60 = vrot.slane %v928_v0, 1 }
 0x1dd   : >> { %v948_v40 = vadd.f32 %v947_v48, %v886_v9  ;;  %v2568_v50 = vadd.f32 %v1011_v49, %v910_v62  ;;  %v768_v53 = vpop.f32.mrb[12].mxu0  ;;  %v840_v1 = vpop.f32.mrb[12].mxu1  ;;  %v989_v49 = vrot.slane %v2550_v56, 4 }
 0x1de   : >> { %v941_v44 = vrot.slane %v940_v55, 4  ;;  %v887_v5 = vmul.f32 %v768_v53, %v2455_v58  ;;  %v770_v6 = vpop.f32.mrb[13].mxu0  ;;  %v911_v28 = vmul.f32 %v840_v1, %v2455_v58  ;;  %v842_v3 = vpop.f32.mrb[13].mxu1 }
 0x1df   : >> { %v949_v8 = vrot.slane %v948_v40, 4  ;;  %v888_v42 = vmul.f32 %v770_v6, %v2530_v2  ;;  %v912_v7 = vmul.f32 %v842_v3, %v2530_v2  ;;  %v997_v6 = vrot.slane %v2552_v51, 4 }
 0x1e0   : >> { %v942_v46 = vadd.f32 %v941_v44, %v940_v55  ;;  %v937_v44 = vrot.slane %v936_v61, 1 }
 0x1e1   : >> { %v950_v9 = vadd.f32 %v949_v8, %v948_v40  ;;  %v774_v52 = vpop.f32.mrb[14].mxu0  ;;  %v846_v48 = vpop.f32.mrb[14].mxu1 }
 0x1e2   : >> { %v943_v43 = vrot.slane %v942_v46, 2  ;;  %v889_v57 = vmul.f32 %v774_v52, %v2508_v59  ;;  %v913_v62 = vmul.f32 %v846_v48, %v2508_v59  ;;  %v776_v53 = vpop.f32.mrb[15].mxu0  ;;  %v848_v1 = vpop.f32.mrb[15].mxu1  ;;  %v2581_v48 = vadd.f32 %v989_v49, %v2550_v56 }
 0x1e3   : >> { %v951_v11 = vrot.slane %v950_v9, 2  ;;  %v890_v10 = vmul.f32 %v776_v53, %v2538_v47  ;;  %v914_v45 = vmul.f32 %v848_v1, %v2538_v47  ;;  %v938_v49 = vadd.f32 %v937_v44, %v936_v61 }
 0x1e4   : >> { %v944_v55 = vadd.f32 %v943_v43, %v942_v46  ;;  %v955_v63 = vadd.f32 %v889_v57, %v887_v5  ;;  %v1019_v40 = vadd.f32 %v913_v62, %v911_v28  ;;  %v2586_v46 = vadd.f32 %v997_v6, %v2552_v51 }
 0x1e5   : >> { %v952_v3 = vadd.f32 %v951_v11, %v950_v9  ;;  %v963_v8 = vadd.f32 %v890_v10, %v888_v42  ;;  %v1027_v12 = vadd.f32 %v914_v45, %v912_v7  ;;  %v780_v52 = vpop.f32.mrb[16].mxu0  ;;  %v852_v13 = vpop.f32.mrb[16].mxu1  ;;  %v930_v42 = vadd.f32 %v929_v60, %v928_v0 }
 0x1e6   : >> { %v945_v14 = vrot.slane %v944_v55, 1  ;;  %v891_v15 = vmul.f32 %v780_v52, %v2515_v54  ;;  %v915_v53 = vmul.f32 %v852_v13, %v2515_v54  ;;  %v782_v16 = vpop.f32.mrb[17].mxu0  ;;  %v854_v1 = vpop.f32.mrb[17].mxu1  ;;  %v991_v61 = vrot.slane %v2581_v48, 2 }
 0x1e7   : >> { %v953_v5 = vrot.slane %v952_v3, 1  ;;  %v892_v11 = vmul.f32 %v782_v16, %v2544_v41  ;;  %v916_v28 = vmul.f32 %v854_v1, %v2544_v41  ;;  %v999_v60 = vrot.slane %v2586_v46, 2 }
 0x1e8   : >> { %v946_v7 = vadd.f32 %v945_v14, %v944_v55  ;;  %v956_v9 = vadd.f32 %v955_v63, %v891_v15  ;;  %v1020_v56 = vadd.f32 %v1019_v40, %v915_v53  ;;  %v1005_v55 = vrot.slane %v2566_v4, 4 }
 0x1e9   : >> { %v954_v43 = vadd.f32 %v953_v5, %v952_v3  ;;  %v964_v57 = vadd.f32 %v963_v8, %v892_v11  ;;  %v1028_v62 = vadd.f32 %v1027_v12, %v916_v28  ;;  %v786_v10 = vpop.f32.mrb[18].mxu0  ;;  %v858_v13 = vpop.f32.mrb[18].mxu1  ;;  %v1013_v3 = vrot.slane %v2568_v50, 4 }
 0x1ea   : >> { %v1069_v45 = vsel %vm1068_vm12, %v946_v7, %v930_v42  ;;  %v957_v52 = vrot.slane %v956_v9, 4  ;;  %v893_v51 = vmul.f32 %v786_v10, %v2455_v58  ;;  %v788_v6 = vpop.f32.mrb[19].mxu0  ;;  %v860_v17 = vpop.f32.mrb[19].mxu1  ;;  %v917_v0 = vmul.f32 %v858_v13, %v2455_v58 }
 0x1eb   : >> { %v1082_v16 = vsel %vm1068_vm12, %v954_v43, %v938_v49  ;;  %v965_v1 = vrot.slane %v964_v57, 4  ;;  %v894_v14 = vmul.f32 %v788_v6, %v2530_v2  ;;  %v918_v12 = vmul.f32 %v860_v17, %v2530_v2 }
 0x1ec   : >> { %v958_v15 = vadd.f32 %v957_v52, %v956_v9  ;;  %v1021_v28 = vrot.slane %v1020_v56, 4  ;;  %v1029_v9 = vrot.slane %v1028_v62, 4 }
 0x1ed   : >> { %v966_v63 = vadd.f32 %v965_v1, %v964_v57  ;;  %v792_v40 = vpop.f32.mrb[20].mxu0  ;;  %v864_v44 = vpop.f32.mrb[20].mxu1  ;;  %v1006_v57 = vadd.f32 %v1005_v55, %v2566_v4 }
 0x1ee   : >> { %v959_v8 = vrot.slane %v958_v15, 2  ;;  %v895_v53 = vmul.f32 %v792_v40, %v2508_v59  ;;  %v919_v5 = vmul.f32 %v864_v44, %v2508_v59  ;;  %v794_v11 = vpop.f32.mrb[21].mxu0  ;;  %v866_v58 = vpop.f32.mrb[21].mxu1  ;;  %v1014_v59 = vadd.f32 %v1013_v3, %v2568_v50 }
 0x1ef   : >> { %v967_v17 = vrot.slane %v966_v63, 2  ;;  %v896_v2 = vmul.f32 %v794_v11, %v2538_v47  ;;  %v920_v42 = vmul.f32 %v866_v58, %v2538_v47 }
 0x1f0   : >> { %v960_v7 = vadd.f32 %v959_v8, %v958_v15  ;;  %v971_v49 = vadd.f32 %v895_v53, %v893_v51  ;;  %v1035_v43 = vadd.f32 %v919_v5, %v917_v0  ;;  %v1022_v15 = vadd.f32 %v1021_v28, %v1020_v56 }
 0x1f1   : >> { %v968_v10 = vadd.f32 %v967_v17, %v966_v63  ;;  %v979_v13 = vadd.f32 %v896_v2, %v894_v14  ;;  %v1043_v52 = vadd.f32 %v920_v42, %v918_v12  ;;  %v798_v6 = vpop.f32.mrb[22].mxu0  ;;  %v870_v1 = vpop.f32.mrb[22].mxu1  ;;  %v1030_v14 = vadd.f32 %v1029_v9, %v1028_v62 }
 0x1f2   : >> { %v961_v40 = vrot.slane %v960_v7, 1  ;;  %v897_v44 = vmul.f32 %v798_v6, %v2515_v54  ;;  %v921_v11 = vmul.f32 %v870_v1, %v2515_v54  ;;  %v800_v18 = vpop.f32.mrb[23].mxu0  ;;  %v872_v47 = vpop.f32.mrb[23].mxu1  ;;  %v1007_v63 = vrot.slane %v1006_v57, 2 }
 0x1f3   : >> { %v969_v8 = vrot.slane %v968_v10, 1  ;;  %v898_v51 = vmul.f32 %v800_v18, %v2544_v41  ;;  %v922_v4 = vmul.f32 %v872_v47, %v2544_v41  ;;  %v1015_v5 = vrot.slane %v1014_v59, 2 }
 0x1f4   : >> { %v962_v0 = vadd.f32 %v961_v40, %v960_v7  ;;  %v972_v12 = vadd.f32 %v971_v49, %v897_v44  ;;  %v1036_v55 = vadd.f32 %v1035_v43, %v921_v11  ;;  %v1023_v2 = vrot.slane %v1022_v15, 2 }
 0x1f5   : >> { %v970_v53 = vadd.f32 %v969_v8, %v968_v10  ;;  %v980_v50 = vadd.f32 %v979_v13, %v898_v51  ;;  %v1044_v3 = vadd.f32 %v1043_v52, %v922_v4  ;;  %v1031_v41 = vrot.slane %v1030_v14, 2 }
 0x1f6   : >> { %v1071_v58 = vsel %vm1070_vm13, %v962_v0, %v1069_v45  ;;  %v973_v54 = vrot.slane %v972_v12, 4  ;;  %v1037_v17 = vrot.slane %v1036_v55, 4  ;;  %v992_v7 = vadd.f32 %v991_v61, %v2581_v48 }
 0x1f7   : >> { %v1083_v56 = vsel %vm1070_vm13, %v970_v53, %v1082_v16  ;;  %v981_v18 = vrot.slane %v980_v50, 4  ;;  %v1045_v28 = vrot.slane %v1044_v3, 4  ;;  %v1000_v43 = vadd.f32 %v999_v60, %v2586_v46 }
 0x1f8   : >> { %v974_v42 = vadd.f32 %v973_v54, %v972_v12  ;;  %v1038_v62 = vadd.f32 %v1037_v17, %v1036_v55  ;;  %v1008_v10 = vadd.f32 %v1007_v63, %v1006_v57  ;;  %v1016_v52 = vadd.f32 %v1015_v5, %v1014_v59 }
 0x1f9   : >> { %v982_v9 = vadd.f32 %v981_v18, %v980_v50  ;;  %v1046_v49 = vadd.f32 %v1045_v28, %v1044_v3  ;;  %v1024_v6 = vadd.f32 %v1023_v2, %v1022_v15  ;;  %v1032_v16 = vadd.f32 %v1031_v41, %v1030_v14 }
 0x1fa   : >> { %v975_v13 = vrot.slane %v974_v42, 2  ;;  %v1039_v45 = vrot.slane %v1038_v62, 2  ;;  %v993_v47 = vrot.slane %v992_v7, 1  ;;  %v1001_v4 = vrot.slane %v1000_v43, 1 }
 0x1fb   : >> { %v983_v1 = vrot.slane %v982_v9, 2  ;;  %v1047_v40 = vrot.slane %v1046_v49, 2  ;;  %v1009_v48 = vrot.slane %v1008_v10, 1  ;;  %v1017_v46 = vrot.slane %v1016_v52, 1 }
 0x1fc   : >> { %v976_v44 = vadd.f32 %v975_v13, %v974_v42  ;;  %v1040_v11 = vadd.f32 %v1039_v45, %v1038_v62  ;;  %v1025_v60 = vrot.slane %v1024_v6, 1  ;;  %v1033_v59 = vrot.slane %v1032_v16, 1 }
 0x1fd   : >> { %v984_v8 = vadd.f32 %v983_v1, %v982_v9  ;;  %v1048_v51 = vadd.f32 %v1047_v40, %v1046_v49  ;;  %v994_v14 = vadd.f32 %v993_v47, %v992_v7  ;;  %v1002_v63 = vadd.f32 %v1001_v4, %v1000_v43 }
 0x1fe   : >> { %v977_v61 = vrot.slane %v976_v44, 1  ;;  %v1041_v0 = vrot.slane %v1040_v11, 1  ;;  %v1010_v53 = vadd.f32 %v1009_v48, %v1008_v10  ;;  %v1018_v3 = vadd.f32 %v1017_v46, %v1016_v52 }
 0x1ff   : >> { %v985_v57 = vrot.slane %v984_v8, 1  ;;  %v1049_v55 = vrot.slane %v1048_v51, 1  ;;  %v1026_v5 = vadd.f32 %v1025_v60, %v1024_v6  ;;  %v1034_v2 = vadd.f32 %v1033_v59, %v1032_v16 }
 0x200   : >> { %v978_v15 = vadd.f32 %v977_v61, %v976_v44  ;;  %v1042_v18 = vadd.f32 %v1041_v0, %v1040_v11  ;;  %v1786_v1 = vmov (%p357_p2), 0.0  }
 0x201   : >> { %v986_v12 = vadd.f32 %v985_v57, %v984_v8  ;;  %v1050_v62 = vadd.f32 %v1049_v55, %v1048_v51  ;;  %1185 = vmatprep.mubr.f32.mxu0 (%p357_p2), %v1786_v1 }
 0x202   : >> { %v1073_v50 = vsel %vm1072_vm14, %v978_v15, %v1071_v58  ;;  %359 = sbr.rel (!%p357_p2) target bundleno = 171 (0xab), region = 112 }
 0x203   : >> { %v1075_v54 = vsel %vm1074_vm15, %v994_v14, %v1073_v50  ;;  %v1084_v17 = vsel %vm1072_vm14, %v986_v12, %v1083_v56 }
 0x204   : >> { %v1077_v28 = vsel %vm1076_vm0, %v1010_v53, %v1075_v54  ;;  %v1085_v41 = vsel %vm1074_vm15, %v1002_v63, %v1084_v17 }
 0x205   : >> { %v1079_v42 = vsel %vm1078_vm1, %v1026_v5, %v1077_v28  ;;  %v1086_v7 = vsel %vm1076_vm0, %v1018_v3, %v1085_v41 }
 0x206   : >> { %v1081_v58 = vsel %vm1080_vm2, %v1042_v18, %v1079_v42  ;;  %v1087_v9 = vsel %vm1078_vm1, %v1034_v2, %v1086_v7 }
 0x207   : >> { %1096 = vst [vmem:[%s1095_s25] sm:$0xff] %v1081_v58  ;;  %v1088_v49 = vsel %vm1080_vm2, %v1050_v62, %v1087_v9 }
 0x208   : >> { %1097 = vst [vmem:[%s1095_s25 + $0x8] sm:$0xff] %v1088_v49 }
 0x20f   : > { %v1100_v56 = vld [vmem:[#allocation2 + $0x8] sm:$0xff]  ;;  %v1102_v43 = vld [vmem:[#allocation2 + $0x18] sm:$0xff]  ;;  %v1099_v10 = vld [vmem:[#allocation2] sm:$0xff] }
 0x210   : > { %v1420_v13 = vpack.c.bf16 %v1102_v43, %v1100_v56  ;;  %v1101_v45 = vld [vmem:[#allocation2 + $0x10] sm:$0xff]  ;;  %v1104_v52 = vld [vmem:[#allocation2 + $0x28] sm:$0xff]  ;;  %v1106_v6 = vld [vmem:[#allocation2 + $0x38] sm:$0xff] }
 0x211   : > { %v1422_v40 = vpack.c.bf16 %v1101_v45, %v1099_v10  ;;  %v1424_v16 = vpack.c.bf16 %v1106_v6, %v1104_v52  ;;  %v1103_v44 = vld [vmem:[#allocation2 + $0x20] sm:$0xff]  ;;  %v1105_v11 = vld [vmem:[#allocation2 + $0x30] sm:$0xff]  ;;  %v1108_v47 = vld [vmem:[#allocation2 + $0x48] sm:$0xff] }
 0x212   : > { %1421 = vmatprep.subr.bf16.mxu0 %v1420_v13  ;;  %v1110_v8 = vld [vmem:[#allocation2 + $0x58] sm:$0xff]  ;;  %v1426_v51 = vpack.c.bf16 %v1105_v11, %v1103_v44  ;;  %v1107_v19 = vld [vmem:[#allocation2 + $0x40] sm:$0xff]  ;;  %v1109_v20 = vld [vmem:[#allocation2 + $0x50] sm:$0xff] }
 0x213   : > { %1423 = vmatpush1.bf16.msra.mxu0 %v1422_v40  ;;  %v1428_v4 = vpack.c.bf16 %v1110_v8, %v1108_v47  ;;  %v1112_v21 = vld [vmem:[#allocation2 + $0x68] sm:$0xff]  ;;  %v1114_v22 = vld [vmem:[#allocation2 + $0x78] sm:$0xff]  ;;  %v1430_v23 = vpack.c.bf16 %v1109_v20, %v1107_v19  ;;  %v1111_v25 = vld [vmem:[#allocation2 + $0x60] sm:$0xff] }
 0x214   : > { %1425 = vmatprep.subr.bf16.mxu0 %v1424_v16  ;;  %v1432_v24 = vpack.c.bf16 %v1114_v22, %v1112_v21  ;;  %v1113_v26 = vld [vmem:[#allocation2 + $0x70] sm:$0xff]  ;;  %v1116_v29 = vld [vmem:[#allocation2 + $0x88] sm:$0xff]  ;;  %v1115_v30 = vld [vmem:[#allocation2 + $0x80] sm:$0xff] }
 0x215   : > { %v1434_v27 = vpack.c.bf16 %v1113_v26, %v1111_v25 }
 0x217   : > { %1427 = vmatpush1.bf16.msra.mxu0 %v1426_v51 }
 0x218   : > { %1429 = vmatprep.subr.bf16.mxu0 %v1428_v4 }
 0x21b   : > { %1431 = vmatpush1.bf16.msra.mxu0 %v1430_v23 }
 0x21c   : > { %1433 = vmatprep.subr.bf16.mxu0 %v1432_v24 }
 0x21f   : > { %1435 = vmatpush1.bf16.msra.mxu0 %v1434_v27 }
 0x220   : > { %1137 = vmatprep.subr.mxu0 %v1116_v29 }
 0x223   : > { %1138 = vmatpush1.msra.mxu0 %v1115_v30 }
 0x224   : > { %1377 = vmatmul.mubr.msk.f32.vlgmr.msra.gmra.mrb[0].mxu0 %vm1117_vm3, %v1098_v31 }
 0x2f7   : > { %v1187_v32 = vpop.f32.mrb[0].mxu0 }
 0x2f8   : > { %1192 = vst [vmem:[%s2170_s14] sm:$0xff] %v1187_v32  ;;  %v1189_v33 = vpop.f32.mrb[1].mxu0 }
 0x2f9   : > { %1193 = vst [vmem:[%s2170_s14 + $0x8] sm:$0xff] %v1189_v33 }
 0x2fa   : > { %1690 = shalt.err (!%p1687_p3)
}
 0x2fb   : > { %s1691_s0 = scalar_lea.hbm %s2636_s13, 256  ;;  %s1695_s24 = scalar_lea.hbm %s2691_s4, 512 }
 0x2fc   : > { %p1692_p0 = scmp.ne.s32.totalorder %s2636_s13, %s1691_s0  ;;  %p1696_p7 = scmp.lt.u32.totalorder %s2636_s13, %s2691_s4 }
 0x2fd   : > { %p1697_p12 = scmp.lt.u32.totalorder %s1695_s24, %s1691_s0  ;;  %p1699_p5 = scmp.lt.u32.totalorder %s1691_s0, %s2636_s13 }
 0x2fe   : > { %p1693_p13 = pnand %p1692_p0, %p2799_p6 }
 0x2ff   : > { %p1698_p2 = por %p1697_p12, %p1696_p7 }
 0x300   : > { %p1694_p4 = pneg %p1693_p13 }
 0x301   : > { %p1700_p1 = por %p1699_p5, %p1698_p2 }
 0x303   : > { %p1701_p11 = pnand %p1700_p1, %p1694_p4 }
 0x305   : > { %1704 = shalt.err (!%p1701_p11)
}
 0x306   : > { %1471 = dma.vmem_to_hbm [thread:$0]  (%p2799_p6), %s2638_s29, 256, %s2636_s13, %s1195_s23  }
 0x307 PF: > { %s1223_s21 = sand.u32 1, %s1751_s15   ;;  %p2800_p9 = scmp.ne.s32.totalorder %s2736_s5, 0 }
 0x308   : > { %p2801_p8 = scmp.ge.s32.totalorder %s1771_s20, 2  ;;  %s1224_s7 = scalar_lea.sflag [#allocation5], %s1223_s21 }
 0x30a   : > { %p1488_p10 = pnand %p2801_p8, %p2800_p9 }
 0x30c   : > { %1746 = dma.done.wait (!%p1488_p10), %s1224_s7, 256  }
 0x30d   : > { %1748 = vsyncadd (!%p1488_p10), %s1224_s7, 4294967040  ;;  %s22_s20 = sadd.s32 1, %s1771_s20   ;;  %s2802_s28 = sld [smem:[#allocation18_spill]] }
 0x30e   : > { %p19_p3 = scmp.ge.s32.totalorder %s22_s20, 4   ;;  %s2803_s18 = sld [smem:[#allocation16_spill]] }
 0x30f   : > { %s2804_s19 = sld [smem:[#allocation17_spill]]  ;;  %s2805_s15 = smov %s1755_s16 }
 0x310   : > { %s2806_s16 = smov %s1759_s17  ;;  %21 = sbr.rel (!%p19_p3) target bundleno = 11 (0xb), region = 123 }
 0x313   : > { %s2807_s17 = smov %s2802_s28 }
 0x317   :  { %1229 = vsyncpa [#allocation4], 1 }
 0x318   :  { %1231 = vsyncpa [#allocation4 + $0x1], 1 }
 0x319   :  { %1232 = vsyncpa [#allocation7], 1 }
 0x31a   :  { %1234 = vsyncpa [#allocation7 + $0x1], 1 }
 0x31b   :  { %1235 = vsyncpa [#allocation10], 1 }
 0x31c   :  { %1236 = vsyncpa [#allocation5], 1 }
 0x31d   :  { %1238 = vsyncpa [#allocation5 + $0x1], 1 }

// kernel: tpu_custom_call.1
= control target key start
LH: loop header
LB: loop body
LE: loop exit
PB: predicated region body
PF: predicated region fallthrough
CT: control target
= control target key end

     0   :  { %s2731_s0 = inlined_call_operand.hbm [shape: f32[2,192,128], index: 0, kind: input, shape index: {}]   ;;  %s2732_s1 = inlined_call_operand.hbm [shape: f32[2,9,256], index: 1, kind: input, shape index: {}]   ;;  %s2733_s2 = inlined_call_operand.hbm [shape: f32[2,9,256], index: 2, kind: input, shape index: {}]   ;;  %s2734_s3 = inlined_call_operand.hbm [shape: f32[8,72], index: 3, kind: input, shape index: {}]   ;;  %s2735_s4 = inlined_call_operand.hbm [shape: f32[2,8,256], index: 4, kind: output, shape index: {}]  }
   0x1   :  { %2775 = sst [smem:[#allocation43_spill]] %s2732_s1 }
   0x2   :  { %9 = vsyncpa [#allocation4], 0 }
   0x3   :  { %11 = vsyncpa [#allocation4 + $0x1], 0 }
   0x4   :  { %12 = vsyncpa [#allocation7], 0 }
   0x5   :  { %14 = vsyncpa [#allocation7 + $0x1], 0 }
   0x6   :  { %15 = vsyncpa [#allocation10], 0 }
   0x7   :  { %16 = vsyncpa [#allocation5], 0 }
   0x8   :  { %18 = vsyncpa [#allocation5 + $0x1], 0  ;;  %s1840_s15 = smov 0   ;;  %s1842_s16 = smov 0  }
   0x9   :  { %s1844_s17 = smov 0   ;;  %s1846_s18 = smov 0  }
   0xa   :  { %s1848_s19 = smov 0   ;;  %s1850_s20 = smov 0  }
   0xb LB: > { %2776 = sst [smem:[#allocation16_spill]] %s1786_s17  ;;  %s36_s21 = sadd.s32 1, %s1794_s19  ;;  %s1798_s20 = sphi %s1850_s20, %s24_s20   ;;  %s1794_s19 = sphi %s1848_s19, %s2855_s19   ;;  %s1790_s18 = sphi %s1846_s18, %s2854_s18   ;;  %s1786_s17 = sphi %s1844_s17, %s2853_s17   ;;  %s1782_s16 = sphi %s1842_s16, %s2857_s16   ;;  %s1778_s15 = sphi %s1840_s15, %s2856_s15  }
   0xc   : > { %2777 = sst [smem:[#allocation17_spill]] %s1794_s19  ;;  %s43_s22 = sadd.s32 1, %s1786_s17 }
   0xd   : > { %2778 = sst [smem:[#allocation18_spill]] %s1798_s20  ;;  %p38_p0 = scmp.ge.s32.totalorder %s36_s21, 2 }
   0xe   : > { %p2736_p1 = scmp.ne.s32.totalorder %s1786_s17, %s1782_s16  ;;  %p51_p2 = scmp.eq.s32.totalorder %s1798_s20, 0 }
   0xf   : > { %s2859_s21 = smov (%p38_p0, %s36_s21), 0  ;;  %p1520_p5 = scmp.lt.s32.totalorder %s1798_s20, 2 }
  0x10   : > { %2779 = sst [smem:[#allocation19_spill]] %s2859_s21  ;;  %p52_p4 = por %p51_p2, %p2736_p1 }
  0x11   : > { %s40_s23 = ssub.s32 %s1794_s19, %s2859_s21  ;;  %s1885_s24 = sand.u32 1, %s1786_s17  }
  0x12   : > { %p41_p6 = scmp.eq.s32.totalorder %s40_s23, 0  ;;  %p1887_p7 = pnand %p1520_p5, %p52_p4 }
  0x13   : > { %s217_s26 = sand.u32 1, %s1798_s20   ;;  %s1387_s27 = sshll.u32 %s1885_s24, 5 }
  0x14   : > { %s2780_s25 = scalar_select %p1887_p7, 1, 0 }
  0x15   : > { %s1894_s28 = scalar_select %p41_p6, %s1786_s17, %s43_s22  }
  0x16   : > { %s1409_s29 = sshll.u32 %s1794_s19, 9  ;;  %s2782_s1 = sld [smem:[#allocation43_spill]] }
  0x17   : > { %2781 = sst [smem:[#allocation20_spill]] %s1894_s28  ;;  %s221_s7 = scalar_lea.vmem [#allocation6], %s1387_s27 }
  0x18   : > { %s230_s8 = sshll.u32 %s221_s7, 4  ;;  %s1908_s9 = scalar_lea.sflag [#allocation7], %s217_s26  ;;  %s1906_s8 = int_to_ptr.vmem [resolvable:$true] %s230_s8 }
  0x19   : > { %p1914_p9 = pneg %p1887_p7 }
  0x1b   : > { %s2783_s11 = scalar_select %p1914_p9, 1, 0 }
  0x1c   : > { %s1902_s6 = scalar_lea.hbm %s2782_s1, %s1409_s29  ;;  %s1591_s14 = scalar_lea.hbm %s2782_s1, 1024 }
  0x1d   : > { %s1586_s10 = scalar_lea.hbm %s1902_s6, 512  ;;  %p1592_p12 = scmp.lt.u32.totalorder %s1902_s6, %s2782_s1 }
  0x1e   : > { %p1587_p8 = scmp.ne.s32.totalorder %s1902_s6, %s1586_s10  ;;  %p1593_p13 = scmp.lt.u32.totalorder %s1591_s14, %s1586_s10 }
  0x1f   : > { %p1595_p2 = scmp.lt.u32.totalorder %s1586_s10, %s1902_s6 }
  0x20   : > { %p1589_p10 = pnand %p1914_p9, %p1587_p8  ;;  %p1594_p0 = por %p1593_p13, %p1592_p12 }
  0x22   : > { %p1590_p11 = pneg %p1589_p10  ;;  %p1596_p4 = por %p1595_p2, %p1594_p0 }
  0x24   : > { %p1597_p5 = pnand %p1596_p4, %p1590_p11 }
  0x26   : > { %1600 = shalt.err (!%p1597_p5)
}
  0x27   : > { %s1601_s26 = scalar_lea.vmem %s1906_s8, 512  ;;  %s1804_s30 = smov [#allocation6]  }
  0x28   : > { %p1602_p6 = scmp.ne.s32.totalorder %s1906_s8, %s1601_s26  ;;  %s1606_s5 = sshll.u32 %s1804_s30, 4  ;;  %s1607_s5 = int_to_ptr.vmem [resolvable:$false] %s1606_s5 }
  0x29   : > { %s1608_s7 = scalar_lea.vmem %s1607_s5, 1024  ;;  %p1609_p3 = scmp.lt.s32.totalorder %s1906_s8, %s1607_s5 }
  0x2a   : > { %p1604_p8 = pnand %p1602_p6, %p1914_p9  ;;  %p1610_p1 = scmp.lt.s32.totalorder %s1608_s7, %s1601_s26 }
  0x2c   : > { %p1605_p10 = pneg %p1604_p8  ;;  %p1611_p12 = por %p1610_p1, %p1609_p3 }
  0x2e   : > { %p1612_p13 = pnand %p1611_p12, %p1605_p10 }
  0x30   : > { %1615 = shalt.err (!%p1612_p13)
}
  0x31   : > { %s2737_s10 = smov 256   ;;  %s2738_s12 = smov 16  }
  0x32   : > { %1511 = dma.hbm_to_vmem [thread:$0]  (!%p1887_p7), %s1902_s6, 512, %s1906_s8, %s1908_s9, %s2737_s10, %s2737_s10, %s2738_s12  }
  0x33   : > { %s1946_s22 = scalar_lea.hbm %s2733_s2, %s1409_s29  ;;  %s244_s23 = scalar_lea.vmem [#allocation8], %s1387_s27 }
  0x34   : > { %s253_s26 = sshll.u32 %s244_s23, 4  ;;  %s1953_s30 = sadd.s32 4294967295, %s1798_s20   ;;  %s1950_s26 = int_to_ptr.vmem [resolvable:$true] %s253_s26 }
  0x35   : > { %s1382_s5 = sadd.s32 4294967294, %s1798_s20   ;;  %p56_p1 = scmp.ne.s32.totalorder %s1782_s16, %s1778_s15 }
  0x36   : > { %p2745_p3 = scmp.eq.s32.totalorder %s1953_s30, 0  ;;  %p159_p11 = scmp.eq.s32.totalorder %s1953_s30, 1 }
  0x37   : > { %p165_p0 = scmp.eq.s32.totalorder %s1382_s5, 1  ;;  %p1383_p2 = scmp.ge.s32.totalorder %s1798_s20, 1 }
  0x38   : > { %p1963_p4 = por %p2745_p3, %p56_p1  ;;  %p2785_p5 = scmp.ne.s32.totalorder %s1786_s17, %s1782_s16 }
  0x39   : > { %p1974_p8 = por %p165_p0, %p56_p1  ;;  %p172_p10 = scmp.lt.s32.totalorder %s1798_s20, 3 }
  0x3a   : > { %s2784_s27 = scalar_select %p1963_p4, 1, 0 }
  0x3b   : > { %p1970_p6 = por %p159_p11, %p2785_p5  ;;  %p1979_p12 = pnand %p1383_p2, %p172_p10 }
  0x3c   : > { %s2787_s6 = scalar_select %p1974_p8, 1, 0 }
  0x3d   : > { %s2786_s29 = scalar_select %p1970_p6, 1, 0 }
  0x3e   : > { %2788 = sst [smem:[#allocation21_spill]] %s2787_s6  ;;  %s1807_s7 = smov [#allocation9]  }
  0x3f   : > { %s2789_s8 = scalar_select %p1979_p12, 1, 0 }
  0x40   : > { %s185_s13 = sshll.u32 %s1807_s7, 4  ;;  %p1501_p13 = pneg %p1979_p12  ;;  %s186_s13 = int_to_ptr.vmem [resolvable:$true] %s185_s13 }
  0x41   : > { %s1478_s14 = smul.u32 192, %s1885_s24  ;;  %s1616_s20 = scalar_lea.hbm %s2734_s3, 128 }
  0x42   : > { %s1479_s23 = smul.u32 3072, %s1794_s19  ;;  %p1989_p11 = pnand %p1501_p13, %p2745_p3 }
  0x43   : > { %s200_s21 = scalar_lea.vmem [#allocation3], %s1478_s14  ;;  %p1617_p1 = scmp.ne.s32.totalorder %s2734_s3, %s1616_s20 }
  0x44   : > { %s1996_s1 = scalar_lea.hbm %s2731_s0, %s1479_s23  ;;  %s207_s28 = sshll.u32 %s200_s21, 4  ;;  %s1998_s28 = int_to_ptr.vmem [resolvable:$true] %s207_s28 }
  0x45   : > { %p1618_p0 = pneg %p1989_p11  ;;  %p1623_p10 = scmp.lt.u32.totalorder %s1616_s20, %s2734_s3 }
  0x47   : > { %p1619_p2 = pnand %p1618_p0, %p1617_p1 }
  0x49   : > { %p1620_p5 = pneg %p1619_p2 }
  0x4b   : > { %p1625_p13 = pnand %p1623_p10, %p1620_p5 }
  0x4d   : > { %1628 = shalt.err (!%p1625_p13)
}
  0x4e   : > { %s1629_s21 = scalar_lea.vmem %s186_s13, 128  ;;  %p1637_p4 = scmp.lt.s32.totalorder %s186_s13, %s186_s13 }
  0x4f   : > { %p1630_p3 = scmp.ne.s32.totalorder %s186_s13, %s1629_s21  ;;  %p1638_p12 = scmp.lt.s32.totalorder %s1629_s21, %s1629_s21 }
  0x51   : > { %p1632_p8 = pnand %p1630_p3, %p1618_p0  ;;  %p1639_p7 = por %p1638_p12, %p1637_p4 }
  0x53   : > { %p1633_p6 = pneg %p1632_p8 }
  0x55   : > { %p1640_p9 = pnand %p1639_p7, %p1633_p6 }
  0x57   : > { %1643 = shalt.err (!%p1640_p9)
}
  0x58   : > { %1504 = dma.hbm_to_vmem [thread:$0]  (!%p1989_p11), %s2734_s3, 128, %s186_s13, [#allocation10]  }
  0x59   : > { %s197_s20 = scalar_lea.sflag [#allocation4], %s1885_s24  ;;  %s1644_s6 = scalar_lea.hbm %s1996_s1, 3072 }
  0x5a   : > { %p1645_p3 = scmp.ne.s32.totalorder %s1996_s1, %s1644_s6  ;;  %p2791_p8 = scmp.ne.s32.totalorder %s2783_s11, 0 }
  0x5b   : > { %s1649_s5 = scalar_lea.hbm %s2731_s0, 6144  ;;  %p1650_p7 = scmp.lt.u32.totalorder %s1996_s1, %s2731_s0 }
  0x5c   : > { %p1647_p1 = pnand %p1645_p3, %p2791_p8  ;;  %p1651_p9 = scmp.lt.u32.totalorder %s1649_s5, %s1644_s6 }
  0x5d   : > { %p1653_p12 = scmp.lt.u32.totalorder %s1644_s6, %s1996_s1 }
  0x5e   : > { %p1648_p4 = pneg %p1647_p1  ;;  %p1652_p6 = por %p1651_p9, %p1650_p7 }
  0x60   : > { %p1654_p0 = por %p1653_p12, %p1652_p6 }
  0x62   : > { %p1655_p2 = pnand %p1654_p0, %p1648_p4 }
  0x64   : > { %1658 = shalt.err (!%p1655_p2)
}
  0x65   : > { %s1659_s13 = scalar_lea.vmem %s1998_s28, 3072  ;;  %s1808_s12 = smov [#allocation3]  }
  0x66   : > { %p1660_p11 = scmp.ne.s32.totalorder %s1998_s28, %s1659_s13  ;;  %s1664_s21 = sshll.u32 %s1808_s12, 4  ;;  %s1665_s21 = int_to_ptr.vmem [resolvable:$false] %s1664_s21 }
  0x67   : > { %s1666_s17 = scalar_lea.vmem %s1665_s21, 6144  ;;  %p1667_p13 = scmp.lt.s32.totalorder %s1998_s28, %s1665_s21 }
  0x68   : > { %p1662_p5 = pnand %p1660_p11, %p2791_p8  ;;  %p1668_p3 = scmp.lt.s32.totalorder %s1666_s17, %s1659_s13 }
  0x6a   : > { %p1663_p10 = pneg %p1662_p5  ;;  %p1669_p1 = por %p1668_p3, %p1667_p13 }
  0x6c   : > { %p1670_p7 = pnand %p1669_p1, %p1663_p10 }
  0x6e   : > { %1673 = shalt.err (!%p1670_p7)
}
  0x6f   : > { %s1809_s19 = smov 128   ;;  %s1810_s6 = smov 8  }
  0x70   : > { %p2792_p4 = scmp.ne.s32.totalorder %s2780_s25, 0  ;;  %s1674_s14 = scalar_lea.hbm %s1946_s22, 512 }
  0x71   : > { %p1675_p9 = scmp.ne.s32.totalorder %s1946_s22, %s1674_s14  ;;  %s1679_s7 = scalar_lea.hbm %s2733_s2, 1024 }
  0x72   : > { %1508 = dma.hbm_to_vmem [thread:$0]  (!%p2792_p4), %s1996_s1, 3072, %s1998_s28, %s197_s20, %s1809_s19, %s1809_s19, %s1810_s6  }
  0x73   : > { %p1677_p6 = pnand %p1675_p9, %p2791_p8  ;;  %p1680_p0 = scmp.lt.u32.totalorder %s1946_s22, %s2733_s2 }
  0x74   : > { %p1681_p2 = scmp.lt.u32.totalorder %s1679_s7, %s1674_s14  ;;  %p1683_p5 = scmp.lt.u32.totalorder %s1674_s14, %s1946_s22 }
  0x75   : > { %p1678_p12 = pneg %p1677_p6 }
  0x76   : > { %p1682_p11 = por %p1681_p2, %p1680_p0 }
  0x78   : > { %p1684_p10 = por %p1683_p5, %p1682_p11 }
  0x7a   : > { %p1685_p13 = pnand %p1684_p10, %p1678_p12 }
  0x7c   : > { %1688 = shalt.err (!%p1685_p13)
}
  0x7d   : > { %s1689_s1 = scalar_lea.vmem %s1950_s26, 512  ;;  %s1811_s24 = smov [#allocation8]  }
  0x7e   : > { %p1690_p3 = scmp.ne.s32.totalorder %s1950_s26, %s1689_s1  ;;  %s1694_s28 = sshll.u32 %s1811_s24, 4  ;;  %s1695_s28 = int_to_ptr.vmem [resolvable:$false] %s1694_s28 }
  0x7f   : > { %s1696_s20 = scalar_lea.vmem %s1695_s28, 1024  ;;  %p1697_p9 = scmp.lt.s32.totalorder %s1950_s26, %s1695_s28 }
  0x80   : > { %p1692_p1 = pnand %p1690_p3, %p2791_p8  ;;  %p1698_p6 = scmp.lt.s32.totalorder %s1696_s20, %s1689_s1 }
  0x82   : > { %p1693_p7 = pneg %p1692_p1  ;;  %p1699_p0 = por %p1698_p6, %p1697_p9 }
  0x84   : > { %p1700_p2 = pnand %p1699_p0, %p1693_p7 }
  0x86   : > { %1703 = shalt.err (!%p1700_p2)
}
  0x87   : > { %s2793_s12 = smov 16   ;;  %s2794_s21 = smov 256  }
  0x88   : > { %1514 = dma.hbm_to_vmem [thread:$0]  (!%p2792_p4), %s1946_s22, 512, %s1950_s26, %s1908_s9, %s2794_s21, %s2794_s21, %s2793_s12  }
  0x89   : > { %p2795_p8 = scmp.ne.s32.totalorder %s2789_s8, 0 }
  0x8b   : > { %265 = sbr.rel (%p2795_p8) target bundleno = 775 (0x307), region = 36 }
  0x92   : > { %s2068_s11 = sand.u32 1, %s1782_s16   ;;  %p2796_p12 = scmp.ne.s32.totalorder %s2784_s27, 0 }
  0x93   : > { %s1480_s17 = smul.u32 192, %s2068_s11  ;;  %s268_s19 = scalar_lea.sflag [#allocation4], %s2068_s11 }
  0x95   : > { %s2072_s6 = scalar_lea.vmem [#allocation3], %s1480_s17 }
  0x96   : > { %1761 = dma.done.wait (%p2796_p12), %s268_s19, 3072  }
  0x97   : > { %1763 = vsyncadd (%p2796_p12), %s268_s19, 4294964224  ;;  %s276_s25 = sand.u32 1, %s1953_s30   ;;  %s1394_s9 = sshll.u32 %s2068_s11, 5 }
  0x98   : > { %s277_s22 = scalar_lea.sflag [#allocation7], %s276_s25  ;;  %s2080_s26 = scalar_lea.vmem [#allocation6], %s1394_s9 }
  0x99   : > { %1765 = dma.done.wait (%p2796_p12), %s277_s22, 1024  }
  0x9a   : > { %1767 = vsyncadd (%p2796_p12), %s277_s22, 4294966272  ;;  %s2086_s8 = scalar_lea.vmem [#allocation8], %s1394_s9  ;;  %p2797_p4 = scmp.eq.s32.totalorder %s1953_s30, 0 }
  0x9c   : > { %1769 = dma.done.wait (%p2797_p4), [#allocation10], 128   ;;  %p2798_p11 = pmov %p2797_p4 }
  0x9d   : > { %s1397_s14 = sshll.u32 %s2068_s11, 4  ;;  %v355_v0 = vlaneseq  ;;  %v2132_v14 = vld [vmem:[%s2072_s6] sm:$0xff]  ;;  %v2135_v15 = vld [vmem:[%s2072_s6 + $0x8] sm:$0xff]  ;;  %v2138_v16 = vld [vmem:[%s2072_s6 + $0x10] sm:$0xff]  ;;  %s2216_s27 = smov 0  }
  0x9e   : > { %1771 = vsyncadd (%p2798_p11), [#allocation10], 4294967168  ;;  %2812 = vst [vmem:[#allocation35_spill] sm:$0xff] %v2132_v14  ;;  %v2150_v20 = vld [vmem:[%s2072_s6 + $0x18] sm:$0xff]  ;;  %v2153_v21 = vld [vmem:[%s2072_s6 + $0x20] sm:$0xff]  ;;  %s2214_s30 = scalar_lea.vmem [#allocation11], %s1397_s14 }
  0x9f   : > { %v2093_v1 = vshrl.u32 %v355_v0, 7  ;;  %2813 = vst [vmem:[#allocation36_spill] sm:$0xff] %v2135_v15  ;;  %2814 = vst [vmem:[#allocation37_spill] sm:$0xff] %v2138_v16  ;;  %v2156_v22 = vld [vmem:[%s2072_s6 + $0x28] sm:$0xff]  ;;  %v2159_v23 = vld [vmem:[%s2072_s6 + $0x30] sm:$0xff] }
  0xa0   : > { %v2162_v24 = vld [vmem:[%s2072_s6 + $0x38] sm:$0xff]  ;;  %v2165_v25 = vld [vmem:[%s2072_s6 + $0x40] sm:$0xff]  ;;  %v2168_v26 = vld [vmem:[%s2072_s6 + $0x48] sm:$0xff] }
  0xa1   : > { %2799 = vst [vmem:[#allocation22_spill] sm:$0xff] %v2093_v1  ;;  %v2096_v2 = vadd.s32 8, %v2093_v1  ;;  %v2099_v3 = vadd.s32 16, %v2093_v1  ;;  %v2102_v4 = vadd.s32 24, %v2093_v1  ;;  %v2105_v5 = vadd.s32 32, %v2093_v1  ;;  %v2171_v27 = vld [vmem:[%s2072_s6 + $0x50] sm:$0xff] }
  0xa2   : > { %v2108_v6 = vadd.s32 40, %v2093_v1  ;;  %v2111_v7 = vadd.s32 48, %v2093_v1  ;;  %v2114_v8 = vadd.s32 56, %v2093_v1  ;;  %v2117_v9 = vadd.s32 64, %v2093_v1  ;;  %v2174_v28 = vld [vmem:[%s2072_s6 + $0x58] sm:$0xff]  ;;  %v2177_v29 = vld [vmem:[%s2072_s6 + $0x60] sm:$0xff] }
  0xa3   : > { %2800 = vst [vmem:[#allocation23_spill] sm:$0xff] %v2096_v2  ;;  %2801 = vst [vmem:[#allocation24_spill] sm:$0xff] %v2099_v3  ;;  %v2120_v10 = vadd.s32 72, %v2093_v1  ;;  %v2123_v11 = vadd.s32 80, %v2093_v1  ;;  %v2126_v12 = vadd.s32 88, %v2093_v1  ;;  %v2129_v13 = vadd.s32 96, %v2093_v1 }
  0xa4   : > { %2802 = vst [vmem:[#allocation25_spill] sm:$0xff] %v2102_v4  ;;  %2803 = vst [vmem:[#allocation26_spill] sm:$0xff] %v2105_v5  ;;  %v2141_v17 = vadd.s32 104, %v2093_v1  ;;  %v2144_v18 = vadd.s32 112, %v2093_v1  ;;  %v2147_v19 = vadd.s32 120, %v2093_v1  ;;  %v2180_v30 = vld [vmem:[%s2072_s6 + $0x68] sm:$0xff] }
  0xa5   : > { %2804 = vst [vmem:[#allocation27_spill] sm:$0xff] %v2108_v6  ;;  %2805 = vst [vmem:[#allocation28_spill] sm:$0xff] %v2111_v7  ;;  %v2183_v31 = vld [vmem:[%s2072_s6 + $0x70] sm:$0xff]  ;;  %v2186_v32 = vld [vmem:[%s2072_s6 + $0x78] sm:$0xff] }
  0xa6   : > { %2806 = vst [vmem:[#allocation29_spill] sm:$0xff] %v2114_v8  ;;  %2807 = vst [vmem:[#allocation30_spill] sm:$0xff] %v2117_v9  ;;  %v2189_v33 = vld [vmem:[%s2072_s6 + $0x80] sm:$0xff]  ;;  %v2192_v34 = vld [vmem:[%s2072_s6 + $0x88] sm:$0xff] }
  0xa7   : > { %2808 = vst [vmem:[#allocation31_spill] sm:$0xff] %v2120_v10  ;;  %2809 = vst [vmem:[#allocation32_spill] sm:$0xff] %v2123_v11  ;;  %v2195_v35 = vld [vmem:[%s2072_s6 + $0x90] sm:$0xff]  ;;  %v2198_v36 = vld [vmem:[%s2072_s6 + $0x98] sm:$0xff] }
  0xa8   : > { %2810 = vst [vmem:[#allocation33_spill] sm:$0xff] %v2126_v12  ;;  %2811 = vst [vmem:[#allocation34_spill] sm:$0xff] %v2129_v13  ;;  %v2201_v37 = vld [vmem:[%s2072_s6 + $0xa0] sm:$0xff]  ;;  %v2204_v38 = vld [vmem:[%s2072_s6 + $0xa8] sm:$0xff] }
  0xa9   : > { %2815 = vst [vmem:[#allocation38_spill] sm:$0xff] %v2141_v17  ;;  %2816 = vst [vmem:[#allocation39_spill] sm:$0xff] %v2144_v18  ;;  %v2207_v39 = vld [vmem:[%s2072_s6 + $0xb0] sm:$0xff]  ;;  %v2210_v40 = vld [vmem:[%s2072_s6 + $0xb8] sm:$0xff] }
  0xaa   : > { %2817 = vst [vmem:[#allocation40_spill] sm:$0xff] %v2174_v28  ;;  %2818 = vst [vmem:[#allocation41_spill] sm:$0xff] %v2210_v40 }
  0xab LB: >> { %v2829_v5 = vld [vmem:[#allocation26_spill] sm:$0xff]  ;;  %v2830_v4 = vld [vmem:[#allocation25_spill] sm:$0xff]  ;;  %v2831_v3 = vld [vmem:[#allocation24_spill] sm:$0xff]  ;;  %v2753_v41 = vmov 0.0   ;;  %s378_s23 = sshra.s32 %s1802_s27, 3  ;;  %s381_s5 = sand.u32 7, %s1802_s27  ;;  %s1802_s27 = sphi %s2216_s27, %s377_s27  }
  0xac   : >> { %v2827_v7 = vld [vmem:[#allocation28_spill] sm:$0xff]  ;;  %v2828_v6 = vld [vmem:[#allocation27_spill] sm:$0xff]  ;;  %v2832_v1 = vld [vmem:[#allocation22_spill] sm:$0xff]  ;;  %747 = vmatprep.mubr.f32.mxu0 %v2753_v41  ;;  %819 = vmatprep.mubr.f32.mxu1 %v2753_v41  ;;  %s1411_s7 = sshll.u32 %s378_s23, 4  ;;  %s1400_s24 = sshll.u32 %s1802_s27, 3 }
  0xad   : >> { %v2825_v9 = vld [vmem:[#allocation30_spill] sm:$0xff]  ;;  %v2826_v8 = vld [vmem:[#allocation29_spill] sm:$0xff]  ;;  %v2833_v2 = vld [vmem:[#allocation23_spill] sm:$0xff]  ;;  %s384_s10 = sadd.s32 %s1411_s7, %s381_s5  ;;  %v2230_v59 = vsub.s32 1, %v2832_v1  ;;  %v2233_v60 = vsub.s32 0, %v2832_v1  ;;  %s2659_s28 = sshra.s32 %s1400_s24, 3 }
  0xae   : >> { %v2823_v11 = vld [vmem:[#allocation32_spill] sm:$0xff]  ;;  %v2824_v10 = vld [vmem:[#allocation31_spill] sm:$0xff]  ;;  %s387_s13 = scalar_lea.vmem %s2086_s8, %s384_s10 [#allocation8]  ;;  %s385_s1 = scalar_lea.vmem %s2080_s26, %s384_s10 [#allocation6]  ;;  %v2841_v16 = vld [vmem:[#allocation37_spill] sm:$0xff] }
  0xaf   : >> { %v2821_v13 = vld [vmem:[#allocation34_spill] sm:$0xff]  ;;  %v2822_v12 = vld [vmem:[#allocation33_spill] sm:$0xff]  ;;  %v388_v42 = vld [vmem:[%s387_s13] ss:$8 sm:$0x3]  ;;  %2834 = vst [vmem:[#allocation42_spill] sm:$0xff] %v2230_v59 }
  0xb0   : >> { %v2819_v18 = vld [vmem:[#allocation39_spill] sm:$0xff]  ;;  %v2820_v17 = vld [vmem:[#allocation38_spill] sm:$0xff]  ;;  %v390_v44 = vfloor.f32 %v388_v42  ;;  %v403_v45 = vmax.f32 %v388_v42, 0.0  ;;  %v2840_v15 = vld [vmem:[#allocation36_spill] sm:$0xff]  ;;  %s1412_s20 = sshll.u32 %s2659_s28, 4  ;;  %s377_s27 = sadd.s32 1, %s1802_s27  }
  0xb1   : >> { %v386_v43 = vld [vmem:[%s385_s1] ss:$8 sm:$0x3]  ;;  %s1112_s12 = scalar_lea.vmem [#allocation2], %s1412_s20  ;;  %p374_p5 = scmp.ge.s32.totalorder %s377_s27, 9  }
  0xb2   : >> { %v389_v46 = vfloor.f32 %v386_v43  ;;  %v392_v47 = vadd.f32 1.0, %v390_v44  ;;  %v397_v48 = vmax.f32 %v390_v44, 0.0  ;;  %v404_v49 = vmin.f32 %v403_v45, 17.0  ;;  %v2838_v14 = vld [vmem:[#allocation35_spill] sm:$0xff]  ;;  %s1413_s21 = sshll.u32 (%p374_p5), %s1790_s18, 8  ;;  %s1228_s17 = sshll.u32 (%p374_p5), %s2214_s30, 4  ;;  %s2682_s17 = int_to_ptr.vmem [resolvable:$true] %s1228_s17 }
  0xb3   : >> { %v401_v52 = vmax.f32 %v386_v43, 0.0  ;;  %s2680_s25 = scalar_lea.hbm (%p374_p5), %s2735_s4, %s1413_s21  ;;  %s1212_s9 = scalar_lea.sflag (%p374_p5), [#allocation5], %s2068_s11 }
  0xb4   : >> { %v391_v50 = vadd.f32 1.0, %v389_v46  ;;  %v2227_v51 = vmax.f32 %v389_v46, 0.0  ;;  %v398_v53 = vmin.f32 %v397_v48, 17.0  ;;  %v399_v54 = vmax.f32 %v392_v47, 0.0  ;;  %s1704_s22 = scalar_lea.vmem (%p374_p5), %s2682_s17, 256  ;;  %p2847_p13 = scmp.ne.s32.totalorder (%p374_p5), %s2786_s29, 0 }
  0xb5   : >> { %v2238_v63 = vmin.f32 %v401_v52, 17.0  ;;  %p1705_p10 = scmp.ne.s32.totalorder (%p374_p5), %s2682_s17, %s1704_s22  ;;  %s1814_s18 = smov (%p374_p5), [#allocation11]  }
  0xb6   : >> { %v395_v55 = vmax.f32 %v391_v50, 0.0  ;;  %v400_v56 = vmin.f32 %v399_v54, 17.0  ;;  %v409_v57 = vsub.f32 %v398_v53, %v404_v49  ;;  %v1485_v58 = vtrunc.f32 %v398_v53  ;;  %s1708_s26 = sshll.u32 (%p374_p5), %s1814_s18, 4  ;;  %s1709_s26 = int_to_ptr.vmem [resolvable:$false] %s1708_s26 }
  0xb7   : >> { %v2755_v61 = vmin.f32 %v2227_v51, 17.0  ;;  %p1706_p3 = pnand (%p374_p5), %p1705_p10, %p2847_p13  ;;  %s1710_s8 = scalar_lea.vmem (%p374_p5), %s1709_s26, 512 }
  0xb8   : >> { %v2236_v62 = vmin.f32 %v395_v55, 17.0  ;;  %v410_v0 = vadd.f32 1.0, %v409_v57  ;;  %v411_v42 = vsub.f32 %v400_v56, %v404_v49  ;;  %v1486_v43 = vcvt.f32.s32 %v1485_v58  ;;  %p1711_p7 = scmp.lt.s32.totalorder (%p374_p5), %s2682_s17, %s1709_s26  ;;  %p1712_p9 = scmp.lt.s32.totalorder (%p374_p5), %s1710_s8, %s1704_s22 }
  0xb9   : >> { %v1487_v44 = vtrunc.f32 %v400_v56  ;;  %v2255_v49 = vsub.f32 %v2755_v61, %v2238_v63  ;;  %p1707_p1 = pneg (%p374_p5), %p1706_p3 }
  0xba   : >> { %v412_v45 = vsub.f32 1.0, %v411_v42  ;;  %v2241_v47 = vrot.slane %v1486_v43, %v2230_v59  ;;  %v2244_v48 = vrot.slane %v410_v0, %v2230_v59  ;;  %v2247_v50 = vrot.slane %v1486_v43, %v2233_v60  ;;  %p1713_p6 = por (%p374_p5), %p1712_p9, %p1711_p7 }
  0xbb   : >> { %v1488_v46 = vcvt.f32.s32 %v1487_v44  ;;  %v2250_v53 = vrot.slane %v410_v0, %v2233_v60 }
  0xbc   : >> { %vm494_vm0 = vcmp.eq.s32.totalorder %v2832_v1, %v2241_v47  ;;  %vm496_vm1 = vcmp.eq.s32.totalorder %v2833_v2, %v2241_v47  ;;  %v2267_v55 = vrot.slane %v412_v45, %v2230_v59  ;;  %vm493_vm2 = vcmp.eq.s32.totalorder %v2832_v1, %v2247_v50  ;;  %p1714_p0 = pnand (%p374_p5), %p1713_p6, %p1707_p1 }
  0xbd   : >> { %v2264_v54 = vrot.slane %v1488_v46, %v2230_v59  ;;  %v537_v56 = vsel %vm494_vm0, %v2244_v48, 0.0  ;;  %v539_v57 = vsel %vm496_vm1, %v2244_v48, 0.0  ;;  %vm495_vm3 = vcmp.eq.s32.totalorder %v2833_v2, %v2247_v50 }
  0xbe   : >> { %v536_v58 = vsel %vm493_vm2, %v2250_v53, 0.0  ;;  %v538_v0 = vsel %vm495_vm3, %v2250_v53, 0.0  ;;  %v2284_v44 = vrot.slane %v1488_v46, %v2233_v60  ;;  %v2287_v41 = vrot.slane %v412_v45, %v2233_v60 }
  0xbf   : >> { %vm577_vm4 = vcmp.eq.s32.totalorder %v2832_v1, %v2264_v54  ;;  %vm579_vm5 = vcmp.eq.s32.totalorder %v2833_v2, %v2264_v54  ;;  %vm498_vm6 = vcmp.eq.s32.totalorder %v2831_v3, %v2241_v47  ;;  %vm500_vm7 = vcmp.eq.s32.totalorder %v2830_v4, %v2241_v47 }
  0xc0   : >> { %v620_v42 = vsel %vm577_vm4, %v2267_v55, 0.0  ;;  %v622_v43 = vsel %vm579_vm5, %v2267_v55, 0.0  ;;  %vm576_vm8 = vcmp.eq.s32.totalorder %v2832_v1, %v2284_v44  ;;  %vm578_vm9 = vcmp.eq.s32.totalorder %v2833_v2, %v2284_v44 }
  0xc1   : >> { %v652_v52 = vadd.f32 %v620_v42, %v537_v56  ;;  %v654_v61 = vadd.f32 %v622_v43, %v539_v57  ;;  %v541_v46 = vsel %vm498_vm6, %v2244_v48, 0.0  ;;  %v543_v59 = vsel %vm500_vm7, %v2244_v48, 0.0 }
  0xc2   : >> { %v619_v56 = vsel %vm576_vm8, %v2287_v41, 0.0  ;;  %v621_v57 = vsel %vm578_vm9, %v2287_v41, 0.0  ;;  %vm581_vm10 = vcmp.eq.s32.totalorder %v2831_v3, %v2264_v54  ;;  %vm583_vm11 = vcmp.eq.s32.totalorder %v2830_v4, %v2264_v54 }
  0xc3   : >> { %v1414_v45 = vpack.c.bf16 %v654_v61, %v652_v52  ;;  %v651_v42 = vadd.f32 %v619_v56, %v536_v58  ;;  %v653_v43 = vadd.f32 %v621_v57, %v538_v0  ;;  %v624_v40 = vsel %vm581_vm10, %v2267_v55, 0.0 }
  0xc4   : >> { %v626_v2 = vsel %vm583_vm11, %v2267_v55, 0.0  ;;  %v656_v28 = vadd.f32 %v624_v40, %v541_v46  ;;  %vm497_vm12 = vcmp.eq.s32.totalorder %v2831_v3, %v2247_v50  ;;  %vm499_vm13 = vcmp.eq.s32.totalorder %v2830_v4, %v2247_v50 }
  0xc5   : >> { %1415 = vmatprep.subr.bf16.mxu0 %v1414_v45  ;;  %1462 = vmatprep.subr.bf16.mxu1 %v1414_v45  ;;  %v1416_v61 = vpack.c.bf16 %v653_v43, %v651_v42  ;;  %v658_v52 = vadd.f32 %v626_v2, %v543_v59  ;;  %v540_v58 = vsel %vm497_vm12, %v2250_v53, 0.0  ;;  %v542_v0 = vsel %vm499_vm13, %v2250_v53, 0.0 }
  0xc6   : >> { %vm580_vm14 = vcmp.eq.s32.totalorder %v2831_v3, %v2284_v44  ;;  %vm582_vm15 = vcmp.eq.s32.totalorder %v2830_v4, %v2284_v44  ;;  %vm502_vm0 = vcmp.eq.s32.totalorder %v2829_v5, %v2241_v47  ;;  %vm504_vm1 = vcmp.eq.s32.totalorder %v2828_v6, %v2241_v47 }
  0xc7   : >> { %1417 = vmatpush1.bf16.msra.mxu0 %v1416_v61  ;;  %1470 = vmatpush1.bf16.msra.mxu1 %v1416_v61  ;;  %v1418_v40 = vpack.c.bf16 %v658_v52, %v656_v28  ;;  %v623_v2 = vsel %vm580_vm14, %v2287_v41, 0.0  ;;  %v625_v59 = vsel %vm582_vm15, %v2287_v41, 0.0  ;;  %v545_v46 = vsel %vm502_vm0, %v2244_v48, 0.0 }
  0xc8   : >> { %v655_v45 = vadd.f32 %v623_v2, %v540_v58  ;;  %v657_v56 = vadd.f32 %v625_v59, %v542_v0  ;;  %v547_v57 = vsel %vm504_vm1, %v2244_v48, 0.0  ;;  %vm585_vm2 = vcmp.eq.s32.totalorder %v2829_v5, %v2264_v54 }
  0xc9   : >> { %1419 = vmatprep.subr.bf16.mxu0 %v1418_v40  ;;  %1463 = vmatprep.subr.bf16.mxu1 %v1418_v40  ;;  %vm587_vm3 = vcmp.eq.s32.totalorder %v2828_v6, %v2264_v54  ;;  %v628_v28 = vsel %vm585_vm2, %v2267_v55, 0.0  ;;  %vm501_vm4 = vcmp.eq.s32.totalorder %v2829_v5, %v2247_v50  ;;  %vm503_vm5 = vcmp.eq.s32.totalorder %v2828_v6, %v2247_v50 }
  0xca   : >> { %v1420_v42 = vpack.c.bf16 %v657_v56, %v655_v45  ;;  %v630_v43 = vsel %vm587_vm3, %v2267_v55, 0.0  ;;  %v660_v61 = vadd.f32 %v628_v28, %v545_v46  ;;  %v544_v52 = vsel %vm501_vm4, %v2250_v53, 0.0 }
  0xcb   : >> { %v662_v58 = vadd.f32 %v630_v43, %v547_v57  ;;  %v546_v0 = vsel %vm503_vm5, %v2250_v53, 0.0  ;;  %vm584_vm6 = vcmp.eq.s32.totalorder %v2829_v5, %v2284_v44  ;;  %vm586_vm7 = vcmp.eq.s32.totalorder %v2828_v6, %v2284_v44 }
  0xcc   : >> { %1421 = vmatpush1.bf16.msra.mxu0 %v1420_v42  ;;  %1471 = vmatpush1.bf16.msra.mxu1 %v1420_v42  ;;  %v627_v40 = vsel %vm584_vm6, %v2287_v41, 0.0  ;;  %v629_v2 = vsel %vm586_vm7, %v2287_v41, 0.0  ;;  %vm506_vm8 = vcmp.eq.s32.totalorder %v2827_v7, %v2241_v47  ;;  %vm508_vm9 = vcmp.eq.s32.totalorder %v2826_v8, %v2241_v47 }
  0xcd   : >> { %v1422_v59 = vpack.c.bf16 %v662_v58, %v660_v61  ;;  %v659_v46 = vadd.f32 %v627_v40, %v544_v52  ;;  %v661_v45 = vadd.f32 %v629_v2, %v546_v0  ;;  %v549_v56 = vsel %vm506_vm8, %v2244_v48, 0.0 }
  0xce   : >> { %v551_v57 = vsel %vm508_vm9, %v2244_v48, 0.0  ;;  %vm589_vm10 = vcmp.eq.s32.totalorder %v2827_v7, %v2264_v54  ;;  %vm591_vm11 = vcmp.eq.s32.totalorder %v2826_v8, %v2264_v54  ;;  %vm505_vm12 = vcmp.eq.s32.totalorder %v2827_v7, %v2247_v50 }
  0xcf   : >> { %1423 = vmatprep.subr.bf16.mxu0 %v1422_v59  ;;  %1464 = vmatprep.subr.bf16.mxu1 %v1422_v59  ;;  %v1424_v28 = vpack.c.bf16 %v661_v45, %v659_v46  ;;  %v632_v42 = vsel %vm589_vm10, %v2267_v55, 0.0  ;;  %v634_v43 = vsel %vm591_vm11, %v2267_v55, 0.0  ;;  %vm507_vm13 = vcmp.eq.s32.totalorder %v2826_v8, %v2247_v50 }
  0xd0   : >> { %v664_v61 = vadd.f32 %v632_v42, %v549_v56  ;;  %v666_v52 = vadd.f32 %v634_v43, %v551_v57  ;;  %v548_v58 = vsel %vm505_vm12, %v2250_v53, 0.0  ;;  %v550_v0 = vsel %vm507_vm13, %v2250_v53, 0.0 }
  0xd1   : >> { %1425 = vmatpush1.bf16.msra.mxu0 %v1424_v28  ;;  %1472 = vmatpush1.bf16.msra.mxu1 %v1424_v28  ;;  %vm588_vm14 = vcmp.eq.s32.totalorder %v2827_v7, %v2284_v44  ;;  %vm590_vm15 = vcmp.eq.s32.totalorder %v2826_v8, %v2284_v44  ;;  %vm510_vm0 = vcmp.eq.s32.totalorder %v2825_v9, %v2241_v47 }
  0xd2   : >> { %v1426_v40 = vpack.c.bf16 %v666_v52, %v664_v61  ;;  %v631_v2 = vsel %vm588_vm14, %v2287_v41, 0.0  ;;  %v633_v59 = vsel %vm590_vm15, %v2287_v41, 0.0  ;;  %vm512_vm1 = vcmp.eq.s32.totalorder %v2824_v10, %v2241_v47 }
  0xd3   : >> { %v663_v46 = vadd.f32 %v631_v2, %v548_v58  ;;  %v665_v45 = vadd.f32 %v633_v59, %v550_v0  ;;  %v553_v56 = vsel %vm510_vm0, %v2244_v48, 0.0  ;;  %v555_v57 = vsel %vm512_vm1, %v2244_v48, 0.0 }
  0xd4   : >> { %1427 = vmatprep.subr.bf16.mxu0 %v1426_v40  ;;  %1465 = vmatprep.subr.bf16.mxu1 %v1426_v40  ;;  %vm593_vm2 = vcmp.eq.s32.totalorder %v2825_v9, %v2264_v54  ;;  %vm595_vm3 = vcmp.eq.s32.totalorder %v2824_v10, %v2264_v54  ;;  %vm509_vm4 = vcmp.eq.s32.totalorder %v2825_v9, %v2247_v50  ;;  %v2835_v40 = vmin.f32 %v2227_v51, 17.0 }
  0xd5   : >> { %v1428_v28 = vpack.c.bf16 %v665_v45, %v663_v46  ;;  %v636_v42 = vsel %vm593_vm2, %v2267_v55, 0.0  ;;  %v638_v43 = vsel %vm595_vm3, %v2267_v55, 0.0  ;;  %vm511_vm5 = vcmp.eq.s32.totalorder %v2824_v10, %v2247_v50 }
  0xd6   : >> { %v668_v61 = vadd.f32 %v636_v42, %v553_v56  ;;  %v670_v52 = vadd.f32 %v638_v43, %v555_v57  ;;  %v552_v58 = vsel %vm509_vm4, %v2250_v53, 0.0  ;;  %v554_v0 = vsel %vm511_vm5, %v2250_v53, 0.0 }
  0xd7   : >> { %1429 = vmatpush1.bf16.msra.mxu0 %v1428_v28  ;;  %1473 = vmatpush1.bf16.msra.mxu1 %v1428_v28  ;;  %vm592_vm6 = vcmp.eq.s32.totalorder %v2825_v9, %v2284_v44  ;;  %vm594_vm7 = vcmp.eq.s32.totalorder %v2824_v10, %v2284_v44  ;;  %vm514_vm8 = vcmp.eq.s32.totalorder %v2823_v11, %v2241_v47  ;;  %v2393_v2 = vtrunc.f32 %v2835_v40 }
  0xd8   : >> { %v1430_v59 = vpack.c.bf16 %v670_v52, %v668_v61  ;;  %v635_v46 = vsel %vm592_vm6, %v2287_v41, 0.0  ;;  %v637_v45 = vsel %vm594_vm7, %v2287_v41, 0.0  ;;  %vm516_vm9 = vcmp.eq.s32.totalorder %v2822_v12, %v2241_v47 }
  0xd9   : >> { %v667_v56 = vadd.f32 %v635_v46, %v552_v58  ;;  %v669_v57 = vadd.f32 %v637_v45, %v554_v0  ;;  %v557_v28 = vsel %vm514_vm8, %v2244_v48, 0.0  ;;  %v559_v42 = vsel %vm516_vm9, %v2244_v48, 0.0 }
  0xda   : >> { %1431 = vmatprep.subr.bf16.mxu0 %v1430_v59  ;;  %1466 = vmatprep.subr.bf16.mxu1 %v1430_v59  ;;  %vm597_vm10 = vcmp.eq.s32.totalorder %v2823_v11, %v2264_v54  ;;  %vm599_vm11 = vcmp.eq.s32.totalorder %v2822_v12, %v2264_v54  ;;  %vm513_vm12 = vcmp.eq.s32.totalorder %v2823_v11, %v2247_v50  ;;  %v2408_v51 = vadd.f32 1.0, %v2255_v49 }
  0xdb   : >> { %v1432_v43 = vpack.c.bf16 %v669_v57, %v667_v56  ;;  %v640_v61 = vsel %vm597_vm10, %v2267_v55, 0.0  ;;  %v642_v52 = vsel %vm599_vm11, %v2267_v55, 0.0  ;;  %vm515_vm13 = vcmp.eq.s32.totalorder %v2822_v12, %v2247_v50 }
  0xdc   : >> { %v672_v58 = vadd.f32 %v640_v61, %v557_v28  ;;  %v674_v0 = vadd.f32 %v642_v52, %v559_v42  ;;  %v556_v40 = vsel %vm513_vm12, %v2250_v53, 0.0  ;;  %v558_v59 = vsel %vm515_vm13, %v2250_v53, 0.0 }
  0xdd   : >> { %1433 = vmatpush1.bf16.msra.mxu0 %v1432_v43  ;;  %1474 = vmatpush1.bf16.msra.mxu1 %v1432_v43  ;;  %vm596_vm14 = vcmp.eq.s32.totalorder %v2823_v11, %v2284_v44  ;;  %vm598_vm15 = vcmp.eq.s32.totalorder %v2822_v12, %v2284_v44  ;;  %vm518_vm0 = vcmp.eq.s32.totalorder %v2821_v13, %v2241_v47  ;;  %v1483_v61 = vtrunc.f32 %v2236_v62 }
  0xde   : >> { %v1434_v46 = vpack.c.bf16 %v674_v0, %v672_v58  ;;  %v639_v45 = vsel %vm596_vm14, %v2287_v41, 0.0  ;;  %v641_v56 = vsel %vm598_vm15, %v2287_v41, 0.0  ;;  %vm520_vm1 = vcmp.eq.s32.totalorder %v2820_v17, %v2241_v47 }
  0xdf   : >> { %v671_v57 = vadd.f32 %v639_v45, %v556_v40  ;;  %v673_v28 = vadd.f32 %v641_v56, %v558_v59  ;;  %v561_v42 = vsel %vm518_vm0, %v2244_v48, 0.0  ;;  %v563_v43 = vsel %vm520_vm1, %v2244_v48, 0.0 }
  0xe0   : >> { %1435 = vmatprep.subr.bf16.mxu0 %v1434_v46  ;;  %1467 = vmatprep.subr.bf16.mxu1 %v1434_v46  ;;  %vm601_vm2 = vcmp.eq.s32.totalorder %v2821_v13, %v2264_v54  ;;  %vm603_vm3 = vcmp.eq.s32.totalorder %v2820_v17, %v2264_v54  ;;  %vm517_vm4 = vcmp.eq.s32.totalorder %v2821_v13, %v2247_v50 }
  0xe1   : >> { %v1436_v52 = vpack.c.bf16 %v673_v28, %v671_v57  ;;  %v644_v58 = vsel %vm601_vm2, %v2267_v55, 0.0  ;;  %v646_v0 = vsel %vm603_vm3, %v2267_v55, 0.0  ;;  %vm519_vm5 = vcmp.eq.s32.totalorder %v2820_v17, %v2247_v50 }
  0xe2   : >> { %v676_v40 = vadd.f32 %v644_v58, %v561_v42  ;;  %v678_v59 = vadd.f32 %v646_v0, %v563_v43  ;;  %v560_v46 = vsel %vm517_vm4, %v2250_v53, 0.0  ;;  %v562_v45 = vsel %vm519_vm5, %v2250_v53, 0.0 }
  0xe3   : >> { %1437 = vmatpush1.bf16.msra.mxu0 %v1436_v52  ;;  %1475 = vmatpush1.bf16.msra.mxu1 %v1436_v52  ;;  %vm600_vm6 = vcmp.eq.s32.totalorder %v2821_v13, %v2284_v44  ;;  %vm602_vm7 = vcmp.eq.s32.totalorder %v2820_v17, %v2284_v44  ;;  %vm522_vm8 = vcmp.eq.s32.totalorder %v2819_v18, %v2241_v47 }
  0xe4   : >> { %v2836_v56 = vsub.f32 %v2236_v62, %v2238_v63  ;;  %v1438_v28 = vpack.c.bf16 %v678_v59, %v676_v40  ;;  %v643_v42 = vsel %vm600_vm6, %v2287_v41, 0.0  ;;  %v645_v43 = vsel %vm602_vm7, %v2287_v41, 0.0 }
  0xe5   : >> { %vm524_vm9 = vcmp.eq.s32.totalorder %v2147_v19, %v2241_v47  ;;  %v675_v52 = vadd.f32 %v643_v42, %v560_v46  ;;  %v677_v58 = vadd.f32 %v645_v43, %v562_v45  ;;  %v565_v0 = vsel %vm522_vm8, %v2244_v48, 0.0 }
  0xe6   : >> { %v2451_v57 = vsub.f32 1.0, %v2836_v56  ;;  %v567_v49 = vsel %vm524_vm9, %v2244_v48, 0.0  ;;  %1439 = vmatprep.subr.bf16.mxu0 %v1438_v28  ;;  %1468 = vmatprep.subr.bf16.mxu1 %v1438_v28  ;;  %vm605_vm10 = vcmp.eq.s32.totalorder %v2819_v18, %v2264_v54  ;;  %vm607_vm11 = vcmp.eq.s32.totalorder %v2147_v19, %v2264_v54 }
  0xe7   : >> { %vm521_vm12 = vcmp.eq.s32.totalorder %v2819_v18, %v2247_v50  ;;  %v2465_v62 = vcvt.f32.s32 %v1483_v61  ;;  %v1440_v63 = vpack.c.bf16 %v677_v58, %v675_v52  ;;  %v648_v47 = vsel %vm605_vm10, %v2267_v55, 0.0 }
  0xe8   : >> { %v650_v40 = vsel %vm607_vm11, %v2267_v55, 0.0  ;;  %vm523_vm13 = vcmp.eq.s32.totalorder %v2147_v19, %v2247_v50  ;;  %v680_v48 = vadd.f32 %v648_v47, %v565_v0  ;;  %v564_v46 = vsel %vm521_vm12, %v2250_v53, 0.0  ;;  %v2844_v47 = vld [vmem:[#allocation23_spill] sm:$0xff] }
  0xe9   : >> { %v682_v59 = vadd.f32 %v650_v40, %v567_v49  ;;  %v566_v45 = vsel %vm523_vm13, %v2250_v53, 0.0  ;;  %1441 = vmatpush1.bf16.msra.mxu0 %v1440_v63  ;;  %1476 = vmatpush1.bf16.msra.mxu1 %v1440_v63  ;;  %vm604_vm14 = vcmp.eq.s32.totalorder %v2819_v18, %v2284_v44  ;;  %vm606_vm15 = vcmp.eq.s32.totalorder %v2147_v19, %v2284_v44  ;;  %v2843_v63 = vld [vmem:[#allocation41_spill] sm:$0xff] }
  0xea   : >> { %v2837_v54 = vcvt.f32.s32 %v2393_v2  ;;  %v647_v49 = vsel %vm604_vm14, %v2287_v41, 0.0  ;;  %v649_v61 = vsel %vm606_vm15, %v2287_v41, 0.0  ;;  %v2486_v53 = vrot.slane %v2408_v51, %v2233_v60 }
  0xeb   : >> { %v1442_v50 = vpack.c.bf16 %v682_v59, %v680_v48  ;;  %v679_v56 = vadd.f32 %v647_v49, %v564_v46  ;;  %v681_v28 = vadd.f32 %v649_v61, %v566_v45  ;;  %v2492_v44 = vrot.slane %v2465_v62, %v2233_v60 }
  0xec   : >> { %v2480_v55 = vrot.slane %v2837_v54, %v2233_v60  ;;  %v466_v41 = vrot.slane %v2451_v57, %v2233_v60  ;;  %v2839_v0 = vmov 0.0   ;;  %v2842_v60 = vld [vmem:[#allocation40_spill] sm:$0xff]  ;;  %v2846_v49 = vcvt.f32.s32 %v2393_v2 }
  0xed   : >> { %1443 = vmatprep.subr.bf16.mxu0 %v1442_v50  ;;  %1469 = vmatprep.subr.bf16.mxu1 %v1442_v50  ;;  %v1444_v43 = vpack.c.bf16 %v681_v28, %v679_v56  ;;  %vm456_vm1 = vcmp.eq.s32.totalorder %v2832_v1, %v2492_v44  ;;  %vm458_vm3 = vcmp.eq.s32.totalorder %v2844_v47, %v2492_v44  ;;  %v2845_v50 = vld [vmem:[#allocation42_spill] sm:$0xff]  ;;  %vm1085_vm12 = vcmask 1041409  }
  0xee   : >> { %vm425_vm0 = vcmp.eq.s32.totalorder %v2832_v1, %v2480_v55  ;;  %v473_v52 = vsel %vm456_vm1, %v466_v41, 0.0  ;;  %vm427_vm2 = vcmp.eq.s32.totalorder %v2844_v47, %v2480_v55  ;;  %v475_v48 = vsel %vm458_vm3, %v466_v41, 0.0 }
  0xef   : >> { %v442_v42 = vsel %vm425_vm0, %v2486_v53, 0.0  ;;  %1445 = vmatpush1.bf16.msra.mxu0 %v1444_v43  ;;  %1477 = vmatpush1.bf16.msra.mxu1 %v1444_v43  ;;  %v444_v40 = vsel %vm427_vm2, %v2486_v53, 0.0  ;;  %vm429_vm4 = vcmp.eq.s32.totalorder %v2831_v3, %v2480_v55  ;;  %vm460_vm5 = vcmp.eq.s32.totalorder %v2831_v3, %v2492_v44 }
  0xf0   : >> { %v2499_v58 = vadd.f32 %v473_v52, %v442_v42  ;;  %v2552_v59 = vadd.f32 %v475_v48, %v444_v40  ;;  %v446_v46 = vsel %vm429_vm4, %v2486_v53, 0.0  ;;  %v477_v45 = vsel %vm460_vm5, %v466_v41, 0.0 }
  0xf1   : >> { %v2559_v54 = vadd.f32 %v477_v45, %v446_v46  ;;  %v424_v61 = vrot.slane %v2846_v49, %v2845_v50  ;;  %v455_v56 = vrot.slane %v2465_v62, %v2845_v50  ;;  %v439_v28 = vrot.slane %v2408_v51, %v2845_v50 }
  0xf2   : >> { %748 = vmatmul.mubr.f32.vlgmr.msra.gmra.mrb[0].mxu0 %v2838_v14  ;;  %820 = vmatmul.mubr.f32.vlgmr.msra.gmra.mrb[0].mxu1 %v2177_v29  ;;  %v470_v55 = vrot.slane %v2451_v57, %v2845_v50  ;;  %vm1087_vm13 = vcmask 1042434   ;;  %vm1089_vm14 = vcmask 1043459   ;;  %vm1091_vm15 = vcmask 1044484  }
  0xf3   : >> { %753 = vmatprep.mubr.f32.mxu0 %v2839_v0  ;;  %825 = vmatprep.mubr.f32.mxu1 %v2839_v0  ;;  %vm426_vm6 = vcmp.eq.s32.totalorder %v2832_v1, %v424_v61  ;;  %vm457_vm7 = vcmp.eq.s32.totalorder %v2832_v1, %v455_v56  ;;  %vm428_vm8 = vcmp.eq.s32.totalorder %v2844_v47, %v424_v61  ;;  %vm1093_vm0 = vcmask 1045509  }
  0xf4   : >> { %v443_v53 = vsel %vm426_vm6, %v439_v28, 0.0  ;;  %v474_v44 = vsel %vm457_vm7, %v470_v55, 0.0  ;;  %vm459_vm9 = vcmp.eq.s32.totalorder %v2844_v47, %v455_v56  ;;  %v445_v42 = vsel %vm428_vm8, %v439_v28, 0.0 }
  0xf5   : >> { %v2574_v2 = vadd.f32 %v474_v44, %v443_v53  ;;  %v476_v62 = vsel %vm459_vm9, %v470_v55, 0.0  ;;  %vm430_vm10 = vcmp.eq.s32.totalorder %v2831_v3, %v424_v61  ;;  %vm461_vm11 = vcmp.eq.s32.totalorder %v2831_v3, %v455_v56 }
  0xf6   : >> { %754 = vmatmul.mubr.f32.gmra.mrb[2].mxu0 %v2840_v15  ;;  %826 = vmatmul.mubr.f32.gmra.mrb[2].mxu1 %v2180_v30  ;;  %v2582_v47 = vadd.f32 %v476_v62, %v445_v42  ;;  %v447_v40 = vsel %vm430_vm10, %v439_v28, 0.0  ;;  %v478_v48 = vsel %vm461_vm11, %v470_v55, 0.0  ;;  %vm1095_vm1 = vcmask 1046534  }
  0xf7   : >> { %759 = vmatprep.mubr.f32.mxu0 %v2839_v0  ;;  %831 = vmatprep.mubr.f32.mxu1 %v2839_v0  ;;  %vm1097_vm2 = vcmask 1047559   ;;  %vm1134_vm3 = vcmask (%p374_p5), 588800  }
  0xfa   : >> { %760 = vmatmul.mubr.f32.gmra.mrb[4].mxu0 %v2841_v16  ;;  %832 = vmatmul.mubr.f32.gmra.mrb[4].mxu1 %v2183_v31  ;;  %v1115_v31 = vld [vmem:[#allocation9] sm:$0xff] (%p374_p5) }
  0xfb   : >> { %765 = vmatprep.mubr.f32.mxu0 %v2839_v0  ;;  %837 = vmatprep.mubr.f32.mxu1 %v2839_v0 }
  0xfe   : >> { %766 = vmatmul.mubr.f32.gmra.mrb[6].mxu0 %v2150_v20  ;;  %838 = vmatmul.mubr.f32.gmra.mrb[6].mxu1 %v2186_v32 }
  0xff   : >> { %771 = vmatprep.mubr.f32.mxu0 %v2839_v0  ;;  %843 = vmatprep.mubr.f32.mxu1 %v2839_v0 }
 0x102   : >> { %772 = vmatmul.mubr.f32.gmra.mrb[8].mxu0 %v2153_v21  ;;  %844 = vmatmul.mubr.f32.gmra.mrb[8].mxu1 %v2189_v33 }
 0x103   : >> { %777 = vmatprep.mubr.f32.mxu0 %v2839_v0  ;;  %849 = vmatprep.mubr.f32.mxu1 %v2839_v0 }
 0x106   : >> { %778 = vmatmul.mubr.f32.gmra.mrb[10].mxu0 %v2156_v22  ;;  %850 = vmatmul.mubr.f32.gmra.mrb[10].mxu1 %v2192_v34 }
 0x107   : >> { %783 = vmatprep.mubr.f32.mxu0 %v2839_v0  ;;  %855 = vmatprep.mubr.f32.mxu1 %v2839_v0 }
 0x10a   : >> { %784 = vmatmul.mubr.f32.gmra.mrb[12].mxu0 %v2159_v23  ;;  %856 = vmatmul.mubr.f32.gmra.mrb[12].mxu1 %v2195_v35 }
 0x10b   : >> { %789 = vmatprep.mubr.f32.mxu0 %v2839_v0  ;;  %861 = vmatprep.mubr.f32.mxu1 %v2839_v0 }
 0x10e   : >> { %790 = vmatmul.mubr.f32.gmra.mrb[14].mxu0 %v2162_v24  ;;  %862 = vmatmul.mubr.f32.gmra.mrb[14].mxu1 %v2198_v36 }
 0x10f   : >> { %795 = vmatprep.mubr.f32.mxu0 %v2839_v0  ;;  %867 = vmatprep.mubr.f32.mxu1 %v2839_v0 }
 0x112   : >> { %796 = vmatmul.mubr.f32.gmra.mrb[16].mxu0 %v2165_v25  ;;  %868 = vmatmul.mubr.f32.gmra.mrb[16].mxu1 %v2201_v37 }
 0x113   : >> { %801 = vmatprep.mubr.f32.mxu0 %v2839_v0  ;;  %873 = vmatprep.mubr.f32.mxu1 %v2839_v0 }
 0x116   : >> { %802 = vmatmul.mubr.f32.gmra.mrb[18].mxu0 %v2168_v26  ;;  %874 = vmatmul.mubr.f32.gmra.mrb[18].mxu1 %v2204_v38 }
 0x117   : >> { %807 = vmatprep.mubr.f32.mxu0 %v2839_v0  ;;  %879 = vmatprep.mubr.f32.mxu1 %v2839_v0 }
 0x11a   : >> { %808 = vmatmul.mubr.f32.gmra.mrb[20].mxu0 %v2171_v27  ;;  %880 = vmatmul.mubr.f32.gmra.mrb[20].mxu1 %v2207_v39 }
 0x11b   : >> { %813 = vmatprep.mubr.f32.mxu0 %v2839_v0  ;;  %885 = vmatprep.mubr.f32.mxu1 %v2839_v0 }
 0x11e   : >> { %814 = vmatmul.mubr.f32.gmra.mrb[22].mxu0 %v2842_v60  ;;  %886 = vmatmul.mubr.f32.gmra.mrb[22].mxu1 %v2843_v63 }
 0x1c5   : >> { %v749_v41 = vpop.f32.mrb[0].mxu0  ;;  %v821_v43 = vpop.f32.mrb[0].mxu1 }
 0x1c6   : >> { %v892_v51 = vmul.f32 %v749_v41, %v2499_v58  ;;  %v751_v57 = vpop.f32.mrb[1].mxu0  ;;  %v916_v52 = vmul.f32 %v821_v43, %v2499_v58  ;;  %v823_v0 = vpop.f32.mrb[1].mxu1  ;;  %v2588_v41 = vadd.f32 %v478_v48, %v447_v40 }
 0x1c7   : >> { %v893_v60 = vmul.f32 %v751_v57, %v2574_v2  ;;  %v917_v63 = vmul.f32 %v823_v0, %v2574_v2 }
 0x1c9   : >> { %v755_v46 = vpop.f32.mrb[2].mxu0  ;;  %v827_v45 = vpop.f32.mrb[2].mxu1 }
 0x1ca   : >> { %v894_v50 = vmul.f32 %v755_v46, %v2552_v59  ;;  %v918_v49 = vmul.f32 %v827_v45, %v2552_v59  ;;  %v757_v61 = vpop.f32.mrb[3].mxu0  ;;  %v829_v56 = vpop.f32.mrb[3].mxu1 }
 0x1cb   : >> { %v895_v53 = vmul.f32 %v757_v61, %v2582_v47  ;;  %v919_v44 = vmul.f32 %v829_v56, %v2582_v47 }
 0x1cc   : >> { %v940_v43 = vadd.f32 %v894_v50, %v892_v51  ;;  %v1004_v57 = vadd.f32 %v918_v49, %v916_v52 }
 0x1cd   : >> { %v948_v42 = vadd.f32 %v895_v53, %v893_v60  ;;  %v1012_v62 = vadd.f32 %v919_v44, %v917_v63  ;;  %v761_v28 = vpop.f32.mrb[4].mxu0  ;;  %v833_v55 = vpop.f32.mrb[4].mxu1 }
 0x1ce   : >> { %v896_v0 = vmul.f32 %v761_v28, %v2559_v54  ;;  %v920_v46 = vmul.f32 %v833_v55, %v2559_v54  ;;  %v763_v1 = vpop.f32.mrb[5].mxu0  ;;  %v835_v45 = vpop.f32.mrb[5].mxu1 }
 0x1cf   : >> { %v897_v3 = vmul.f32 %v763_v1, %v2588_v41  ;;  %v921_v61 = vmul.f32 %v835_v45, %v2588_v41 }
 0x1d0   : >> { %v941_v4 = vadd.f32 %v940_v43, %v896_v0  ;;  %v2594_v56 = vadd.f32 %v1004_v57, %v920_v46 }
 0x1d1   : >> { %v949_v40 = vadd.f32 %v948_v42, %v897_v3  ;;  %v2596_v51 = vadd.f32 %v1012_v62, %v921_v61  ;;  %v767_v52 = vpop.f32.mrb[6].mxu0  ;;  %v839_v60 = vpop.f32.mrb[6].mxu1 }
 0x1d2   : >> { %v898_v63 = vmul.f32 %v767_v52, %v2499_v58  ;;  %v769_v48 = vpop.f32.mrb[7].mxu0  ;;  %v922_v50 = vmul.f32 %v839_v60, %v2499_v58  ;;  %v841_v49 = vpop.f32.mrb[7].mxu1  ;;  %v942_v44 = vrot.slane %v941_v4, 4 }
 0x1d3   : >> { %v899_v53 = vmul.f32 %v769_v48, %v2574_v2  ;;  %v923_v1 = vmul.f32 %v841_v49, %v2574_v2  ;;  %v950_v28 = vrot.slane %v949_v40, 4 }
 0x1d4   : >> { %v943_v45 = vadd.f32 %v942_v44, %v941_v4 }
 0x1d5   : >> { %v773_v43 = vpop.f32.mrb[8].mxu0  ;;  %v845_v57 = vpop.f32.mrb[8].mxu1  ;;  %v951_v60 = vadd.f32 %v950_v28, %v949_v40 }
 0x1d6   : >> { %v900_v3 = vmul.f32 %v773_v43, %v2552_v59  ;;  %v924_v42 = vmul.f32 %v845_v57, %v2552_v59  ;;  %v775_v62 = vpop.f32.mrb[9].mxu0  ;;  %v847_v55 = vpop.f32.mrb[9].mxu1  ;;  %v944_v10 = vrot.slane %v943_v45, 2 }
 0x1d7   : >> { %v901_v0 = vmul.f32 %v775_v62, %v2582_v47  ;;  %v925_v46 = vmul.f32 %v847_v55, %v2582_v47 }
 0x1d8   : >> { %v956_v61 = vadd.f32 %v900_v3, %v898_v63  ;;  %v1020_v52 = vadd.f32 %v924_v42, %v922_v50  ;;  %v952_v63 = vrot.slane %v951_v60, 2 }
 0x1d9   : >> { %v964_v48 = vadd.f32 %v901_v0, %v899_v53  ;;  %v1028_v49 = vadd.f32 %v925_v46, %v923_v1  ;;  %v779_v5 = vpop.f32.mrb[10].mxu0  ;;  %v851_v6 = vpop.f32.mrb[10].mxu1  ;;  %v945_v0 = vadd.f32 %v944_v10, %v943_v45 }
 0x1da   : >> { %v902_v7 = vmul.f32 %v779_v5, %v2559_v54  ;;  %v926_v43 = vmul.f32 %v851_v6, %v2559_v54  ;;  %v781_v8 = vpop.f32.mrb[11].mxu0  ;;  %v853_v57 = vpop.f32.mrb[11].mxu1 }
 0x1db   : >> { %v903_v9 = vmul.f32 %v781_v8, %v2588_v41  ;;  %v927_v62 = vmul.f32 %v853_v57, %v2588_v41 }
 0x1dc   : >> { %v957_v55 = vadd.f32 %v956_v61, %v902_v7  ;;  %v2610_v4 = vadd.f32 %v1020_v52, %v926_v43  ;;  %v953_v61 = vadd.f32 %v952_v63, %v951_v60  ;;  %v946_v60 = vrot.slane %v945_v0, 1 }
 0x1dd   : >> { %v965_v40 = vadd.f32 %v964_v48, %v903_v9  ;;  %v2612_v50 = vadd.f32 %v1028_v49, %v927_v62  ;;  %v785_v53 = vpop.f32.mrb[12].mxu0  ;;  %v857_v1 = vpop.f32.mrb[12].mxu1  ;;  %v1006_v49 = vrot.slane %v2594_v56, 4 }
 0x1de   : >> { %v958_v44 = vrot.slane %v957_v55, 4  ;;  %v904_v5 = vmul.f32 %v785_v53, %v2499_v58  ;;  %v787_v6 = vpop.f32.mrb[13].mxu0  ;;  %v928_v28 = vmul.f32 %v857_v1, %v2499_v58  ;;  %v859_v3 = vpop.f32.mrb[13].mxu1 }
 0x1df   : >> { %v966_v8 = vrot.slane %v965_v40, 4  ;;  %v905_v42 = vmul.f32 %v787_v6, %v2574_v2  ;;  %v929_v7 = vmul.f32 %v859_v3, %v2574_v2  ;;  %v1014_v6 = vrot.slane %v2596_v51, 4 }
 0x1e0   : >> { %v959_v46 = vadd.f32 %v958_v44, %v957_v55  ;;  %v954_v44 = vrot.slane %v953_v61, 1 }
 0x1e1   : >> { %v967_v9 = vadd.f32 %v966_v8, %v965_v40  ;;  %v791_v52 = vpop.f32.mrb[14].mxu0  ;;  %v863_v48 = vpop.f32.mrb[14].mxu1 }
 0x1e2   : >> { %v960_v43 = vrot.slane %v959_v46, 2  ;;  %v906_v57 = vmul.f32 %v791_v52, %v2552_v59  ;;  %v930_v62 = vmul.f32 %v863_v48, %v2552_v59  ;;  %v793_v53 = vpop.f32.mrb[15].mxu0  ;;  %v865_v1 = vpop.f32.mrb[15].mxu1  ;;  %v2625_v48 = vadd.f32 %v1006_v49, %v2594_v56 }
 0x1e3   : >> { %v968_v11 = vrot.slane %v967_v9, 2  ;;  %v907_v10 = vmul.f32 %v793_v53, %v2582_v47  ;;  %v931_v45 = vmul.f32 %v865_v1, %v2582_v47  ;;  %v955_v49 = vadd.f32 %v954_v44, %v953_v61 }
 0x1e4   : >> { %v961_v55 = vadd.f32 %v960_v43, %v959_v46  ;;  %v972_v63 = vadd.f32 %v906_v57, %v904_v5  ;;  %v1036_v40 = vadd.f32 %v930_v62, %v928_v28  ;;  %v2630_v46 = vadd.f32 %v1014_v6, %v2596_v51 }
 0x1e5   : >> { %v969_v3 = vadd.f32 %v968_v11, %v967_v9  ;;  %v980_v8 = vadd.f32 %v907_v10, %v905_v42  ;;  %v1044_v12 = vadd.f32 %v931_v45, %v929_v7  ;;  %v797_v52 = vpop.f32.mrb[16].mxu0  ;;  %v869_v13 = vpop.f32.mrb[16].mxu1  ;;  %v947_v42 = vadd.f32 %v946_v60, %v945_v0 }
 0x1e6   : >> { %v962_v14 = vrot.slane %v961_v55, 1  ;;  %v908_v15 = vmul.f32 %v797_v52, %v2559_v54  ;;  %v932_v53 = vmul.f32 %v869_v13, %v2559_v54  ;;  %v799_v16 = vpop.f32.mrb[17].mxu0  ;;  %v871_v1 = vpop.f32.mrb[17].mxu1  ;;  %v1008_v61 = vrot.slane %v2625_v48, 2 }
 0x1e7   : >> { %v970_v5 = vrot.slane %v969_v3, 1  ;;  %v909_v11 = vmul.f32 %v799_v16, %v2588_v41  ;;  %v933_v28 = vmul.f32 %v871_v1, %v2588_v41  ;;  %v1016_v60 = vrot.slane %v2630_v46, 2 }
 0x1e8   : >> { %v963_v7 = vadd.f32 %v962_v14, %v961_v55  ;;  %v973_v9 = vadd.f32 %v972_v63, %v908_v15  ;;  %v1037_v56 = vadd.f32 %v1036_v40, %v932_v53  ;;  %v1022_v55 = vrot.slane %v2610_v4, 4 }
 0x1e9   : >> { %v971_v43 = vadd.f32 %v970_v5, %v969_v3  ;;  %v981_v57 = vadd.f32 %v980_v8, %v909_v11  ;;  %v1045_v62 = vadd.f32 %v1044_v12, %v933_v28  ;;  %v803_v10 = vpop.f32.mrb[18].mxu0  ;;  %v875_v13 = vpop.f32.mrb[18].mxu1  ;;  %v1030_v3 = vrot.slane %v2612_v50, 4 }
 0x1ea   : >> { %v1086_v45 = vsel %vm1085_vm12, %v963_v7, %v947_v42  ;;  %v974_v52 = vrot.slane %v973_v9, 4  ;;  %v910_v51 = vmul.f32 %v803_v10, %v2499_v58  ;;  %v805_v6 = vpop.f32.mrb[19].mxu0  ;;  %v877_v17 = vpop.f32.mrb[19].mxu1  ;;  %v934_v0 = vmul.f32 %v875_v13, %v2499_v58 }
 0x1eb   : >> { %v1099_v16 = vsel %vm1085_vm12, %v971_v43, %v955_v49  ;;  %v982_v1 = vrot.slane %v981_v57, 4  ;;  %v911_v14 = vmul.f32 %v805_v6, %v2574_v2  ;;  %v935_v12 = vmul.f32 %v877_v17, %v2574_v2 }
 0x1ec   : >> { %v975_v15 = vadd.f32 %v974_v52, %v973_v9  ;;  %v1038_v28 = vrot.slane %v1037_v56, 4  ;;  %v1046_v9 = vrot.slane %v1045_v62, 4 }
 0x1ed   : >> { %v983_v63 = vadd.f32 %v982_v1, %v981_v57  ;;  %v809_v40 = vpop.f32.mrb[20].mxu0  ;;  %v881_v44 = vpop.f32.mrb[20].mxu1  ;;  %v1023_v57 = vadd.f32 %v1022_v55, %v2610_v4 }
 0x1ee   : >> { %v976_v8 = vrot.slane %v975_v15, 2  ;;  %v912_v53 = vmul.f32 %v809_v40, %v2552_v59  ;;  %v936_v5 = vmul.f32 %v881_v44, %v2552_v59  ;;  %v811_v11 = vpop.f32.mrb[21].mxu0  ;;  %v883_v58 = vpop.f32.mrb[21].mxu1  ;;  %v1031_v59 = vadd.f32 %v1030_v3, %v2612_v50 }
 0x1ef   : >> { %v984_v17 = vrot.slane %v983_v63, 2  ;;  %v913_v2 = vmul.f32 %v811_v11, %v2582_v47  ;;  %v937_v42 = vmul.f32 %v883_v58, %v2582_v47 }
 0x1f0   : >> { %v977_v7 = vadd.f32 %v976_v8, %v975_v15  ;;  %v988_v49 = vadd.f32 %v912_v53, %v910_v51  ;;  %v1052_v43 = vadd.f32 %v936_v5, %v934_v0  ;;  %v1039_v15 = vadd.f32 %v1038_v28, %v1037_v56 }
 0x1f1   : >> { %v985_v10 = vadd.f32 %v984_v17, %v983_v63  ;;  %v996_v13 = vadd.f32 %v913_v2, %v911_v14  ;;  %v1060_v52 = vadd.f32 %v937_v42, %v935_v12  ;;  %v815_v6 = vpop.f32.mrb[22].mxu0  ;;  %v887_v1 = vpop.f32.mrb[22].mxu1  ;;  %v1047_v14 = vadd.f32 %v1046_v9, %v1045_v62 }
 0x1f2   : >> { %v978_v40 = vrot.slane %v977_v7, 1  ;;  %v914_v44 = vmul.f32 %v815_v6, %v2559_v54  ;;  %v938_v11 = vmul.f32 %v887_v1, %v2559_v54  ;;  %v817_v18 = vpop.f32.mrb[23].mxu0  ;;  %v889_v47 = vpop.f32.mrb[23].mxu1  ;;  %v1024_v63 = vrot.slane %v1023_v57, 2 }
 0x1f3   : >> { %v986_v8 = vrot.slane %v985_v10, 1  ;;  %v915_v51 = vmul.f32 %v817_v18, %v2588_v41  ;;  %v939_v4 = vmul.f32 %v889_v47, %v2588_v41  ;;  %v1032_v5 = vrot.slane %v1031_v59, 2 }
 0x1f4   : >> { %v979_v0 = vadd.f32 %v978_v40, %v977_v7  ;;  %v989_v12 = vadd.f32 %v988_v49, %v914_v44  ;;  %v1053_v55 = vadd.f32 %v1052_v43, %v938_v11  ;;  %v1040_v2 = vrot.slane %v1039_v15, 2 }
 0x1f5   : >> { %v987_v53 = vadd.f32 %v986_v8, %v985_v10  ;;  %v997_v50 = vadd.f32 %v996_v13, %v915_v51  ;;  %v1061_v3 = vadd.f32 %v1060_v52, %v939_v4  ;;  %v1048_v41 = vrot.slane %v1047_v14, 2 }
 0x1f6   : >> { %v1088_v58 = vsel %vm1087_vm13, %v979_v0, %v1086_v45  ;;  %v990_v54 = vrot.slane %v989_v12, 4  ;;  %v1054_v17 = vrot.slane %v1053_v55, 4  ;;  %v1009_v7 = vadd.f32 %v1008_v61, %v2625_v48 }
 0x1f7   : >> { %v1100_v56 = vsel %vm1087_vm13, %v987_v53, %v1099_v16  ;;  %v998_v18 = vrot.slane %v997_v50, 4  ;;  %v1062_v28 = vrot.slane %v1061_v3, 4  ;;  %v1017_v43 = vadd.f32 %v1016_v60, %v2630_v46 }
 0x1f8   : >> { %v991_v42 = vadd.f32 %v990_v54, %v989_v12  ;;  %v1055_v62 = vadd.f32 %v1054_v17, %v1053_v55  ;;  %v1025_v10 = vadd.f32 %v1024_v63, %v1023_v57  ;;  %v1033_v52 = vadd.f32 %v1032_v5, %v1031_v59 }
 0x1f9   : >> { %v999_v9 = vadd.f32 %v998_v18, %v997_v50  ;;  %v1063_v49 = vadd.f32 %v1062_v28, %v1061_v3  ;;  %v1041_v6 = vadd.f32 %v1040_v2, %v1039_v15  ;;  %v1049_v16 = vadd.f32 %v1048_v41, %v1047_v14 }
 0x1fa   : >> { %v992_v13 = vrot.slane %v991_v42, 2  ;;  %v1056_v45 = vrot.slane %v1055_v62, 2  ;;  %v1010_v47 = vrot.slane %v1009_v7, 1  ;;  %v1018_v4 = vrot.slane %v1017_v43, 1 }
 0x1fb   : >> { %v1000_v1 = vrot.slane %v999_v9, 2  ;;  %v1064_v40 = vrot.slane %v1063_v49, 2  ;;  %v1026_v48 = vrot.slane %v1025_v10, 1  ;;  %v1034_v46 = vrot.slane %v1033_v52, 1 }
 0x1fc   : >> { %v993_v44 = vadd.f32 %v992_v13, %v991_v42  ;;  %v1057_v11 = vadd.f32 %v1056_v45, %v1055_v62  ;;  %v1042_v60 = vrot.slane %v1041_v6, 1  ;;  %v1050_v59 = vrot.slane %v1049_v16, 1 }
 0x1fd   : >> { %v1001_v8 = vadd.f32 %v1000_v1, %v999_v9  ;;  %v1065_v51 = vadd.f32 %v1064_v40, %v1063_v49  ;;  %v1011_v14 = vadd.f32 %v1010_v47, %v1009_v7  ;;  %v1019_v63 = vadd.f32 %v1018_v4, %v1017_v43 }
 0x1fe   : >> { %v994_v61 = vrot.slane %v993_v44, 1  ;;  %v1058_v0 = vrot.slane %v1057_v11, 1  ;;  %v1027_v53 = vadd.f32 %v1026_v48, %v1025_v10  ;;  %v1035_v3 = vadd.f32 %v1034_v46, %v1033_v52 }
 0x1ff   : >> { %v1002_v57 = vrot.slane %v1001_v8, 1  ;;  %v1066_v55 = vrot.slane %v1065_v51, 1  ;;  %v1043_v5 = vadd.f32 %v1042_v60, %v1041_v6  ;;  %v1051_v2 = vadd.f32 %v1050_v59, %v1049_v16 }
 0x200   : >> { %v995_v15 = vadd.f32 %v994_v61, %v993_v44  ;;  %v1059_v18 = vadd.f32 %v1058_v0, %v1057_v11  ;;  %v1813_v1 = vmov (%p374_p5), 0.0  }
 0x201   : >> { %v1003_v12 = vadd.f32 %v1002_v57, %v1001_v8  ;;  %v1067_v62 = vadd.f32 %v1066_v55, %v1065_v51  ;;  %1202 = vmatprep.mubr.f32.mxu0 (%p374_p5), %v1813_v1 }
 0x202   : >> { %v1090_v50 = vsel %vm1089_vm14, %v995_v15, %v1088_v58  ;;  %376 = sbr.rel (!%p374_p5) target bundleno = 171 (0xab), region = 119 }
 0x203   : >> { %v1092_v54 = vsel %vm1091_vm15, %v1011_v14, %v1090_v50  ;;  %v1101_v17 = vsel %vm1089_vm14, %v1003_v12, %v1100_v56 }
 0x204   : >> { %v1094_v28 = vsel %vm1093_vm0, %v1027_v53, %v1092_v54  ;;  %v1102_v41 = vsel %vm1091_vm15, %v1019_v63, %v1101_v17 }
 0x205   : >> { %v1096_v42 = vsel %vm1095_vm1, %v1043_v5, %v1094_v28  ;;  %v1103_v7 = vsel %vm1093_vm0, %v1035_v3, %v1102_v41 }
 0x206   : >> { %v1098_v58 = vsel %vm1097_vm2, %v1059_v18, %v1096_v42  ;;  %v1104_v9 = vsel %vm1095_vm1, %v1051_v2, %v1103_v7 }
 0x207   : >> { %1113 = vst [vmem:[%s1112_s12] sm:$0xff] %v1098_v58  ;;  %v1105_v49 = vsel %vm1097_vm2, %v1067_v62, %v1104_v9 }
 0x208   : >> { %1114 = vst [vmem:[%s1112_s12 + $0x8] sm:$0xff] %v1105_v49 }
 0x20f   : > { %v1117_v56 = vld [vmem:[#allocation2 + $0x8] sm:$0xff]  ;;  %v1119_v43 = vld [vmem:[#allocation2 + $0x18] sm:$0xff]  ;;  %v1116_v10 = vld [vmem:[#allocation2] sm:$0xff] }
 0x210   : > { %v1446_v13 = vpack.c.bf16 %v1119_v43, %v1117_v56  ;;  %v1118_v45 = vld [vmem:[#allocation2 + $0x10] sm:$0xff]  ;;  %v1121_v52 = vld [vmem:[#allocation2 + $0x28] sm:$0xff]  ;;  %v1123_v6 = vld [vmem:[#allocation2 + $0x38] sm:$0xff] }
 0x211   : > { %v1448_v40 = vpack.c.bf16 %v1118_v45, %v1116_v10  ;;  %v1450_v16 = vpack.c.bf16 %v1123_v6, %v1121_v52  ;;  %v1120_v44 = vld [vmem:[#allocation2 + $0x20] sm:$0xff]  ;;  %v1122_v11 = vld [vmem:[#allocation2 + $0x30] sm:$0xff]  ;;  %v1125_v47 = vld [vmem:[#allocation2 + $0x48] sm:$0xff] }
 0x212   : > { %1447 = vmatprep.subr.bf16.mxu0 %v1446_v13  ;;  %v1127_v8 = vld [vmem:[#allocation2 + $0x58] sm:$0xff]  ;;  %v1452_v51 = vpack.c.bf16 %v1122_v11, %v1120_v44  ;;  %v1124_v19 = vld [vmem:[#allocation2 + $0x40] sm:$0xff]  ;;  %v1126_v20 = vld [vmem:[#allocation2 + $0x50] sm:$0xff] }
 0x213   : > { %1449 = vmatpush1.bf16.msra.mxu0 %v1448_v40  ;;  %v1454_v4 = vpack.c.bf16 %v1127_v8, %v1125_v47  ;;  %v1129_v21 = vld [vmem:[#allocation2 + $0x68] sm:$0xff]  ;;  %v1131_v22 = vld [vmem:[#allocation2 + $0x78] sm:$0xff]  ;;  %v1456_v23 = vpack.c.bf16 %v1126_v20, %v1124_v19  ;;  %v1128_v25 = vld [vmem:[#allocation2 + $0x60] sm:$0xff] }
 0x214   : > { %1451 = vmatprep.subr.bf16.mxu0 %v1450_v16  ;;  %v1458_v24 = vpack.c.bf16 %v1131_v22, %v1129_v21  ;;  %v1130_v26 = vld [vmem:[#allocation2 + $0x70] sm:$0xff]  ;;  %v1133_v29 = vld [vmem:[#allocation2 + $0x88] sm:$0xff]  ;;  %v1132_v30 = vld [vmem:[#allocation2 + $0x80] sm:$0xff] }
 0x215   : > { %v1460_v27 = vpack.c.bf16 %v1130_v26, %v1128_v25 }
 0x217   : > { %1453 = vmatpush1.bf16.msra.mxu0 %v1452_v51 }
 0x218   : > { %1455 = vmatprep.subr.bf16.mxu0 %v1454_v4 }
 0x21b   : > { %1457 = vmatpush1.bf16.msra.mxu0 %v1456_v23 }
 0x21c   : > { %1459 = vmatprep.subr.bf16.mxu0 %v1458_v24 }
 0x21f   : > { %1461 = vmatpush1.bf16.msra.mxu0 %v1460_v27 }
 0x220   : > { %1154 = vmatprep.subr.mxu0 %v1133_v29 }
 0x223   : > { %1155 = vmatpush1.msra.mxu0 %v1132_v30 }
 0x224   : > { %1403 = vmatmul.mubr.msk.f32.vlgmr.msra.gmra.mrb[0].mxu0 %vm1134_vm3, %v1115_v31 }
 0x2f7   : > { %v1204_v32 = vpop.f32.mrb[0].mxu0 }
 0x2f8   : > { %1209 = vst [vmem:[%s2214_s30] sm:$0xff] %v1204_v32  ;;  %v1206_v33 = vpop.f32.mrb[1].mxu0 }
 0x2f9   : > { %1210 = vst [vmem:[%s2214_s30 + $0x8] sm:$0xff] %v1206_v33 }
 0x2fa   : > { %1717 = shalt.err (!%p1714_p0)
}
 0x2fb   : > { %s1718_s11 = scalar_lea.hbm %s2680_s25, 256  ;;  %s1722_s27 = scalar_lea.hbm %s2735_s4, 512 }
 0x2fc   : > { %p1719_p2 = scmp.ne.s32.totalorder %s2680_s25, %s1718_s11  ;;  %p1723_p4 = scmp.lt.u32.totalorder %s2680_s25, %s2735_s4 }
 0x2fd   : > { %p1724_p11 = scmp.lt.u32.totalorder %s1722_s27, %s1718_s11  ;;  %p1726_p10 = scmp.lt.u32.totalorder %s1718_s11, %s2680_s25 }
 0x2fe   : > { %p1720_p8 = pnand %p1719_p2, %p2847_p13 }
 0x2ff   : > { %p1725_p5 = por %p1724_p11, %p1723_p4 }
 0x300   : > { %p1721_p12 = pneg %p1720_p8 }
 0x301   : > { %p1727_p3 = por %p1726_p10, %p1725_p5 }
 0x303   : > { %p1728_p1 = pnand %p1727_p3, %p1721_p12 }
 0x305   : > { %1731 = shalt.err (!%p1728_p1)
}
 0x306   : > { %1499 = dma.vmem_to_hbm [thread:$0]  (%p2847_p13), %s2682_s17, 256, %s2680_s25, %s1212_s9  }
 0x307 PF: > { %s2848_s7 = sld [smem:[#allocation21_spill]]  ;;  %s2849_s10 = sld [smem:[#allocation18_spill]] }
 0x308   : > { %s1240_s13 = sand.u32 1, %s1778_s15  }
 0x309   : > { %s1241_s1 = scalar_lea.sflag [#allocation5], %s1240_s13 }
 0x30d   : > { %p2850_p7 = scmp.ne.s32.totalorder %s2848_s7, 0  ;;  %p2851_p9 = scmp.ge.s32.totalorder %s2849_s10, 2 }
 0x30f   : > { %p1516_p6 = pnand %p2851_p9, %p2850_p7 }
 0x311   : > { %1773 = dma.done.wait (!%p1516_p6), %s1241_s1, 256  }
 0x312   : > { %1775 = vsyncadd (!%p1516_p6), %s1241_s1, 4294967040  ;;  %s24_s20 = sadd.s32 1, %s2849_s10   ;;  %s2852_s24 = sld [smem:[#allocation16_spill]] }
 0x313   : > { %p21_p0 = scmp.ge.s32.totalorder %s24_s20, 4   ;;  %s2853_s17 = sld [smem:[#allocation20_spill]] }
 0x314   : > { %s2854_s18 = sld [smem:[#allocation17_spill]]  ;;  %s2855_s19 = sld [smem:[#allocation19_spill]] }
 0x315   : > { %s2856_s15 = smov %s1782_s16  ;;  %23 = sbr.rel (!%p21_p0) target bundleno = 11 (0xb), region = 130 }
 0x318   : > { %s2857_s16 = smov %s2852_s24 }
 0x31c   :  { %1246 = vsyncpa [#allocation4], 1 }
 0x31d   :  { %1248 = vsyncpa [#allocation4 + $0x1], 1 }
 0x31e   :  { %1249 = vsyncpa [#allocation7], 1 }
 0x31f   :  { %1251 = vsyncpa [#allocation7 + $0x1], 1 }
 0x320   :  { %1252 = vsyncpa [#allocation10], 1 }
 0x321   :  { %1253 = vsyncpa [#allocation5], 1 }
 0x322   :  { %1255 = vsyncpa [#allocation5 + $0x1], 1 }

</bundles_post_ra>
